<compile_context>
chip_gen: v7x
topology: tpu7x:2x2x1
jax: 0.10.0
libtpu: 0.0.40
codegen_flags: <defaults>
</compile_context>

<pallas_src>
import functools

import jax
import jax.numpy as jnp
from jax import lax
from jax.experimental import pallas as pl
from jax.experimental.pallas import tpu as pltpu

_LOG2E = 1.4426950408889634


def _round_up(x, m):
    return (x + m - 1) // m * m


def _sublane_multiple(dtype):
    # f32 -> 8 rows per vreg, bf16 -> 16, int8/fp8 -> 32.
    return {4: 8, 2: 16, 1: 32}.get(jnp.dtype(dtype).itemsize, 8)


def _pick_tile(seq_len, block, sublane):
    """Tile size: dtype-aware sublane rounding; MXU-friendly 128-multiples."""
    seq_r = _round_up(seq_len, sublane)
    if seq_r <= block:
        # Whole (rounded) sequence fits in one tile; keep it a multiple of
        # 128 once it is big enough that MXU feed efficiency matters.
        return _round_up(seq_r, 128) if seq_r >= 128 else seq_r
    return _round_up(block, 128)


def _flash_attn_kernel(q_ref, k_ref, v_ref, o_ref, qs_sc, m_sc, l_sc, acc_sc,
                       *, scale_log2e, kv_len, block_k, approx_reciprocal):
    kv_idx = pl.program_id(2)

    @pl.when(kv_idx == 0)
    def _init():
        # Hoist the softmax scale out of the kv loop. scale is pre-multiplied
        # by log2(e) so the online softmax can use the EUP-native exp2.
        qs_sc[...] = (q_ref[0].astype(jnp.float32) * scale_log2e
                      ).astype(qs_sc.dtype)
        m_sc[...] = jnp.full_like(m_sc, -jnp.inf)
        l_sc[...] = jnp.zeros_like(l_sc)
        acc_sc[...] = jnp.zeros_like(acc_sc)

    q = qs_sc[...]                                              # (TQ, D)
    k = k_ref[0]                                                # (TK, D)
    v = v_ref[0]                                                # (TK, Dv)

    # s = (scale*log2e * q) @ k^T without an explicit transpose.
    s = lax.dot_general(q, k, dimension_numbers=(((1,), (1,)), ((), ())),
                        preferred_element_type=jnp.float32)     # (TQ, TK)

    # Mask zero-padded key positions with a cheap (1, TK) additive bias row
    # (only emitted when padding exists; non-last tiles get an all-zero row).
    if kv_len % block_k != 0:
        col = kv_idx * block_k + lax.broadcasted_iota(jnp.int32, (1, block_k), 1)
        bias = jnp.where(col < kv_len, 0.0, -1e30).astype(jnp.float32)
        s = s + bias

    # Online (streaming) softmax across kv tiles, in base-2.
    m_prev = m_sc[...]                                          # (TQ, 1)
    m_new = jnp.maximum(m_prev, jnp.max(s, axis=-1, keepdims=True))
    alpha = jnp.exp2(m_prev - m_new)
    p = jnp.exp2(s - m_new)                                     # (TQ, TK) f32
    l_sc[...] = alpha * l_sc[...] + jnp.sum(p, axis=-1, keepdims=True)
    acc_sc[...] = alpha * acc_sc[...] + jnp.dot(
        p.astype(v.dtype), v, preferred_element_type=jnp.float32)
    m_sc[...] = m_new

    @pl.when(kv_idx == pl.num_programs(2) - 1)
    def _finalize():
        if approx_reciprocal:
            inv_l = pl.reciprocal(l_sc[...], approx=True)       # EUP slot
        else:
            inv_l = 1.0 / l_sc[...]
        o_ref[0] = (acc_sc[...] * inv_l).astype(o_ref.dtype)


def softmax_attention(q, k, v, scale=None, *, block_q=512, block_k=512,
                      compute_dtype=None, approx_reciprocal=True):
    """q: (..., Lq, D), k: (..., Lk, D), v: (..., Lk, Dv) -> (..., Lq, Dv)."""
    if not (q.ndim == k.ndim == v.ndim):
        raise ValueError("Q, K, V must have same number of dimensions.")
    for i in range(q.ndim - 2):
        if not (q.shape[i] == k.shape[i] == v.shape[i]):
            raise ValueError("Batch sizes of Q, K, V must be the same.")
    if q.shape[-1] != k.shape[-1]:
        raise ValueError("Queries and Keys must be in the same space.")
    if k.shape[-2] != v.shape[-2]:
        raise ValueError("Keys and values must have the same sequence length.")

    *batch, Lq, D = q.shape
    Lk = k.shape[-2]
    Dv = v.shape[-1]
    BH = 1
    for b in batch:
        BH *= b

    if scale is None:
        scale = float(D) ** (-0.5)

    out_dtype = q.dtype
    q3 = q.reshape(BH, Lq, D)
    k3 = k.reshape(BH, Lk, D)
    v3 = v.reshape(BH, Lk, Dv)
    if compute_dtype is not None:
        # Optional: run MXU passes in (e.g.) bf16 while accumulating in f32.
        q3 = q3.astype(compute_dtype)
        k3 = k3.astype(compute_dtype)
        v3 = v3.astype(compute_dtype)

    sub_q = _sublane_multiple(q3.dtype)
    sub_k = _sublane_multiple(k3.dtype)
    itemsize = jnp.dtype(k3.dtype).itemsize

    # Fast path: if the whole K/V stream is small, collapse the kv axis to a
    # single tile so the online-softmax carry work disappears entirely.
    kv_bytes = _round_up(Lk, sub_k) * (D + Dv) * itemsize
    if kv_bytes <= 4 * 1024 * 1024:
        block_k = max(block_k, _round_up(Lk, sub_k))

    bq = _pick_tile(Lq, block_q, sub_q)
    bk = _pick_tile(Lk, block_k, sub_k)

    # Zero-pad sequences to tile multiples. Padded keys are masked in-kernel;
    # padded query rows are sliced off after the call.
    Lq_p = _round_up(Lq, bq)
    Lk_p = _round_up(Lk, bk)
    if Lq_p != Lq:
        q3 = jnp.pad(q3, ((0, 0), (0, Lq_p - Lq), (0, 0)))
    if Lk_p != Lk:
        k3 = jnp.pad(k3, ((0, 0), (0, Lk_p - Lk), (0, 0)))
        v3 = jnp.pad(v3, ((0, 0), (0, Lk_p - Lk), (0, 0)))

    nq = Lq_p // bq
    nk = Lk_p // bk

    kernel = functools.partial(_flash_attn_kernel,
                               scale_log2e=float(scale) * _LOG2E,
                               kv_len=Lk, block_k=bk,
                               approx_reciprocal=approx_reciprocal)

    # K/V are re-streamed once per q tile.
    cost = pl.CostEstimate(
        flops=2 * BH * Lq * Lk * (D + Dv),
        transcendentals=BH * Lq * Lk,
        bytes_accessed=(q3.size + nq * (k3.size + v3.size)) * itemsize
        + BH * Lq_p * Dv * jnp.dtype(out_dtype).itemsize,
    )

    out3 = pl.pallas_call(
        kernel,
        out_shape=jax.ShapeDtypeStruct((BH, Lq_p, Dv), out_dtype),
        grid_spec=pltpu.PrefetchScalarGridSpec(
            num_scalar_prefetch=0,
            grid=(BH, nq, nk),
            in_specs=[
                pl.BlockSpec((1, bq, D), lambda b, qi, ki: (b, qi, 0)),
                pl.BlockSpec((1, bk, D), lambda b, qi, ki: (b, ki, 0)),
                pl.BlockSpec((1, bk, Dv), lambda b, qi, ki: (b, ki, 0)),
            ],
            out_specs=pl.BlockSpec((1, bq, Dv), lambda b, qi, ki: (b, qi, 0)),
            scratch_shapes=[
                pltpu.VMEM((bq, D), q3.dtype),       # pre-scaled q (hoisted)
                pltpu.VMEM((bq, 1), jnp.float32),    # running max (log2 space)
                pltpu.VMEM((bq, 1), jnp.float32),    # running sum
                pltpu.VMEM((bq, Dv), jnp.float32),   # output accumulator
            ],
        ),
        compiler_params=pltpu.CompilerParams(
            dimension_semantics=("parallel", "parallel", "arbitrary"),
        ),
        cost_estimate=cost,
    )(q3, k3, v3)

    out = out3[:, :Lq, :]
    return out.reshape(*batch, Lq, Dv)


def _reference(q, k, v, scale=None):
    D = q.shape[-1]
    if scale is None:
        scale = float(D) ** (-0.5)
    s = jnp.einsum("...qd,...kd->...qk", q, k) * scale
    p = jax.nn.softmax(s, axis=-1)
    return jnp.einsum("...qk,...kv->...qv", p, v)


if __name__ == "__main__":
    key = jax.random.PRNGKey(0)
    kq, kk, kv = jax.random.split(key, 3)

    # Multi-head style: lane-dense D=Dv=128, uneven Lk to exercise the
    # padded-key mask path. BH*nq >= 2 so both v7x TensorCores get work.
    B, H, Lq, Lk, D, Dv = 2, 4, 256, 200, 128, 128
    q = jax.random.normal(kq, (B, H, Lq, D), dtype=jnp.float32)
    k = jax.random.normal(kk, (B, H, Lk, D), dtype=jnp.float32)
    v = jax.random.normal(kv, (B, H, Lk, Dv), dtype=jnp.float32)

    ref = _reference(q, k, v)

    # Default config: single-kv-tile fast path (no online-softmax carry).
    out = softmax_attention(q, k, v)
    out = jax.block_until_ready(out)
    assert out.shape == (B, H, Lq, Dv)
    assert jnp.allclose(out, ref, atol=5e-3, rtol=5e-3), (
        float(jnp.max(jnp.abs(out - ref))))

    # Small-tile config: exercises the multi-kv-tile online softmax path.
    out2 = softmax_attention(q, k, v, block_q=128, block_k=128)
    out2 = jax.block_until_ready(out2)
    assert jnp.allclose(out2, ref, atol=5e-3, rtol=5e-3), (
        float(jnp.max(jnp.abs(out2 - ref))))

    print("KERNEL_OK")
</pallas_src>

<mosaic_0001>
module attributes {stable_mosaic.version = 11 : i64} {
  func.func @_flash_attn_kernel(%arg0: i32, %arg1: i32, %arg2: i32, %arg3: memref<1x256x128xf32, #tpu.memory_space<vmem>>, %arg4: memref<1x256x128xf32, #tpu.memory_space<vmem>>, %arg5: memref<1x256x128xf32, #tpu.memory_space<vmem>>, %arg6: memref<1x256x128xf32, #tpu.memory_space<vmem>>, %arg7: memref<256x128xf32, #tpu.memory_space<vmem>>, %arg8: memref<256x1xf32, #tpu.memory_space<vmem>>, %arg9: memref<256x1xf32, #tpu.memory_space<vmem>>, %arg10: memref<256x128xf32, #tpu.memory_space<vmem>>) attributes {dimension_semantics = [#tpu.dimension_semantics<parallel>, #tpu.dimension_semantics<parallel>, #tpu.dimension_semantics<arbitrary>], iteration_bounds = array<i64: 8, 1, 1>, scalar_prefetch = 0 : i64, scratch_operands = 4 : i64, tpu.core_type = #tpu.core_type<tc>, window_params = [{transform_indices = @transform_0, window_bounds = array<i64: 1, 256, 128>}, {transform_indices = @transform_1, window_bounds = array<i64: 1, 256, 128>}, {transform_indices = @transform_2, window_bounds = array<i64: 1, 256, 128>}, {transform_indices = @transform_3, window_bounds = array<i64: 1, 256, 128>}]} {
    %c0_i32 = arith.constant 0 : i32
    %0 = arith.cmpi eq, %arg2, %c0_i32 : i32
    %1 = arith.extui %0 : i1 to i32
    %c0_i32_0 = arith.constant 0 : i32
    %2 = arith.cmpi ne, %1, %c0_i32_0 : i32
    scf.if %2 {
      %c0_27 = arith.constant 0 : index
      %c0_28 = arith.constant 0 : index
      %c0_29 = arith.constant 0 : index
      %45 = vector.load %arg3[%c0_27, %c0_28, %c0_29] : memref<1x256x128xf32, #tpu.memory_space<vmem>>, vector<1x256x128xf32>
      %46 = vector.shape_cast %45 : vector<1x256x128xf32> to vector<256x128xf32>
      %cst_30 = arith.constant 0.127517432 : f32
      %47 = vector.broadcast %cst_30 : f32 to vector<256x128xf32>
      %48 = arith.mulf %46, %47 : vector<256x128xf32>
      %c0_31 = arith.constant 0 : index
      %c0_32 = arith.constant 0 : index
      %49 = vector.load %arg7[%c0_31, %c0_32] : memref<256x128xf32, #tpu.memory_space<vmem>>, vector<256x128xf32>
      tpu.vector_store %arg7[%c0_31, %c0_32], %48 {strides = array<i32>} : memref<256x128xf32, #tpu.memory_space<vmem>>, vector<256x128xf32>,
      %cst_33 = arith.constant 0xFF800000 : f32
      %50 = vector.broadcast %cst_33 : f32 to vector<256x1xf32>
      %c0_34 = arith.constant 0 : index
      %c0_35 = arith.constant 0 : index
      %51 = vector.load %arg8[%c0_34, %c0_35] : memref<256x1xf32, #tpu.memory_space<vmem>>, vector<256x1xf32>
      tpu.vector_store %arg8[%c0_34, %c0_35], %50 {strides = array<i32>} : memref<256x1xf32, #tpu.memory_space<vmem>>, vector<256x1xf32>,
      %cst_36 = arith.constant 0.000000e+00 : f32
      %52 = vector.broadcast %cst_36 : f32 to vector<256x1xf32>
      %c0_37 = arith.constant 0 : index
      %c0_38 = arith.constant 0 : index
      %53 = vector.load %arg9[%c0_37, %c0_38] : memref<256x1xf32, #tpu.memory_space<vmem>>, vector<256x1xf32>
      tpu.vector_store %arg9[%c0_37, %c0_38], %52 {strides = array<i32>} : memref<256x1xf32, #tpu.memory_space<vmem>>, vector<256x1xf32>,
      %cst_39 = arith.constant 0.000000e+00 : f32
      %54 = vector.broadcast %cst_39 : f32 to vector<256x128xf32>
      %c0_40 = arith.constant 0 : index
      %c0_41 = arith.constant 0 : index
      %55 = vector.load %arg10[%c0_40, %c0_41] : memref<256x128xf32, #tpu.memory_space<vmem>>, vector<256x128xf32>
      tpu.vector_store %arg10[%c0_40, %c0_41], %54 {strides = array<i32>} : memref<256x128xf32, #tpu.memory_space<vmem>>, vector<256x128xf32>,
    } else {
    }
    %c0 = arith.constant 0 : index
    %c0_1 = arith.constant 0 : index
    %3 = vector.load %arg7[%c0, %c0_1] : memref<256x128xf32, #tpu.memory_space<vmem>>, vector<256x128xf32>
    %c0_2 = arith.constant 0 : index
    %c0_3 = arith.constant 0 : index
    %c0_4 = arith.constant 0 : index
    %4 = vector.load %arg4[%c0_2, %c0_3, %c0_4] : memref<1x256x128xf32, #tpu.memory_space<vmem>>, vector<1x256x128xf32>
    %5 = vector.shape_cast %4 : vector<1x256x128xf32> to vector<256x128xf32>
    %c0_5 = arith.constant 0 : index
    %c0_6 = arith.constant 0 : index
    %c0_7 = arith.constant 0 : index
    %6 = vector.load %arg5[%c0_5, %c0_6, %c0_7] : memref<1x256x128xf32, #tpu.memory_space<vmem>>, vector<1x256x128xf32>
    %7 = vector.shape_cast %6 : vector<1x256x128xf32> to vector<256x128xf32>
    %cst = arith.constant dense<0.000000e+00> : vector<256x256xf32>
    %8 = tpu.matmul %3, %5, %cst {dimension_numbers = #tpu.dot_dimension_numbers<[1], [1], [0], [0], [0, 0, 1, 0], [], []>} : vector<256x128xf32>, vector<256x128xf32>, vector<256x256xf32> -> vector<256x256xf32>
    %c256_i32 = arith.constant 256 : i32
    %9 = arith.muli %arg2, %c256_i32 : i32
    %10 = tpu.iota {dimensions = array<i32: 1>} : vector<1x256xi32>
    %11 = vector.broadcast %9 : i32 to vector<1x256xi32>
    %12 = arith.addi %11, %10 : vector<1x256xi32>
    %c200_i32 = arith.constant 200 : i32
    %13 = vector.broadcast %c200_i32 : i32 to vector<1x256xi32>
    %14 = arith.cmpi slt, %12, %13 : vector<1x256xi32>
    %cst_8 = arith.constant 0.000000e+00 : f32
    %cst_9 = arith.constant -1.000000e+30 : f32
    %15 = vector.broadcast %cst_8 : f32 to vector<1x256xf32>
    %16 = vector.broadcast %cst_9 : f32 to vector<1x256xf32>
    %17 = arith.select %14, %15, %16 : vector<1x256xi1>, vector<1x256xf32>
    %18 = vector.broadcast %17 : vector<1x256xf32> to vector<256x256xf32>
    %19 = arith.addf %8, %18 : vector<256x256xf32>
    %c0_10 = arith.constant 0 : index
    %c0_11 = arith.constant 0 : index
    %20 = vector.load %arg8[%c0_10, %c0_11] : memref<256x1xf32, #tpu.memory_space<vmem>>, vector<256x1xf32>
    %cst_12 = arith.constant dense<0xFF800000> : vector<256xf32>
    %21 = vector.multi_reduction <maximumf>, %19, %cst_12 [1] : vector<256x256xf32> to vector<256xf32>
    %22 = vector.shape_cast %21 : vector<256xf32> to vector<256x1xf32>
    %23 = arith.maximumf %20, %22 : vector<256x1xf32>
    %24 = arith.subf %20, %23 : vector<256x1xf32>
    %25 = math.exp2 %24 : vector<256x1xf32>
    %26 = vector.broadcast %23 : vector<256x1xf32> to vector<256x256xf32>
    %27 = arith.subf %19, %26 : vector<256x256xf32>
    %28 = math.exp2 %27 : vector<256x256xf32>
    %c0_13 = arith.constant 0 : index
    %c0_14 = arith.constant 0 : index
    %29 = vector.load %arg9[%c0_13, %c0_14] : memref<256x1xf32, #tpu.memory_space<vmem>>, vector<256x1xf32>
    %30 = arith.mulf %25, %29 : vector<256x1xf32>
    %cst_15 = arith.constant dense<0.000000e+00> : vector<256xf32>
    %31 = vector.multi_reduction <add>, %28, %cst_15 [1] : vector<256x256xf32> to vector<256xf32>
    %32 = vector.shape_cast %31 : vector<256xf32> to vector<256x1xf32>
    %33 = arith.addf %30, %32 : vector<256x1xf32>
    %c0_16 = arith.constant 0 : index
    %c0_17 = arith.constant 0 : index
    %34 = vector.load %arg9[%c0_16, %c0_17] : memref<256x1xf32, #tpu.memory_space<vmem>>, vector<256x1xf32>
    tpu.vector_store %arg9[%c0_16, %c0_17], %33 {strides = array<i32>} : memref<256x1xf32, #tpu.memory_space<vmem>>, vector<256x1xf32>,
    %c0_18 = arith.constant 0 : index
    %c0_19 = arith.constant 0 : index
    %35 = vector.load %arg10[%c0_18, %c0_19] : memref<256x128xf32, #tpu.memory_space<vmem>>, vector<256x128xf32>
    %36 = vector.broadcast %25 : vector<256x1xf32> to vector<256x128xf32>
    %37 = arith.mulf %36, %35 : vector<256x128xf32>
    %cst_20 = arith.constant dense<0.000000e+00> : vector<256x128xf32>
    %38 = tpu.matmul %28, %7, %cst_20 {dimension_numbers = #tpu.dot_dimension_numbers<[1], [0], [0], [1], [0, 0, 1, 1], [], []>} : vector<256x256xf32>, vector<256x128xf32>, vector<256x128xf32> -> vector<256x128xf32>
    %39 = arith.addf %37, %38 : vector<256x128xf32>
    %c0_21 = arith.constant 0 : index
    %c0_22 = arith.constant 0 : index
    %40 = vector.load %arg10[%c0_21, %c0_22] : memref<256x128xf32, #tpu.memory_space<vmem>>, vector<256x128xf32>
    tpu.vector_store %arg10[%c0_21, %c0_22], %39 {strides = array<i32>} : memref<256x128xf32, #tpu.memory_space<vmem>>, vector<256x128xf32>,
    %c0_23 = arith.constant 0 : index
    %c0_24 = arith.constant 0 : index
    %41 = vector.load %arg8[%c0_23, %c0_24] : memref<256x1xf32, #tpu.memory_space<vmem>>, vector<256x1xf32>
    tpu.vector_store %arg8[%c0_23, %c0_24], %23 {strides = array<i32>} : memref<256x1xf32, #tpu.memory_space<vmem>>, vector<256x1xf32>,
    %c0_i32_25 = arith.constant 0 : i32
    %42 = arith.cmpi eq, %arg2, %c0_i32_25 : i32
    %43 = arith.extui %42 : i1 to i32
    %c0_i32_26 = arith.constant 0 : i32
    %44 = arith.cmpi ne, %43, %c0_i32_26 : i32
    scf.if %44 {
      %c0_27 = arith.constant 0 : index
      %c0_28 = arith.constant 0 : index
      %45 = vector.load %arg9[%c0_27, %c0_28] : memref<256x1xf32, #tpu.memory_space<vmem>>, vector<256x1xf32>
      %46 = tpu.reciprocal %45 {approx = true} : vector<256x1xf32> -> vector<256x1xf32>
      %c0_29 = arith.constant 0 : index
      %c0_30 = arith.constant 0 : index
      %47 = vector.load %arg10[%c0_29, %c0_30] : memref<256x128xf32, #tpu.memory_space<vmem>>, vector<256x128xf32>
      %48 = vector.broadcast %46 : vector<256x1xf32> to vector<256x128xf32>
      %49 = arith.mulf %47, %48 : vector<256x128xf32>
      %c0_31 = arith.constant 0 : index
      %c0_32 = arith.constant 0 : index
      %c0_33 = arith.constant 0 : index
      %50 = vector.load %arg6[%c0_31, %c0_32, %c0_33] : memref<1x256x128xf32, #tpu.memory_space<vmem>>, vector<1x256x128xf32>
      %51 = vector.shape_cast %50 : vector<1x256x128xf32> to vector<256x128xf32>
      %52 = vector.shape_cast %49 : vector<256x128xf32> to vector<1x256x128xf32>
      tpu.vector_store %arg6[%c0_31, %c0_32, %c0_33], %52 {strides = array<i32>} : memref<1x256x128xf32, #tpu.memory_space<vmem>>, vector<1x256x128xf32>,
    } else {
    }
    return
  }
  func.func @transform_0(%arg0: i32, %arg1: i32, %arg2: i32) -> (i32, i32, i32) {
    %c0_i32 = arith.constant 0 : i32
    %c0_i32_0 = arith.constant 0 : i32
    return %arg0, %arg1, %c0_i32 : i32, i32, i32
  }
  func.func @transform_1(%arg0: i32, %arg1: i32, %arg2: i32) -> (i32, i32, i32) {
    %c0_i32 = arith.constant 0 : i32
    %c0_i32_0 = arith.constant 0 : i32
    return %arg0, %arg2, %c0_i32 : i32, i32, i32
  }
  func.func @transform_2(%arg0: i32, %arg1: i32, %arg2: i32) -> (i32, i32, i32) {
    %c0_i32 = arith.constant 0 : i32
    %c0_i32_0 = arith.constant 0 : i32
    return %arg0, %arg2, %c0_i32 : i32, i32, i32
  }
  func.func @transform_3(%arg0: i32, %arg1: i32, %arg2: i32) -> (i32, i32, i32) {
    %c0_i32 = arith.constant 0 : i32
    %c0_i32_0 = arith.constant 0 : i32
    return %arg0, %arg1, %c0_i32 : i32, i32, i32
  }
}

</mosaic_0001>

<bundles_post_ra>
// kernel: tpu_custom_call.1
= control target key start
LH: loop header
LB: loop body
LE: loop exit
PB: predicated region body
PF: predicated region fallthrough
CT: control target
= control target key end

     0   :  { %s5071_s0 = inlined_call_operand.hbm [shape: f32[8,256,128], index: 0, kind: input, shape index: {}]   ;;  %s5072_s1 = inlined_call_operand.hbm [shape: f32[8,256,128], index: 1, kind: input, shape index: {}]   ;;  %s5073_s2 = inlined_call_operand.hbm [shape: f32[8,256,128], index: 2, kind: input, shape index: {}]   ;;  %s5074_s3 = inlined_call_operand.hbm [shape: f32[8,256,128], index: 3, kind: output, shape index: {}]  }
   0x1   :  { %5153 = sst [smem:[#allocation80_spill]] %s5072_s1 }
   0x2   :  { %8 = vsyncpa [#allocation7], 0 }
   0x3   :  { %10 = vsyncpa [#allocation7 + $0x1], 0 }
   0x4   :  { %11 = vsyncpa [#allocation10], 0 }
   0x5   :  { %13 = vsyncpa [#allocation10 + $0x1], 0 }
   0x6   :  { %14 = vsyncpa [#allocation8], 0 }
   0x7   :  { %16 = vsyncpa [#allocation8 + $0x1], 0  ;;  %s3377_s12 = smov 0   ;;  %s3379_s13 = smov 0  }
   0x8   :  { %s3381_s14 = smov 0   ;;  %s3383_s15 = smov 0  }
   0x9   :  { %s3385_s16 = smov 0   ;;  %s3387_s17 = smov 0  }
   0xa LB: > { %5154 = sst [smem:[#allocation16_spill]] %s3338_s16  ;;  %s3408_s18 = sadd.s32 4294967295, %s3342_s17   ;;  %s3342_s17 = sphi %s3387_s17, %s22_s17   ;;  %s3338_s16 = sphi %s3385_s16, %s5350_s16   ;;  %s3334_s15 = sphi %s3383_s15, %s5349_s15   ;;  %s3330_s14 = sphi %s3381_s14, %s5353_s14   ;;  %s3326_s13 = sphi %s3379_s13, %s5352_s13   ;;  %s3322_s12 = sphi %s3377_s12, %s5351_s12  }
   0xb   : > { %s2625_s19 = sadd.s32 4294967294, %s3342_s17   ;;  %s41_s20 = sadd.s32 1, %s3338_s16 }
   0xc   : > { %s50_s21 = sadd.s32 1, %s3330_s14  ;;  %p43_p0 = scmp.ge.s32.totalorder %s41_s20, 8 }
   0xd   : > { %p57_p1 = scmp.ne.s32.totalorder %s3330_s14, %s3326_s13  ;;  %p58_p2 = scmp.eq.s32.totalorder %s3342_s17, 0 }
   0xe   : > { %p63_p3 = scmp.ne.s32.totalorder %s3326_s13, %s3322_s12  ;;  %s5355_s20 = smov (%p43_p0, %s41_s20), 0 }
   0xf   : > { %5155 = sst [smem:[#allocation17_spill]] %s5355_s20  ;;  %p3420_p4 = por %p58_p2, %p57_p1 }
  0x10   : > { %p64_p5 = scmp.eq.s32.totalorder %s3408_s18, 0  ;;  %s45_s23 = ssub.s32 %s3338_s16, %s5355_s20 }
  0x11   : > { %p145_p6 = scmp.eq.s32.totalorder %s3408_s18, 7  ;;  %p48_p7 = scmp.eq.s32.totalorder %s45_s23, 0 }
  0x12   : > { %p3428_p8 = por %p64_p5, %p63_p3  ;;  %p151_p10 = scmp.eq.s32.totalorder %s2625_s19, 7 }
  0x13   : > { %p3432_p9 = por %p145_p6, %p57_p1  ;;  %p2849_p12 = scmp.lt.s32.totalorder %s3342_s17, 8 }
  0x14   : > { %s5157_s24 = scalar_select %p3428_p8, 1, 0 }
  0x15   : > { %s5158_s25 = scalar_select %p3432_p9, 1, 0 }
  0x16   : > { %s3437_s26 = scalar_select %p48_p7, %s3330_s14, %s50_s21  }
  0x17   : > { %p3439_p11 = por %p151_p10, %p63_p3  ;;  %s5077_s28 = sand.u32 1, %s3330_s14  }
  0x18   : > { %5159 = sst [smem:[#allocation18_spill]] %s3437_s26  ;;  %s3447_s29 = sshll.u32 %s5077_s28, 8 }
  0x19   : > { %s5160_s27 = scalar_select %p3439_p11, 1, 0 }
  0x1a   : > { %s3450_s30 = sshll.u32 %s3338_s16, 12  ;;  %p3454_p13 = pnand %p2849_p12, %p3420_p4 }
  0x1b   : > { %s194_s5 = sand.u32 1, %s3342_s17   ;;  %s5162_s1 = sld [smem:[#allocation80_spill]] }
  0x1c   : > { %s198_s9 = scalar_lea.vmem [#allocation9], %s3447_s29  ;;  %s3470_s11 = scalar_lea.sflag [#allocation10], %s194_s5 }
  0x1d   : > { %s207_s10 = sshll.u32 %s198_s9, 4  ;;  %p3476_p3 = pneg %p3454_p13  ;;  %s3467_s10 = int_to_ptr.vmem [resolvable:$true] %s207_s10 }
  0x21   : > { %s3463_s8 = scalar_lea.hbm %s5162_s1, %s3450_s30  ;;  %s3171_s6 = scalar_lea.hbm %s5162_s1, 32768 }
  0x22   : > { %s3166_s19 = scalar_lea.hbm %s3463_s8, 4096  ;;  %p3172_p6 = scmp.lt.u32.totalorder %s3463_s8, %s5162_s1 }
  0x23   : > { %p3167_p2 = scmp.ne.s32.totalorder %s3463_s8, %s3166_s19  ;;  %p3173_p7 = scmp.lt.u32.totalorder %s3171_s6, %s3166_s19 }
  0x24   : > { %p3175_p12 = scmp.lt.u32.totalorder %s3166_s19, %s3463_s8 }
  0x25   : > { %p3169_p4 = pnand %p3476_p3, %p3167_p2  ;;  %p3174_p10 = por %p3173_p7, %p3172_p6 }
  0x27   : > { %p3170_p5 = pneg %p3169_p4  ;;  %p3176_p0 = por %p3175_p12, %p3174_p10 }
  0x29   : > { %p3177_p1 = pnand %p3176_p0, %p3170_p5 }
  0x2b   : > { %3180 = shalt.err (!%p3177_p1)
}
  0x2c   : > { %s3181_s5 = scalar_lea.vmem %s3467_s10, 4096  ;;  %s3344_s22 = smov [#allocation9]  }
  0x2d   : > { %p3182_p2 = scmp.ne.s32.totalorder %s3467_s10, %s3181_s5  ;;  %s3186_s23 = sshll.u32 %s3344_s22, 4  ;;  %s3187_s23 = int_to_ptr.vmem [resolvable:$false] %s3186_s23 }
  0x2e   : > { %s3188_s7 = scalar_lea.vmem %s3187_s23, 8192  ;;  %p3189_p9 = scmp.lt.s32.totalorder %s3467_s10, %s3187_s23 }
  0x2f   : > { %p3184_p4 = pnand %p3182_p2, %p3476_p3  ;;  %p3190_p8 = scmp.lt.s32.totalorder %s3188_s7, %s3181_s5 }
  0x31   : > { %p3185_p11 = pneg %p3184_p4  ;;  %p3191_p6 = por %p3190_p8, %p3189_p9 }
  0x33   : > { %p3192_p7 = pnand %p3191_p6, %p3185_p11 }
  0x35   : > { %3195 = shalt.err (!%p3192_p7)
}
  0x36   : > { %s5078_s19 = smov 128   ;;  %s5080_s6 = smov 8  }
  0x37   : > { %2841 = dma.hbm_to_vmem [thread:$0]  (!%p3454_p13), %s3463_s8, 4096, %s3467_s10, %s3470_s11, %s5078_s19, %s5078_s19, %s5080_s6  }
  0x38   : > { %p5164_p8 = scmp.lt.s32.totalorder %s3342_s17, 9  ;;  %p5165_p9 = scmp.ge.s32.totalorder %s3342_s17, 1 }
  0x39   : > { %s3515_s23 = scalar_lea.hbm %s5071_s0, %s3450_s30  ;;  %s175_s7 = scalar_lea.vmem [#allocation6], %s3447_s29 }
  0x3a   : > { %p3507_p11 = pnand %p5165_p9, %p5164_p8  ;;  %s184_s28 = sshll.u32 %s175_s7, 4  ;;  %s3518_s28 = int_to_ptr.vmem [resolvable:$true] %s184_s28 }
  0x3b   : > { %s3524_s19 = scalar_lea.hbm %s5073_s2, %s3450_s30  ;;  %s5167_s6 = sand.u32 1, %s3330_s14  }
  0x3c   : > { %s5166_s9 = scalar_select %p3507_p11, 1, 0 }
  0x3d   : > { %s3528_s1 = scalar_lea.sflag [#allocation7], %s5167_s6  ;;  %s3196_s20 = scalar_lea.hbm %s3515_s23, 4096 }
  0x3e   : > { %p3197_p0 = scmp.ne.s32.totalorder %s3515_s23, %s3196_s20  ;;  %s3201_s16 = scalar_lea.hbm %s5071_s0, 32768 }
  0x3f   : > { %p3202_p10 = scmp.lt.u32.totalorder %s3515_s23, %s5071_s0  ;;  %p3203_p12 = scmp.lt.u32.totalorder %s3201_s16, %s3196_s20 }
  0x40   : > { %p3199_p1 = pnand %p3197_p0, %p3476_p3  ;;  %p3205_p4 = scmp.lt.u32.totalorder %s3196_s20, %s3515_s23 }
  0x41   : > { %p3204_p2 = por %p3203_p12, %p3202_p10 }
  0x42   : > { %p3200_p5 = pneg %p3199_p1 }
  0x43   : > { %p3206_p6 = por %p3205_p4, %p3204_p2 }
  0x45   : > { %p3207_p7 = pnand %p3206_p6, %p3200_p5 }
  0x47   : > { %3210 = shalt.err (!%p3207_p7)
}
  0x48   : > { %s3211_s30 = scalar_lea.vmem %s3518_s28, 4096  ;;  %s3347_s6 = smov [#allocation6]  }
  0x49   : > { %p3212_p8 = scmp.ne.s32.totalorder %s3518_s28, %s3211_s30  ;;  %s3216_s8 = sshll.u32 %s3347_s6, 4  ;;  %s3217_s8 = int_to_ptr.vmem [resolvable:$false] %s3216_s8 }
  0x4a   : > { %s3218_s26 = scalar_lea.vmem %s3217_s8, 8192  ;;  %p3219_p1 = scmp.lt.s32.totalorder %s3518_s28, %s3217_s8 }
  0x4b   : > { %p3214_p9 = pnand %p3212_p8, %p3476_p3  ;;  %p3220_p11 = scmp.lt.s32.totalorder %s3218_s26, %s3211_s30 }
  0x4d   : > { %p3215_p0 = pneg %p3214_p9  ;;  %p3221_p10 = por %p3220_p11, %p3219_p1 }
  0x4f   : > { %p3222_p12 = pnand %p3221_p10, %p3215_p0 }
  0x51   : > { %3225 = shalt.err (!%p3222_p12)
}
  0x52   : > { %s5168_s16 = smov 8   ;;  %s5169_s20 = smov 128  }
  0x53   : > { %2838 = dma.hbm_to_vmem [thread:$0]  (!%p3454_p13), %s3515_s23, 4096, %s3518_s28, %s3528_s1, %s5169_s20, %s5169_s20, %s5168_s16  }
  0x54   : > { %s221_s10 = scalar_lea.vmem [#allocation11], %s3447_s29  ;;  %s3226_s22 = scalar_lea.hbm %s3524_s19, 4096 }
  0x55   : > { %s230_s5 = sshll.u32 %s221_s10, 4  ;;  %p3227_p11 = scmp.ne.s32.totalorder %s3524_s19, %s3226_s22  ;;  %s3556_s5 = int_to_ptr.vmem [resolvable:$true] %s230_s5 }
  0x56   : > { %s3231_s6 = scalar_lea.hbm %s5073_s2, 32768  ;;  %p3232_p4 = scmp.lt.u32.totalorder %s3524_s19, %s5073_s2 }
  0x57   : > { %p3229_p5 = pnand %p3227_p11, %p3476_p3  ;;  %p3233_p6 = scmp.lt.u32.totalorder %s3231_s6, %s3226_s22 }
  0x58   : > { %p3235_p8 = scmp.lt.u32.totalorder %s3226_s22, %s3524_s19 }
  0x59   : > { %p3230_p2 = pneg %p3229_p5  ;;  %p3234_p7 = por %p3233_p6, %p3232_p4 }
  0x5b   : > { %p3236_p9 = por %p3235_p8, %p3234_p7 }
  0x5d   : > { %p3237_p0 = pnand %p3236_p9, %p3230_p2 }
  0x5f   : > { %3240 = shalt.err (!%p3237_p0)
}
  0x60   : > { %s3241_s1 = scalar_lea.vmem %s3556_s5, 4096  ;;  %s3348_s28 = smov [#allocation11]  }
  0x61   : > { %p3242_p1 = scmp.ne.s32.totalorder %s3556_s5, %s3241_s1  ;;  %s3246_s29 = sshll.u32 %s3348_s28, 4  ;;  %s3247_s29 = int_to_ptr.vmem [resolvable:$false] %s3246_s29 }
  0x62   : > { %s3248_s23 = scalar_lea.vmem %s3247_s29, 8192  ;;  %p3249_p11 = scmp.lt.s32.totalorder %s3556_s5, %s3247_s29 }
  0x63   : > { %p3244_p10 = pnand %p3242_p1, %p3476_p3  ;;  %p3250_p5 = scmp.lt.s32.totalorder %s3248_s23, %s3241_s1 }
  0x65   : > { %p3245_p12 = pneg %p3244_p10  ;;  %p3251_p4 = por %p3250_p5, %p3249_p11 }
  0x67   : > { %p3252_p6 = pnand %p3251_p4, %p3245_p12 }
  0x69   : > { %3255 = shalt.err (!%p3252_p6)
}
  0x6a   : > { %2844 = dma.hbm_to_vmem [thread:$0]  (!%p3454_p13), %s3524_s19, 4096, %s3556_s5, %s3470_s11, %s5169_s20, %s5169_s20, %s5168_s16  }
  0x6b   : > { %p5170_p3 = scmp.ne.s32.totalorder %s5166_s9, 0 }
  0x6d   : > { %242 = sbr.rel (%p5170_p3) target bundleno = 1135 (0x46f), region = 32 }
  0x74   : > { %s3586_s21 = sand.u32 1, %s3326_s13   ;;  %p5171_p2 = scmp.ne.s32.totalorder %s5157_s24, 0 }
  0x75   : > { %s3589_s10 = sshll.u32 %s3586_s21, 8  ;;  %s245_s4 = scalar_lea.sflag [#allocation7], %s3586_s21 }
  0x76   : > { %s3593_s22 = scalar_lea.vmem [#allocation6], %s3589_s10 }
  0x77   : > { %3309 = dma.done.wait (%p5171_p2), %s245_s4, 4096  }
  0x78   : > { %3311 = vsyncadd (%p5171_p2), %s245_s4, 4294963200  ;;  %s253_s11 = sand.u32 1, %s3408_s18   ;;  %s3601_s9 = scalar_lea.vmem [#allocation9], %s3589_s10 }
  0x79   : > { %s254_s19 = scalar_lea.sflag [#allocation10], %s253_s11 }
  0x7a   : > { %3313 = dma.done.wait (%p5171_p2), %s254_s19, 8192  }
  0x7b   : > { %3315 = vsyncadd (%p5171_p2), %s254_s19, 4294959104  ;;  %v548_v0 = vld [vmem:[%s3601_s9 + $0x80] sm:$0xff]  ;;  %v549_v1 = vld [vmem:[%s3601_s9 + $0x88] sm:$0xff]  ;;  %vm403_vm1 = vcmask 7168   ;;  %s3911_s18 = scalar_lea.vmem [#allocation11], %s3589_s10  ;;  %s4949_s24 = scalar_lea.vmem [#allocation12], %s3589_s10 }
  0x7c   : > { %v532_v2 = vld [vmem:[%s3601_s9] sm:$0xff]  ;;  %v2747_v3 = vpack.c.bf16 %v549_v1, %v548_v0  ;;  %v533_v4 = vld [vmem:[%s3601_s9 + $0x8] sm:$0xff]  ;;  %v550_v5 = vld [vmem:[%s3601_s9 + $0x90] sm:$0xff]  ;;  %s2650_s16 = sshll.u32 %s3334_s15, 12  ;;  %s2485_s20 = sshll.u32 %s4949_s24, 4  ;;  %s5020_s20 = int_to_ptr.vmem [resolvable:$true] %s2485_s20 }
  0x7d   : > { %v551_v6 = vld [vmem:[%s3601_s9 + $0x98] sm:$0xff]  ;;  %v2749_v7 = vpack.c.bf16 %v533_v4, %v532_v2  ;;  %v534_v9 = vld [vmem:[%s3601_s9 + $0x10] sm:$0xff]  ;;  %v552_v11 = vld [vmem:[%s3601_s9 + $0xa0] sm:$0xff]  ;;  %s5018_s30 = scalar_lea.hbm %s5074_s3, %s2650_s16  ;;  %s2470_s15 = scalar_lea.sflag [#allocation8], %s3586_s21 }
  0x7e   : > { %v2751_v8 = vpack.c.bf16 %v551_v6, %v550_v5  ;;  %2748 = vmatprep.subr.bf16.mxu0 %v2747_v3  ;;  %v535_v10 = vld [vmem:[%s3601_s9 + $0x18] sm:$0xff]  ;;  %v553_v12 = vld [vmem:[%s3601_s9 + $0xa8] sm:$0xff]  ;;  %v307_v15 = vld [vmem:[%s3593_s22] sm:$0xff]  ;;  %s3256_s6 = scalar_lea.vmem %s5020_s20, 4096  ;;  %p5346_p7 = scmp.ne.s32.totalorder %s5158_s25, 0 }
  0x7f   : > { %2750 = vmatpush3.bf16.xpose.msra.mxu0 %v2749_v7  ;;  %v2753_v13 = vpack.c.bf16 %v535_v10, %v534_v9  ;;  %v2755_v14 = vpack.c.bf16 %v553_v12, %v552_v11  ;;  %v339_v16 = vmul.f32 0.12751743, %v307_v15  ;;  %v536_v17 = vld [vmem:[%s3601_s9 + $0x20] sm:$0xff]  ;;  %v537_v18 = vld [vmem:[%s3601_s9 + $0x28] sm:$0xff]  ;;  %v554_v19 = vld [vmem:[%s3601_s9 + $0xb0] sm:$0xff]  ;;  %p3257_p13 = scmp.ne.s32.totalorder %s5020_s20, %s3256_s6  ;;  %s3354_s8 = smov [#allocation12]  }
  0x80   : > { %2752 = vmatprep.subr.bf16.mxu0 %v2751_v8  ;;  %v555_v20 = vld [vmem:[%s3601_s9 + $0xb8] sm:$0xff]  ;;  %v2757_v21 = vpack.c.bf16 %v537_v18, %v536_v17  ;;  %v538_v23 = vld [vmem:[%s3601_s9 + $0x30] sm:$0xff]  ;;  %v556_v25 = vld [vmem:[%s3601_s9 + $0xc0] sm:$0xff]  ;;  %s3260_s26 = sshll.u32 %s3354_s8, 4  ;;  %s3261_s26 = int_to_ptr.vmem [resolvable:$false] %s3260_s26 }
  0x81   : > { %2683 = vmatprep.mubr.f32.mxu0 %v339_v16  ;;  %v2759_v22 = vpack.c.bf16 %v555_v20, %v554_v19  ;;  %v539_v24 = vld [vmem:[%s3601_s9 + $0x38] sm:$0xff]  ;;  %v557_v26 = vld [vmem:[%s3601_s9 + $0xc8] sm:$0xff]  ;;  %v540_v29 = vld [vmem:[%s3601_s9 + $0x40] sm:$0xff]  ;;  %p3258_p8 = pnand %p3257_p13, %p5346_p7  ;;  %s3262_s1 = scalar_lea.vmem %s3261_s26, 8192 }
  0x82   : > { %v2761_v27 = vpack.c.bf16 %v539_v24, %v538_v23  ;;  %v2763_v28 = vpack.c.bf16 %v557_v26, %v556_v25  ;;  %v541_v30 = vld [vmem:[%s3601_s9 + $0x48] sm:$0xff]  ;;  %v558_v31 = vld [vmem:[%s3601_s9 + $0xd0] sm:$0xff]  ;;  %v559_v32 = vld [vmem:[%s3601_s9 + $0xd8] sm:$0xff]  ;;  %p3263_p0 = scmp.lt.s32.totalorder %s5020_s20, %s3261_s26  ;;  %p3264_p1 = scmp.lt.s32.totalorder %s3262_s1, %s3256_s6 }
  0x83   : > { %v2765_v33 = vpack.c.bf16 %v541_v30, %v540_v29  ;;  %v2767_v34 = vpack.c.bf16 %v559_v32, %v558_v31  ;;  %v542_v35 = vld [vmem:[%s3601_s9 + $0x50] sm:$0xff]  ;;  %v543_v36 = vld [vmem:[%s3601_s9 + $0x58] sm:$0xff]  ;;  %v560_v37 = vld [vmem:[%s3601_s9 + $0xe0] sm:$0xff]  ;;  %p3259_p9 = pneg %p3258_p8 }
  0x84   : > { %v561_v38 = vld [vmem:[%s3601_s9 + $0xe8] sm:$0xff]  ;;  %v2769_v39 = vpack.c.bf16 %v543_v36, %v542_v35  ;;  %v544_v41 = vld [vmem:[%s3601_s9 + $0x60] sm:$0xff]  ;;  %v562_v43 = vld [vmem:[%s3601_s9 + $0xf0] sm:$0xff]  ;;  %p3265_p10 = por %p3264_p1, %p3263_p0 }
  0x85   : > { %v2771_v40 = vpack.c.bf16 %v561_v38, %v560_v37  ;;  %v545_v42 = vld [vmem:[%s3601_s9 + $0x68] sm:$0xff]  ;;  %v563_v44 = vld [vmem:[%s3601_s9 + $0xf8] sm:$0xff]  ;;  %v546_v47 = vld [vmem:[%s3601_s9 + $0x70] sm:$0xff] }
  0x86   : > { %v2773_v45 = vpack.c.bf16 %v545_v42, %v544_v41  ;;  %v2775_v46 = vpack.c.bf16 %v563_v44, %v562_v43  ;;  %v547_v48 = vld [vmem:[%s3601_s9 + $0x78] sm:$0xff]  ;;  %v308_v50 = vld [vmem:[%s3593_s22 + $0x8] sm:$0xff]  ;;  %v309_v52 = vld [vmem:[%s3593_s22 + $0x10] sm:$0xff]  ;;  %p3266_p12 = pnand %p3265_p10, %p3259_p9 }
  0x87   : > { %2754 = vmatpush3.bf16.xpose.msra.mxu0 %v2753_v13  ;;  %v2777_v49 = vpack.c.bf16 %v547_v48, %v546_v47  ;;  %v340_v51 = vmul.f32 0.12751743, %v308_v50  ;;  %v341_v53 = vmul.f32 0.12751743, %v309_v52  ;;  %v310_v54 = vld [vmem:[%s3593_s22 + $0x18] sm:$0xff]  ;;  %v311_v56 = vld [vmem:[%s3593_s22 + $0x20] sm:$0xff]  ;;  %v597_v48 = vlaneseq }
  0x88   : > { %2756 = vmatprep.subr.bf16.mxu0 %v2755_v14  ;;  %v342_v55 = vmul.f32 0.12751743, %v310_v54  ;;  %v343_v57 = vmul.f32 0.12751743, %v311_v56  ;;  %v312_v58 = vld [vmem:[%s3593_s22 + $0x28] sm:$0xff]  ;;  %v313_v60 = vld [vmem:[%s3593_s22 + $0x30] sm:$0xff] }
  0x89   : > { %v344_v59 = vmul.f32 0.12751743, %v312_v58  ;;  %v345_v61 = vmul.f32 0.12751743, %v313_v60  ;;  %v314_v62 = vld [vmem:[%s3593_s22 + $0x38] sm:$0xff]  ;;  %v315_v0 = vld [vmem:[%s3593_s22 + $0x40] sm:$0xff] }
  0x8a   : > { %v346_v63 = vmul.f32 0.12751743, %v314_v62  ;;  %v347_v1 = vmul.f32 0.12751743, %v315_v0  ;;  %v316_v2 = vld [vmem:[%s3593_s22 + $0x48] sm:$0xff]  ;;  %v317_v4 = vld [vmem:[%s3593_s22 + $0x50] sm:$0xff] }
  0x8b   : > { %v348_v3 = vmul.f32 0.12751743, %v316_v2  ;;  %v349_v5 = vmul.f32 0.12751743, %v317_v4  ;;  %v318_v6 = vld [vmem:[%s3593_s22 + $0x58] sm:$0xff]  ;;  %v319_v8 = vld [vmem:[%s3593_s22 + $0x60] sm:$0xff] }
  0x8c   : > { %v350_v7 = vmul.f32 0.12751743, %v318_v6  ;;  %v351_v9 = vmul.f32 0.12751743, %v319_v8  ;;  %v320_v10 = vld [vmem:[%s3593_s22 + $0x68] sm:$0xff]  ;;  %v321_v12 = vld [vmem:[%s3593_s22 + $0x70] sm:$0xff] }
  0x8d   : > { %v352_v11 = vmul.f32 0.12751743, %v320_v10  ;;  %v353_v13 = vmul.f32 0.12751743, %v321_v12  ;;  %v322_v14 = vld [vmem:[%s3593_s22 + $0x78] sm:$0xff]  ;;  %v324_v18 = vld [vmem:[%s3593_s22 + $0x88] sm:$0xff] }
  0x8e   : > { %v354_v15 = vmul.f32 0.12751743, %v322_v14  ;;  %v356_v19 = vmul.f32 0.12751743, %v324_v18  ;;  %v325_v20 = vld [vmem:[%s3593_s22 + $0x90] sm:$0xff]  ;;  %v327_v24 = vld [vmem:[%s3593_s22 + $0xa0] sm:$0xff] }
  0x8f   : > { %2758 = vmatpush3.bf16.xpose.msra.mxu0 %v2757_v21  ;;  %v357_v21 = vmul.f32 0.12751743, %v325_v20  ;;  %v359_v25 = vmul.f32 0.12751743, %v327_v24  ;;  %v328_v26 = vld [vmem:[%s3593_s22 + $0xa8] sm:$0xff]  ;;  %v330_v30 = vld [vmem:[%s3593_s22 + $0xb8] sm:$0xff] }
  0x90   : > { %2760 = vmatprep.subr.bf16.mxu0 %v2759_v22  ;;  %v326_v22 = vld [vmem:[%s3593_s22 + $0x98] sm:$0xff]  ;;  %v362_v31 = vmul.f32 0.12751743, %v330_v30  ;;  %v331_v32 = vld [vmem:[%s3593_s22 + $0xc0] sm:$0xff]  ;;  %v333_v36 = vld [vmem:[%s3593_s22 + $0xd0] sm:$0xff]  ;;  %v3350_v56 = vmov -inf  }
  0x91   : > { %v358_v23 = vmul.f32 0.12751743, %v326_v22  ;;  %v365_v37 = vmul.f32 0.12751743, %v333_v36  ;;  %v334_v38 = vld [vmem:[%s3593_s22 + $0xd8] sm:$0xff]  ;;  %v336_v42 = vld [vmem:[%s3593_s22 + $0xe8] sm:$0xff] }
  0x92   : > { %v368_v43 = vmul.f32 0.12751743, %v336_v42  ;;  %v337_v44 = vld [vmem:[%s3593_s22 + $0xf0] sm:$0xff]  ;;  %404 = vst.msk [vmem:[#allocation3] sm:$0xff] %vm403_vm1, %v3350_v56  ;;  %405 = vst.msk [vmem:[#allocation3 + $0x8] sm:$0xff] %vm403_vm1, %v3350_v56  ;;  %v3351_v12 = vmov 0  }
  0x93   : > { %406 = vst.msk [vmem:[#allocation3 + $0x10] sm:$0xff] %vm403_vm1, %v3350_v56  ;;  %407 = vst.msk [vmem:[#allocation3 + $0x18] sm:$0xff] %vm403_vm1, %v3350_v56  ;;  %2908 = vset.pattern.permute.xlu0 %v3351_v12  ;;  %2909 = vset.pattern.permute.xlu1 %v3351_v12  ;;  %v3352_v20 = vmov 0.0  }
  0x94   : > { %408 = vst.msk [vmem:[#allocation3 + $0x20] sm:$0xff] %vm403_vm1, %v3350_v56  ;;  %409 = vst.msk [vmem:[#allocation3 + $0x28] sm:$0xff] %vm403_vm1, %v3350_v56 }
  0x95   : > { %410 = vst.msk [vmem:[#allocation3 + $0x30] sm:$0xff] %vm403_vm1, %v3350_v56  ;;  %411 = vst.msk [vmem:[#allocation3 + $0x38] sm:$0xff] %vm403_vm1, %v3350_v56 }
  0x96   : > { %412 = vst.msk [vmem:[#allocation3 + $0x40] sm:$0xff] %vm403_vm1, %v3350_v56  ;;  %413 = vst.msk [vmem:[#allocation3 + $0x48] sm:$0xff] %vm403_vm1, %v3350_v56 }
  0x97   : > { %2762 = vmatpush3.bf16.xpose.msra.mxu0 %v2761_v27  ;;  %v360_v27 = vmul.f32 0.12751743, %v328_v26  ;;  %414 = vst.msk [vmem:[#allocation3 + $0x50] sm:$0xff] %vm403_vm1, %v3350_v56  ;;  %415 = vst.msk [vmem:[#allocation3 + $0x58] sm:$0xff] %vm403_vm1, %v3350_v56 }
  0x98   : > { %2764 = vmatprep.subr.bf16.mxu0 %v2763_v28  ;;  %v329_v28 = vld [vmem:[%s3593_s22 + $0xb0] sm:$0xff]  ;;  %416 = vst.msk [vmem:[#allocation3 + $0x60] sm:$0xff] %vm403_vm1, %v3350_v56  ;;  %417 = vst.msk [vmem:[#allocation3 + $0x68] sm:$0xff] %vm403_vm1, %v3350_v56 }
  0x99   : > { %v361_v29 = vmul.f32 0.12751743, %v329_v28  ;;  %418 = vst.msk [vmem:[#allocation3 + $0x70] sm:$0xff] %vm403_vm1, %v3350_v56  ;;  %419 = vst.msk [vmem:[#allocation3 + $0x78] sm:$0xff] %vm403_vm1, %v3350_v56 }
  0x9a   : > { %420 = vst.msk [vmem:[#allocation3 + $0x80] sm:$0xff] %vm403_vm1, %v3350_v56  ;;  %421 = vst.msk [vmem:[#allocation3 + $0x88] sm:$0xff] %vm403_vm1, %v3350_v56 }
  0x9b   : > { %422 = vst.msk [vmem:[#allocation3 + $0x90] sm:$0xff] %vm403_vm1, %v3350_v56  ;;  %423 = vst.msk [vmem:[#allocation3 + $0x98] sm:$0xff] %vm403_vm1, %v3350_v56 }
  0x9c   : > { %424 = vst.msk [vmem:[#allocation3 + $0xa0] sm:$0xff] %vm403_vm1, %v3350_v56  ;;  %425 = vst.msk [vmem:[#allocation3 + $0xa8] sm:$0xff] %vm403_vm1, %v3350_v56 }
  0x9d   : > { %426 = vst.msk [vmem:[#allocation3 + $0xb0] sm:$0xff] %vm403_vm1, %v3350_v56  ;;  %427 = vst.msk [vmem:[#allocation3 + $0xb8] sm:$0xff] %vm403_vm1, %v3350_v56 }
  0x9e   : > { %428 = vst.msk [vmem:[#allocation3 + $0xc0] sm:$0xff] %vm403_vm1, %v3350_v56  ;;  %429 = vst.msk [vmem:[#allocation3 + $0xc8] sm:$0xff] %vm403_vm1, %v3350_v56 }
  0x9f   : > { %2766 = vmatpush3.bf16.xpose.msra.mxu0 %v2765_v33  ;;  %v363_v33 = vmul.f32 0.12751743, %v331_v32  ;;  %430 = vst.msk [vmem:[#allocation3 + $0xd0] sm:$0xff] %vm403_vm1, %v3350_v56  ;;  %431 = vst.msk [vmem:[#allocation3 + $0xd8] sm:$0xff] %vm403_vm1, %v3350_v56 }
  0xa0   : > { %2768 = vmatprep.subr.bf16.mxu0 %v2767_v34  ;;  %v332_v34 = vld [vmem:[%s3593_s22 + $0xc8] sm:$0xff]  ;;  %432 = vst.msk [vmem:[#allocation3 + $0xe0] sm:$0xff] %vm403_vm1, %v3350_v56  ;;  %433 = vst.msk [vmem:[#allocation3 + $0xe8] sm:$0xff] %vm403_vm1, %v3350_v56 }
  0xa1   : > { %v364_v35 = vmul.f32 0.12751743, %v332_v34  ;;  %434 = vst.msk [vmem:[#allocation3 + $0xf0] sm:$0xff] %vm403_vm1, %v3350_v56  ;;  %435 = vst.msk [vmem:[#allocation3 + $0xf8] sm:$0xff] %vm403_vm1, %v3350_v56 }
  0xa2   : > { %437 = vst.msk [vmem:[#allocation4 + $0x8] sm:$0xff] %vm403_vm1, %v3352_v20  ;;  %436 = vst.msk [vmem:[#allocation4] sm:$0xff] %vm403_vm1, %v3352_v20 }
  0xa3   : > { %438 = vst.msk [vmem:[#allocation4 + $0x10] sm:$0xff] %vm403_vm1, %v3352_v20  ;;  %439 = vst.msk [vmem:[#allocation4 + $0x18] sm:$0xff] %vm403_vm1, %v3352_v20 }
  0xa4   : > { %440 = vst.msk [vmem:[#allocation4 + $0x20] sm:$0xff] %vm403_vm1, %v3352_v20  ;;  %441 = vst.msk [vmem:[#allocation4 + $0x28] sm:$0xff] %vm403_vm1, %v3352_v20 }
  0xa5   : > { %442 = vst.msk [vmem:[#allocation4 + $0x30] sm:$0xff] %vm403_vm1, %v3352_v20  ;;  %443 = vst.msk [vmem:[#allocation4 + $0x38] sm:$0xff] %vm403_vm1, %v3352_v20 }
  0xa6   : > { %444 = vst.msk [vmem:[#allocation4 + $0x40] sm:$0xff] %vm403_vm1, %v3352_v20  ;;  %445 = vst.msk [vmem:[#allocation4 + $0x48] sm:$0xff] %vm403_vm1, %v3352_v20 }
  0xa7   : > { %2770 = vmatpush3.bf16.xpose.msra.mxu0 %v2769_v39  ;;  %v366_v39 = vmul.f32 0.12751743, %v334_v38  ;;  %446 = vst.msk [vmem:[#allocation4 + $0x50] sm:$0xff] %vm403_vm1, %v3352_v20  ;;  %447 = vst.msk [vmem:[#allocation4 + $0x58] sm:$0xff] %vm403_vm1, %v3352_v20 }
  0xa8   : > { %2772 = vmatprep.subr.bf16.mxu0 %v2771_v40  ;;  %v335_v40 = vld [vmem:[%s3593_s22 + $0xe0] sm:$0xff]  ;;  %448 = vst.msk [vmem:[#allocation4 + $0x60] sm:$0xff] %vm403_vm1, %v3352_v20  ;;  %449 = vst.msk [vmem:[#allocation4 + $0x68] sm:$0xff] %vm403_vm1, %v3352_v20 }
  0xa9   : > { %v367_v41 = vmul.f32 0.12751743, %v335_v40  ;;  %450 = vst.msk [vmem:[#allocation4 + $0x70] sm:$0xff] %vm403_vm1, %v3352_v20  ;;  %451 = vst.msk [vmem:[#allocation4 + $0x78] sm:$0xff] %vm403_vm1, %v3352_v20 }
  0xaa   : > { %452 = vst.msk [vmem:[#allocation4 + $0x80] sm:$0xff] %vm403_vm1, %v3352_v20  ;;  %453 = vst.msk [vmem:[#allocation4 + $0x88] sm:$0xff] %vm403_vm1, %v3352_v20 }
  0xab   : > { %454 = vst.msk [vmem:[#allocation4 + $0x90] sm:$0xff] %vm403_vm1, %v3352_v20  ;;  %455 = vst.msk [vmem:[#allocation4 + $0x98] sm:$0xff] %vm403_vm1, %v3352_v20 }
  0xac   : > { %456 = vst.msk [vmem:[#allocation4 + $0xa0] sm:$0xff] %vm403_vm1, %v3352_v20  ;;  %457 = vst.msk [vmem:[#allocation4 + $0xa8] sm:$0xff] %vm403_vm1, %v3352_v20 }
  0xad   : > { %458 = vst.msk [vmem:[#allocation4 + $0xb0] sm:$0xff] %vm403_vm1, %v3352_v20  ;;  %459 = vst.msk [vmem:[#allocation4 + $0xb8] sm:$0xff] %vm403_vm1, %v3352_v20 }
  0xae   : > { %460 = vst.msk [vmem:[#allocation4 + $0xc0] sm:$0xff] %vm403_vm1, %v3352_v20  ;;  %461 = vst.msk [vmem:[#allocation4 + $0xc8] sm:$0xff] %vm403_vm1, %v3352_v20 }
  0xaf   : > { %2774 = vmatpush3.bf16.xpose.msra.mxu0 %v2773_v45  ;;  %v369_v45 = vmul.f32 0.12751743, %v337_v44  ;;  %462 = vst.msk [vmem:[#allocation4 + $0xd0] sm:$0xff] %vm403_vm1, %v3352_v20  ;;  %463 = vst.msk [vmem:[#allocation4 + $0xd8] sm:$0xff] %vm403_vm1, %v3352_v20 }
  0xb0   : > { %2776 = vmatprep.subr.bf16.mxu0 %v2775_v46  ;;  %v338_v46 = vld [vmem:[%s3593_s22 + $0xf8] sm:$0xff]  ;;  %464 = vst.msk [vmem:[#allocation4 + $0xe0] sm:$0xff] %vm403_vm1, %v3352_v20  ;;  %465 = vst.msk [vmem:[#allocation4 + $0xe8] sm:$0xff] %vm403_vm1, %v3352_v20 }
  0xb1   : > { %v370_v47 = vmul.f32 0.12751743, %v338_v46  ;;  %466 = vst.msk [vmem:[#allocation4 + $0xf0] sm:$0xff] %vm403_vm1, %v3352_v20  ;;  %467 = vst.msk [vmem:[#allocation4 + $0xf8] sm:$0xff] %vm403_vm1, %v3352_v20 }
  0xb7   : > { %2778 = vmatpush3.bf16.xpose.msra.mxu0 %v2777_v49  ;;  %v598_v49 = vand.u32 127, %v597_v48 }
  0xb9   : > { %v599_v50 = vadd.s32 128, %v598_v49 }
  0xbb   : > { %vm604_vm0 = vcmp.lt.s32.totalorder %v599_v50, 200 }
  0xbe   : > { %2684 = vmatmul.mubr.f32.vlgmr.msra.gmra.mrb[0].mxu0 %v339_v16  ;;  %v323_v16 = vld [vmem:[%s3593_s22 + $0x80] sm:$0xff] }
  0xbf   : > { %2685 = vmatprep.mubr.f32.mxu0 %v340_v51  ;;  %v355_v17 = vmul.f32 0.12751743, %v323_v16 }
  0xc2   : > { %2686 = vmatmul.mubr.f32.gmra.mrb[2].mxu0 %v340_v51  ;;  %v3349_v51 = vmov -1e+30  }
  0xc3   : > { %2687 = vmatprep.mubr.f32.mxu0 %v341_v53  ;;  %v3671_v52 = vsel %vm604_vm0, 0.0, %v3349_v51 }
  0xc6   : > { %2688 = vmatmul.mubr.f32.gmra.mrb[4].mxu0 %v341_v53 }
  0xc7   : > { %2689 = vmatprep.mubr.f32.mxu0 %v342_v55 }
  0xca   : > { %2690 = vmatmul.mubr.f32.gmra.mrb[6].mxu0 %v342_v55 }
  0xcb   : > { %2691 = vmatprep.mubr.f32.mxu0 %v343_v57 }
  0xce   : > { %2692 = vmatmul.mubr.f32.gmra.mrb[8].mxu0 %v343_v57 }
  0xcf   : > { %2693 = vmatprep.mubr.f32.mxu0 %v344_v59 }
  0xd2   : > { %2694 = vmatmul.mubr.f32.gmra.mrb[10].mxu0 %v344_v59 }
  0xd3   : > { %2695 = vmatprep.mubr.f32.mxu0 %v345_v61 }
  0xd6   : > { %2696 = vmatmul.mubr.f32.gmra.mrb[12].mxu0 %v345_v61 }
  0xd7   : > { %2697 = vmatprep.mubr.f32.mxu0 %v346_v63 }
  0xda   : > { %2698 = vmatmul.mubr.f32.gmra.mrb[14].mxu0 %v346_v63 }
  0xdb   : > { %2699 = vmatprep.mubr.f32.mxu0 %v347_v1 }
  0xde   : > { %2700 = vmatmul.mubr.f32.gmra.mrb[16].mxu0 %v347_v1 }
  0xdf   : > { %2701 = vmatprep.mubr.f32.mxu0 %v348_v3 }
  0xe2   : > { %2702 = vmatmul.mubr.f32.gmra.mrb[18].mxu0 %v348_v3 }
  0xe3   : > { %2703 = vmatprep.mubr.f32.mxu0 %v349_v5 }
  0xe6   : > { %2704 = vmatmul.mubr.f32.gmra.mrb[20].mxu0 %v349_v5 }
  0xe7   : > { %2705 = vmatprep.mubr.f32.mxu0 %v350_v7 }
  0xea   : > { %2706 = vmatmul.mubr.f32.gmra.mrb[22].mxu0 %v350_v7 }
  0xeb   : > { %2707 = vmatprep.mubr.f32.mxu0 %v351_v9 }
  0xee   : > { %2708 = vmatmul.mubr.f32.gmra.mrb[24].mxu0 %v351_v9 }
  0xef   : > { %2709 = vmatprep.mubr.f32.mxu0 %v352_v11 }
  0xf2   : > { %2710 = vmatmul.mubr.f32.gmra.mrb[26].mxu0 %v352_v11 }
  0xf3   : > { %2711 = vmatprep.mubr.f32.mxu0 %v353_v13 }
  0xf6   : > { %2712 = vmatmul.mubr.f32.gmra.mrb[28].mxu0 %v353_v13 }
  0xf7   : > { %2713 = vmatprep.mubr.f32.mxu0 %v354_v15 }
  0xfa   : > { %2714 = vmatmul.mubr.f32.gmra.mrb[30].mxu0 %v354_v15 }
  0xfb   : > { %2715 = vmatprep.mubr.f32.mxu0 %v355_v17 }
  0xfe   : > { %2716 = vmatmul.mubr.f32.gmra.mrb[32].mxu0 %v355_v17 }
  0xff   : > { %2717 = vmatprep.mubr.f32.mxu0 %v356_v19 }
 0x102   : > { %2718 = vmatmul.mubr.f32.gmra.mrb[34].mxu0 %v356_v19 }
 0x103   : > { %2719 = vmatprep.mubr.f32.mxu0 %v357_v21 }
 0x106   : > { %2720 = vmatmul.mubr.f32.gmra.mrb[36].mxu0 %v357_v21 }
 0x107   : > { %2721 = vmatprep.mubr.f32.mxu0 %v358_v23 }
 0x10a   : > { %2722 = vmatmul.mubr.f32.gmra.mrb[38].mxu0 %v358_v23 }
 0x10b   : > { %2723 = vmatprep.mubr.f32.mxu0 %v359_v25 }
 0x10e   : > { %2724 = vmatmul.mubr.f32.gmra.mrb[40].mxu0 %v359_v25 }
 0x10f   : > { %2725 = vmatprep.mubr.f32.mxu0 %v360_v27 }
 0x112   : > { %2726 = vmatmul.mubr.f32.gmra.mrb[42].mxu0 %v360_v27 }
 0x113   : > { %2727 = vmatprep.mubr.f32.mxu0 %v361_v29 }
 0x116   : > { %2728 = vmatmul.mubr.f32.gmra.mrb[44].mxu0 %v361_v29 }
 0x117   : > { %2729 = vmatprep.mubr.f32.mxu0 %v362_v31 }
 0x11a   : > { %2730 = vmatmul.mubr.f32.gmra.mrb[46].mxu0 %v362_v31 }
 0x11b   : > { %2731 = vmatprep.mubr.f32.mxu0 %v363_v33 }
 0x11e   : > { %2732 = vmatmul.mubr.f32.gmra.mrb[48].mxu0 %v363_v33 }
 0x11f   : > { %2733 = vmatprep.mubr.f32.mxu0 %v364_v35 }
 0x122   : > { %2734 = vmatmul.mubr.f32.gmra.mrb[50].mxu0 %v364_v35 }
 0x123   : > { %2735 = vmatprep.mubr.f32.mxu0 %v365_v37 }
 0x126   : > { %2736 = vmatmul.mubr.f32.gmra.mrb[52].mxu0 %v365_v37 }
 0x127   : > { %2737 = vmatprep.mubr.f32.mxu0 %v366_v39 }
 0x12a   : > { %2738 = vmatmul.mubr.f32.gmra.mrb[54].mxu0 %v366_v39 }
 0x12b   : > { %2739 = vmatprep.mubr.f32.mxu0 %v367_v41 }
 0x12e   : > { %2740 = vmatmul.mubr.f32.gmra.mrb[56].mxu0 %v367_v41 }
 0x12f   : > { %2741 = vmatprep.mubr.f32.mxu0 %v368_v43 }
 0x132   : > { %2742 = vmatmul.mubr.f32.gmra.mrb[58].mxu0 %v368_v43 }
 0x133   : > { %2743 = vmatprep.mubr.f32.mxu0 %v369_v45 }
 0x136   : > { %2744 = vmatmul.mubr.f32.gmra.mrb[60].mxu0 %v369_v45 }
 0x137   : > { %2745 = vmatprep.mubr.f32.mxu0 %v370_v47 }
 0x13a   : > { %2746 = vmatmul.mubr.f32.gmra.mrb[62].mxu0 %v370_v47 }
 0x191   : > { %v3673_v53 = vpop.f32.mrb[0].mxu0 }
 0x192   : > { %v675_v54 = vpop.f32.mrb[1].mxu0 }
 0x193   : > { %v3676_v55 = vadd.f32 %v675_v54, %v3671_v52 }
 0x195   : > { %v3710_v57 = vpop.f32.mrb[2].mxu0  ;;  %v896_v58 = vmax.f32 %v3673_v53, %v3676_v55 }
 0x196   : > { %v681_v59 = vpop.f32.mrb[3].mxu0 }
 0x197   : > { %v3715_v60 = vadd.f32 %v681_v59, %v3671_v52  ;;  %897 = vmax.xlane.f32.xlu0 %v896_v58 }
 0x199   : > { %v3717_v61 = vpop.f32.mrb[4].mxu0  ;;  %v899_v62 = vmax.f32 %v3710_v57, %v3715_v60 }
 0x19a   : > { %v687_v63 = vpop.f32.mrb[5].mxu0 }
 0x19b   : > { %v3722_v0 = vadd.f32 %v687_v63, %v3671_v52  ;;  %900 = vmax.xlane.f32.xlu0 %v899_v62 }
 0x19d   : > { %v3724_v1 = vpop.f32.mrb[6].mxu0  ;;  %v902_v2 = vmax.f32 %v3717_v61, %v3722_v0 }
 0x19e   : > { %v693_v3 = vpop.f32.mrb[7].mxu0 }
 0x19f   : > { %v3729_v4 = vadd.f32 %v693_v3, %v3671_v52  ;;  %903 = vmax.xlane.f32.xlu1 %v902_v2 }
 0x1a1   : > { %v3731_v5 = vpop.f32.mrb[8].mxu0  ;;  %v905_v6 = vmax.f32 %v3724_v1, %v3729_v4 }
 0x1a2   : > { %v699_v7 = vpop.f32.mrb[9].mxu0 }
 0x1a3   : > { %v3736_v8 = vadd.f32 %v699_v7, %v3671_v52  ;;  %906 = vmax.xlane.f32.xlu1 %v905_v6 }
 0x1a5   : > { %v3738_v9 = vpop.f32.mrb[10].mxu0  ;;  %v908_v10 = vmax.f32 %v3731_v5, %v3736_v8 }
 0x1a6   : > { %v705_v11 = vpop.f32.mrb[11].mxu0 }
 0x1a7   : > { %v3743_v13 = vadd.f32 %v705_v11, %v3671_v52  ;;  %909 = vmax.xlane.f32.xlu0 %v908_v10 }
 0x1a9   : > { %v3745_v14 = vpop.f32.mrb[12].mxu0  ;;  %v911_v15 = vmax.f32 %v3738_v9, %v3743_v13 }
 0x1aa   : > { %5172 = vst [vmem:[#allocation19_spill] sm:$0xff] %v3745_v14  ;;  %v711_v16 = vpop.f32.mrb[13].mxu0 }
 0x1ab   : > { %v3750_v17 = vadd.f32 %v711_v16, %v3671_v52  ;;  %912 = vmax.xlane.f32.xlu1 %v911_v15 }
 0x1ad   : > { %5173 = vst [vmem:[#allocation20_spill] sm:$0xff] %v3750_v17  ;;  %v3752_v18 = vpop.f32.mrb[14].mxu0  ;;  %v914_v19 = vmax.f32 %v3745_v14, %v3750_v17  ;;  %v4247_v14 = vld [vmem:[#allocation3 + $0xc0] sm:$0xff] }
 0x1ae   : > { %5174 = vst [vmem:[#allocation21_spill] sm:$0xff] %v3752_v18  ;;  %v717_v21 = vpop.f32.mrb[15].mxu0  ;;  %5228 = vst [vmem:[#allocation75_spill] sm:$0xff] %v4247_v14 }
 0x1af   : > { %v3789_v22 = vadd.f32 %v717_v21, %v3671_v52  ;;  %915 = vmax.xlane.f32.xlu0 %v914_v19 }
 0x1b1   : > { %5175 = vst [vmem:[#allocation22_spill] sm:$0xff] %v3789_v22  ;;  %v3791_v23 = vpop.f32.mrb[16].mxu0  ;;  %v917_v24 = vmax.f32 %v3752_v18, %v3789_v22  ;;  %v4237_v18 = vld [vmem:[#allocation3 + $0xb8] sm:$0xff] }
 0x1b2   : > { %5176 = vst [vmem:[#allocation23_spill] sm:$0xff] %v3791_v23  ;;  %v723_v25 = vpop.f32.mrb[17].mxu0  ;;  %5227 = vst [vmem:[#allocation74_spill] sm:$0xff] %v4237_v18 }
 0x1b3   : > { %v3796_v26 = vadd.f32 %v723_v25, %v3671_v52  ;;  %918 = vmax.xlane.f32.xlu1 %v917_v24 }
 0x1b5   : > { %5177 = vst [vmem:[#allocation24_spill] sm:$0xff] %v3796_v26  ;;  %v3798_v27 = vpop.f32.mrb[18].mxu0  ;;  %v920_v28 = vmax.f32 %v3791_v23, %v3796_v26  ;;  %v4227_v23 = vld [vmem:[#allocation3 + $0xb0] sm:$0xff] }
 0x1b6   : > { %5178 = vst [vmem:[#allocation25_spill] sm:$0xff] %v3798_v27  ;;  %v729_v29 = vpop.f32.mrb[19].mxu0  ;;  %5225 = vst [vmem:[#allocation72_spill] sm:$0xff] %v4227_v23 }
 0x1b7   : > { %v3803_v30 = vadd.f32 %v729_v29, %v3671_v52  ;;  %921 = vmax.xlane.f32.xlu0 %v920_v28 }
 0x1b9   : > { %5179 = vst [vmem:[#allocation26_spill] sm:$0xff] %v3803_v30  ;;  %v3805_v31 = vpop.f32.mrb[20].mxu0  ;;  %v923_v32 = vmax.f32 %v3798_v27, %v3803_v30  ;;  %v4217_v27 = vld [vmem:[#allocation3 + $0xa8] sm:$0xff] }
 0x1ba   : > { %5180 = vst [vmem:[#allocation27_spill] sm:$0xff] %v3805_v31  ;;  %v735_v33 = vpop.f32.mrb[21].mxu0 }
 0x1bb   : > { %v3810_v34 = vadd.f32 %v735_v33, %v3671_v52  ;;  %924 = vmax.xlane.f32.xlu1 %v923_v32 }
 0x1bd   : > { %5181 = vst [vmem:[#allocation28_spill] sm:$0xff] %v3810_v34  ;;  %v3812_v35 = vpop.f32.mrb[22].mxu0  ;;  %v926_v36 = vmax.f32 %v3805_v31, %v3810_v34  ;;  %v4207_v31 = vld [vmem:[#allocation3 + $0xa0] sm:$0xff] }
 0x1be   : > { %5182 = vst [vmem:[#allocation29_spill] sm:$0xff] %v3812_v35  ;;  %v741_v37 = vpop.f32.mrb[23].mxu0 }
 0x1bf   : > { %v3817_v38 = vadd.f32 %v741_v37, %v3671_v52  ;;  %927 = vmax.xlane.f32.xlu0 %v926_v36 }
 0x1c1   : > { %5183 = vst [vmem:[#allocation30_spill] sm:$0xff] %v3817_v38  ;;  %v3819_v39 = vpop.f32.mrb[24].mxu0  ;;  %v929_v40 = vmax.f32 %v3812_v35, %v3817_v38  ;;  %v4197_v35 = vld [vmem:[#allocation3 + $0x98] sm:$0xff] }
 0x1c2   : > { %5184 = vst [vmem:[#allocation31_spill] sm:$0xff] %v3819_v39  ;;  %v747_v41 = vpop.f32.mrb[25].mxu0 }
 0x1c3   : > { %v3824_v42 = vadd.f32 %v747_v41, %v3671_v52  ;;  %930 = vmax.xlane.f32.xlu1 %v929_v40 }
 0x1c5   : > { %5185 = vst [vmem:[#allocation32_spill] sm:$0xff] %v3824_v42  ;;  %v3826_v43 = vpop.f32.mrb[26].mxu0  ;;  %v932_v44 = vmax.f32 %v3819_v39, %v3824_v42  ;;  %v4187_v39 = vld [vmem:[#allocation3 + $0x90] sm:$0xff] }
 0x1c6   : > { %5186 = vst [vmem:[#allocation33_spill] sm:$0xff] %v3826_v43  ;;  %v753_v45 = vpop.f32.mrb[27].mxu0 }
 0x1c7   : > { %v3831_v46 = vadd.f32 %v753_v45, %v3671_v52  ;;  %933 = vmax.xlane.f32.xlu0 %v932_v44 }
 0x1c9   : > { %5187 = vst [vmem:[#allocation34_spill] sm:$0xff] %v3831_v46  ;;  %v3833_v47 = vpop.f32.mrb[28].mxu0  ;;  %v935_v48 = vmax.f32 %v3826_v43, %v3831_v46  ;;  %v4177_v43 = vld [vmem:[#allocation3 + $0x88] sm:$0xff] }
 0x1ca   : > { %5188 = vst [vmem:[#allocation35_spill] sm:$0xff] %v3833_v47  ;;  %v759_v49 = vpop.f32.mrb[29].mxu0 }
 0x1cb   : > { %v3838_v50 = vadd.f32 %v759_v49, %v3671_v52  ;;  %936 = vmax.xlane.f32.xlu1 %v935_v48 }
 0x1cd   : > { %5189 = vst [vmem:[#allocation36_spill] sm:$0xff] %v3838_v50  ;;  %v3840_v51 = vpop.f32.mrb[30].mxu0  ;;  %v938_v54 = vmax.f32 %v3833_v47, %v3838_v50  ;;  %v4167_v47 = vld [vmem:[#allocation3 + $0x80] sm:$0xff] }
 0x1ce   : > { %5190 = vst [vmem:[#allocation37_spill] sm:$0xff] %v3840_v51  ;;  %v765_v56 = vpop.f32.mrb[31].mxu0 }
 0x1cf   : > { %v3845_v58 = vadd.f32 %v765_v56, %v3671_v52  ;;  %939 = vmax.xlane.f32.xlu0 %v938_v54 }
 0x1d1   : > { %5191 = vst [vmem:[#allocation38_spill] sm:$0xff] %v3845_v58  ;;  %v3847_v59 = vpop.f32.mrb[32].mxu0  ;;  %v941_v62 = vmax.f32 %v3840_v51, %v3845_v58  ;;  %v4157_v51 = vld [vmem:[#allocation3 + $0x78] sm:$0xff] }
 0x1d2   : > { %5192 = vst [vmem:[#allocation39_spill] sm:$0xff] %v3847_v59  ;;  %v771_v63 = vpop.f32.mrb[33].mxu0 }
 0x1d3   : > { %v3852_v2 = vadd.f32 %v771_v63, %v3671_v52  ;;  %942 = vmax.xlane.f32.xlu1 %v941_v62 }
 0x1d5   : > { %5193 = vst [vmem:[#allocation40_spill] sm:$0xff] %v3852_v2  ;;  %v3854_v3 = vpop.f32.mrb[34].mxu0  ;;  %v944_v6 = vmax.f32 %v3847_v59, %v3852_v2  ;;  %v4147_v59 = vld [vmem:[#allocation3 + $0x70] sm:$0xff] }
 0x1d6   : > { %5194 = vst [vmem:[#allocation41_spill] sm:$0xff] %v3854_v3  ;;  %v777_v7 = vpop.f32.mrb[35].mxu0 }
 0x1d7   : > { %v3859_v10 = vadd.f32 %v777_v7, %v3671_v52  ;;  %945 = vmax.xlane.f32.xlu0 %v944_v6 }
 0x1d9   : > { %5195 = vst [vmem:[#allocation42_spill] sm:$0xff] %v3859_v10  ;;  %v3861_v11 = vpop.f32.mrb[36].mxu0  ;;  %v947_v12 = vmax.f32 %v3854_v3, %v3859_v10  ;;  %v4137_v3 = vld [vmem:[#allocation3 + $0x68] sm:$0xff] }
 0x1da   : > { %5196 = vst [vmem:[#allocation43_spill] sm:$0xff] %v3861_v11  ;;  %v783_v15 = vpop.f32.mrb[37].mxu0 }
 0x1db   : > { %v3866_v16 = vadd.f32 %v783_v15, %v3671_v52  ;;  %948 = vmax.xlane.f32.xlu1 %v947_v12  ;;  %v564_v15 = vld [vmem:[%s3911_s18] sm:$0xff] }
 0x1dd   : > { %5197 = vst [vmem:[#allocation44_spill] sm:$0xff] %v3866_v16  ;;  %v3868_v19 = vpop.f32.mrb[38].mxu0  ;;  %v950_v20 = vmax.f32 %v3861_v11, %v3866_v16  ;;  %v4127_v11 = vld [vmem:[#allocation3 + $0x60] sm:$0xff] }
 0x1de   : > { %5198 = vst [vmem:[#allocation45_spill] sm:$0xff] %v3868_v19  ;;  %v789_v21 = vpop.f32.mrb[39].mxu0 }
 0x1df   : > { %v3873_v24 = vadd.f32 %v789_v21, %v3671_v52  ;;  %951 = vmax.xlane.f32.xlu0 %v950_v20  ;;  %v565_v20 = vld [vmem:[%s3911_s18 + $0x8] sm:$0xff] }
 0x1e0   : > { %v2780_v21 = vpack.c.bf16 %v565_v20, %v564_v15 }
 0x1e1   : > { %5199 = vst [vmem:[#allocation46_spill] sm:$0xff] %v3873_v24  ;;  %v3875_v25 = vpop.f32.mrb[40].mxu0  ;;  %v953_v28 = vmax.f32 %v3868_v19, %v3873_v24  ;;  %v4117_v19 = vld [vmem:[#allocation3 + $0x58] sm:$0xff] }
 0x1e2   : > { %5200 = vst [vmem:[#allocation47_spill] sm:$0xff] %v3875_v25  ;;  %v795_v29 = vpop.f32.mrb[41].mxu0 }
 0x1e3   : > { %v3880_v32 = vadd.f32 %v795_v29, %v3671_v52  ;;  %954 = vmax.xlane.f32.xlu1 %v953_v28 }
 0x1e5   : > { %5201 = vst [vmem:[#allocation48_spill] sm:$0xff] %v3880_v32  ;;  %v3882_v33 = vpop.f32.mrb[42].mxu0  ;;  %v956_v36 = vmax.f32 %v3875_v25, %v3880_v32  ;;  %v4107_v25 = vld [vmem:[#allocation3 + $0x50] sm:$0xff] }
 0x1e6   : > { %5202 = vst [vmem:[#allocation49_spill] sm:$0xff] %v3882_v33  ;;  %v801_v37 = vpop.f32.mrb[43].mxu0 }
 0x1e7   : > { %v3887_v40 = vadd.f32 %v801_v37, %v3671_v52  ;;  %957 = vmax.xlane.f32.xlu0 %v956_v36  ;;  %v3353_v36 = vmov 0.0|0.0  }
 0x1e8   : > { %2779 = vmatprep.subr.bf16.mxu1 %v3353_v36 }
 0x1e9   : > { %5203 = vst [vmem:[#allocation50_spill] sm:$0xff] %v3887_v40  ;;  %v3889_v41 = vpop.f32.mrb[44].mxu0  ;;  %v959_v44 = vmax.f32 %v3882_v33, %v3887_v40  ;;  %2781 = vmatpush1.bf16.msra.mxu1 %v2780_v21  ;;  %v568_v21 = vld [vmem:[%s3911_s18 + $0x20] sm:$0xff]  ;;  %v4097_v33 = vld [vmem:[#allocation3 + $0x48] sm:$0xff] }
 0x1ea   : > { %5204 = vst [vmem:[#allocation51_spill] sm:$0xff] %v3889_v41  ;;  %v807_v45 = vpop.f32.mrb[45].mxu0  ;;  %2782 = vmatprep.subr.bf16.mxu1 %v3353_v36 }
 0x1eb   : > { %v3894_v48 = vadd.f32 %v807_v45, %v3671_v52  ;;  %960 = vmax.xlane.f32.xlu1 %v959_v44  ;;  %v566_v45 = vld [vmem:[%s3911_s18 + $0x10] sm:$0xff] }
 0x1ed   : > { %5205 = vst [vmem:[#allocation52_spill] sm:$0xff] %v3894_v48  ;;  %v3896_v49 = vpop.f32.mrb[46].mxu0  ;;  %v962_v54 = vmax.f32 %v3889_v41, %v3894_v48  ;;  %v4087_v41 = vld [vmem:[#allocation3 + $0x40] sm:$0xff] }
 0x1ee   : > { %5206 = vst [vmem:[#allocation53_spill] sm:$0xff] %v3896_v49  ;;  %v813_v56 = vpop.f32.mrb[47].mxu0 }
 0x1ef   : > { %v3901_v62 = vadd.f32 %v813_v56, %v3671_v52  ;;  %963 = vmax.xlane.f32.xlu0 %v962_v54  ;;  %v567_v54 = vld [vmem:[%s3911_s18 + $0x18] sm:$0xff] }
 0x1f0   : > { %v2783_v56 = vpack.c.bf16 %v567_v54, %v566_v45 }
 0x1f1   : > { %5207 = vst [vmem:[#allocation54_spill] sm:$0xff] %v3901_v62  ;;  %v3903_v63 = vpop.f32.mrb[48].mxu0  ;;  %v965_v6 = vmax.f32 %v3896_v49, %v3901_v62  ;;  %v4057_v62 = vld [vmem:[#allocation3 + $0x28] sm:$0xff]  ;;  %v4077_v49 = vld [vmem:[#allocation3 + $0x38] sm:$0xff] }
 0x1f2   : > { %5208 = vst [vmem:[#allocation55_spill] sm:$0xff] %v3903_v63  ;;  %v819_v7 = vpop.f32.mrb[49].mxu0  ;;  %2784 = vmatpush1.bf16.msra.mxu1 %v2783_v56 }
 0x1f3   : > { %v3908_v12 = vadd.f32 %v819_v7, %v3671_v52  ;;  %966 = vmax.xlane.f32.xlu1 %v965_v6  ;;  %2785 = vmatprep.subr.bf16.mxu1 %v3353_v36 }
 0x1f5   : > { %5209 = vst [vmem:[#allocation56_spill] sm:$0xff] %v3908_v12  ;;  %v3915_v28 = vpop.f32.mrb[50].mxu0  ;;  %v968_v29 = vmax.f32 %v3903_v63, %v3908_v12  ;;  %v595_v63 = vld [vmem:[%s3911_s18 + $0xf8] sm:$0xff] }
 0x1f6   : > { %5210 = vst [vmem:[#allocation57_spill] sm:$0xff] %v3915_v28  ;;  %v825_v37 = vpop.f32.mrb[51].mxu0 }
 0x1f7   : > { %v3921_v44 = vadd.f32 %v825_v37, %v3671_v52  ;;  %969 = vmax.xlane.f32.xlu0 %v968_v29  ;;  %v569_v29 = vld [vmem:[%s3911_s18 + $0x28] sm:$0xff] }
 0x1f8   : > { %v2786_v37 = vpack.c.bf16 %v569_v29, %v568_v21 }
 0x1f9   : > { %5211 = vst [vmem:[#allocation58_spill] sm:$0xff] %v3921_v44  ;;  %v3926_v6 = vpop.f32.mrb[52].mxu0  ;;  %v971_v7 = vmax.f32 %v3915_v28, %v3921_v44 }
 0x1fa   : > { %5212 = vst [vmem:[#allocation59_spill] sm:$0xff] %v3926_v6  ;;  %v831_v15 = vpop.f32.mrb[53].mxu0  ;;  %2787 = vmatpush1.bf16.msra.mxu1 %v2786_v37 }
 0x1fb   : > { %v3931_v20 = vadd.f32 %v831_v15, %v3671_v52  ;;  %972 = vmax.xlane.f32.xlu1 %v971_v7  ;;  %2788 = vmatprep.subr.bf16.mxu1 %v3353_v36  ;;  %v570_v7 = vld [vmem:[%s3911_s18 + $0x30] sm:$0xff]  ;;  %v571_v15 = vld [vmem:[%s3911_s18 + $0x38] sm:$0xff] }
 0x1fc   : > { %v2789_v44 = vpack.c.bf16 %v571_v15, %v570_v7 }
 0x1fd   : > { %5213 = vst [vmem:[#allocation60_spill] sm:$0xff] %v3931_v20  ;;  %v3936_v12 = vpop.f32.mrb[54].mxu0  ;;  %v974_v45 = vmax.f32 %v3926_v6, %v3931_v20 }
 0x1fe   : > { %5214 = vst [vmem:[#allocation61_spill] sm:$0xff] %v3936_v12  ;;  %v837_v54 = vpop.f32.mrb[55].mxu0  ;;  %2790 = vmatpush1.bf16.msra.mxu1 %v2789_v44 }
 0x1ff   : > { %v3941_v56 = vadd.f32 %v837_v54, %v3671_v52  ;;  %975 = vmax.xlane.f32.xlu0 %v974_v45  ;;  %2791 = vmatprep.subr.bf16.mxu1 %v3353_v36  ;;  %v572_v45 = vld [vmem:[%s3911_s18 + $0x40] sm:$0xff]  ;;  %v573_v54 = vld [vmem:[%s3911_s18 + $0x48] sm:$0xff] }
 0x200   : > { %v2792_v20 = vpack.c.bf16 %v573_v54, %v572_v45 }
 0x201   : > { %5215 = vst [vmem:[#allocation62_spill] sm:$0xff] %v3941_v56  ;;  %v3946_v28 = vpop.f32.mrb[56].mxu0  ;;  %v977_v21 = vmax.f32 %v3936_v12, %v3941_v56 }
 0x202   : > { %5216 = vst [vmem:[#allocation63_spill] sm:$0xff] %v3946_v28  ;;  %v843_v29 = vpop.f32.mrb[57].mxu0  ;;  %2793 = vmatpush1.bf16.msra.mxu1 %v2792_v20 }
 0x203   : > { %v3951_v37 = vadd.f32 %v843_v29, %v3671_v52  ;;  %978 = vmax.xlane.f32.xlu1 %v977_v21  ;;  %2794 = vmatprep.subr.bf16.mxu1 %v3353_v36  ;;  %v574_v21 = vld [vmem:[%s3911_s18 + $0x50] sm:$0xff]  ;;  %v575_v29 = vld [vmem:[%s3911_s18 + $0x58] sm:$0xff] }
 0x204   : > { %v2795_v56 = vpack.c.bf16 %v575_v29, %v574_v21 }
 0x205   : > { %5217 = vst [vmem:[#allocation64_spill] sm:$0xff] %v3951_v37  ;;  %v3956_v6 = vpop.f32.mrb[58].mxu0  ;;  %v980_v7 = vmax.f32 %v3946_v28, %v3951_v37  ;;  %v594_v28 = vld [vmem:[%s3911_s18 + $0xf0] sm:$0xff] }
 0x206   : > { %5218 = vst [vmem:[#allocation65_spill] sm:$0xff] %v3956_v6  ;;  %v849_v15 = vpop.f32.mrb[59].mxu0  ;;  %2796 = vmatpush1.bf16.msra.mxu1 %v2795_v56 }
 0x207   : > { %v3961_v44 = vadd.f32 %v849_v15, %v3671_v52  ;;  %981 = vmax.xlane.f32.xlu0 %v980_v7  ;;  %2797 = vmatprep.subr.bf16.mxu1 %v3353_v36  ;;  %v576_v7 = vld [vmem:[%s3911_s18 + $0x60] sm:$0xff]  ;;  %v577_v15 = vld [vmem:[%s3911_s18 + $0x68] sm:$0xff] }
 0x208   : > { %v2798_v37 = vpack.c.bf16 %v577_v15, %v576_v7 }
 0x209   : > { %5219 = vst [vmem:[#allocation66_spill] sm:$0xff] %v3961_v44  ;;  %v3966_v12 = vpop.f32.mrb[60].mxu0  ;;  %v983_v45 = vmax.f32 %v3956_v6, %v3961_v44  ;;  %v4034_v6 = vld [vmem:[#allocation3 + $0x18] sm:$0xff] }
 0x20a   : > { %5220 = vst [vmem:[#allocation67_spill] sm:$0xff] %v3966_v12  ;;  %v855_v54 = vpop.f32.mrb[61].mxu0  ;;  %2799 = vmatpush1.bf16.msra.mxu1 %v2798_v37  ;;  %v580_v37 = vld [vmem:[%s3911_s18 + $0x80] sm:$0xff] }
 0x20b   : > { %v3971_v20 = vadd.f32 %v855_v54, %v3671_v52  ;;  %984 = vmax.xlane.f32.xlu1 %v983_v45  ;;  %2800 = vmatprep.subr.bf16.mxu1 %v3353_v36  ;;  %v578_v45 = vld [vmem:[%s3911_s18 + $0x70] sm:$0xff]  ;;  %v579_v54 = vld [vmem:[%s3911_s18 + $0x78] sm:$0xff] }
 0x20c   : > { %v2801_v7 = vpack.c.bf16 %v579_v54, %v578_v45  ;;  %v584_v54 = vld [vmem:[%s3911_s18 + $0xa0] sm:$0xff] }
 0x20d   : > { %5221 = vst [vmem:[#allocation68_spill] sm:$0xff] %v3971_v20  ;;  %v3976_v21 = vpop.f32.mrb[62].mxu0  ;;  %v986_v29 = vmax.f32 %v3966_v12, %v3971_v20  ;;  %v583_v20 = vld [vmem:[%s3911_s18 + $0x98] sm:$0xff] }
 0x20e   : > { %5222 = vst [vmem:[#allocation69_spill] sm:$0xff] %v3976_v21  ;;  %v861_v44 = vpop.f32.mrb[63].mxu0  ;;  %2802 = vmatpush1.bf16.msra.mxu1 %v2801_v7  ;;  %v585_v7 = vld [vmem:[%s3911_s18 + $0xa8] sm:$0xff] }
 0x20f   : > { %v3981_v56 = vadd.f32 %v861_v44, %v3671_v52  ;;  %987 = vmax.xlane.f32.xlu0 %v986_v29  ;;  %2803 = vmatprep.subr.bf16.mxu1 %v3353_v36  ;;  %v581_v52 = vld [vmem:[%s3911_s18 + $0x88] sm:$0xff]  ;;  %v582_v29 = vld [vmem:[%s3911_s18 + $0x90] sm:$0xff] }
 0x210   : > { %v2804_v44 = vpack.c.bf16 %v581_v52, %v580_v37  ;;  %v2807_v45 = vpack.c.bf16 %v583_v20, %v582_v29  ;;  %v4000_v52 = vld [vmem:[#allocation3] sm:$0xff] }
 0x211   : > { %5223 = vst [vmem:[#allocation70_spill] sm:$0xff] %v3981_v56  ;;  %v989_v15 = vmax.f32 %v3976_v21, %v3981_v56  ;;  %v586_v56 = vld [vmem:[%s3911_s18 + $0xb0] sm:$0xff]  ;;  %v587_v21 = vld [vmem:[%s3911_s18 + $0xb8] sm:$0xff]  ;;  %v588_v20 = vld [vmem:[%s3911_s18 + $0xc0] sm:$0xff] }
 0x212   : > { %2805 = vmatpush1.bf16.msra.mxu1 %v2804_v44  ;;  %v2813_v37 = vpack.c.bf16 %v587_v21, %v586_v56  ;;  %v589_v44 = vld [vmem:[%s3911_s18 + $0xc8] sm:$0xff]  ;;  %v592_v21 = vld [vmem:[%s3911_s18 + $0xe0] sm:$0xff] }
 0x213   : > { %990 = vmax.xlane.f32.xlu1 %v989_v15  ;;  %2806 = vmatprep.subr.bf16.mxu1 %v3353_v36  ;;  %v2810_v15 = vpack.c.bf16 %v585_v7, %v584_v54  ;;  %v4008_v54 = vld [vmem:[#allocation3 + $0x8] sm:$0xff]  ;;  %v590_v7 = vld [vmem:[%s3911_s18 + $0xd0] sm:$0xff] }
 0x216   : > { %2808 = vmatpush1.bf16.msra.mxu1 %v2807_v45  ;;  %v2816_v45 = vpack.c.bf16 %v589_v44, %v588_v20  ;;  %v4021_v44 = vld [vmem:[#allocation3 + $0x10] sm:$0xff] }
 0x217   : > { %2809 = vmatprep.subr.bf16.mxu1 %v3353_v36 }
 0x21a   : > { %2811 = vmatpush1.bf16.msra.mxu1 %v2810_v15  ;;  %v591_v15 = vld [vmem:[%s3911_s18 + $0xd8] sm:$0xff] }
 0x21b   : > { %2812 = vmatprep.subr.bf16.mxu1 %v3353_v36  ;;  %v2819_v20 = vpack.c.bf16 %v591_v15, %v590_v7 }
 0x21e   : > { %2814 = vmatpush1.bf16.msra.mxu1 %v2813_v37 }
 0x21f   : > { %2815 = vmatprep.subr.bf16.mxu1 %v3353_v36 }
 0x222   : > { %2817 = vmatpush1.bf16.msra.mxu1 %v2816_v45 }
 0x223   : > { %2818 = vmatprep.subr.bf16.mxu1 %v3353_v36 }
 0x224   : > { %v898_v29 = vpop.xlane.xlu0 %897 }
 0x225   : > { %v4006_v12 = vmax.f32 %v4000_v52, %v898_v29  ;;  %v4067_v29 = vld [vmem:[#allocation3 + $0x30] sm:$0xff] }
 0x226   : > { %2820 = vmatpush1.bf16.msra.mxu1 %v2819_v20 }
 0x227   : > { %2114 = vst.msk [vmem:[#allocation3] sm:$0xff] %vm403_vm1, %v4006_v12  ;;  %1090 = vperm.xlu0 %2908, %v4006_v12   ;;  %2821 = vmatprep.subr.bf16.mxu1 %v3353_v36 }
 0x228   : > { %v901_v56 = vpop.xlane.xlu0 %900 }
 0x229   : > { %v4019_v37 = vmax.f32 %v4008_v54, %v901_v56  ;;  %v593_v56 = vld [vmem:[%s3911_s18 + $0xe8] sm:$0xff] }
 0x22a   : > { %v2822_v15 = vpack.c.bf16 %v593_v56, %v592_v21  ;;  %v2825_v21 = vpack.c.bf16 %v595_v63, %v594_v28  ;;  %v4047_v56 = vld [vmem:[#allocation3 + $0x20] sm:$0xff] }
 0x22b   : > { %2115 = vst.msk [vmem:[#allocation3 + $0x8] sm:$0xff] %vm403_vm1, %v4019_v37  ;;  %1095 = vperm.xlu1 %2909, %v4019_v37  }
 0x22c   : > { %v904_v45 = vpop.xlane.xlu1 %903  ;;  %2823 = vmatpush1.bf16.msra.mxu1 %v2822_v15 }
 0x22d   : > { %v4032_v7 = vmax.f32 %v4021_v44, %v904_v45  ;;  %2824 = vmatprep.subr.bf16.mxu1 %v3353_v36 }
 0x22f   : > { %2116 = vst.msk [vmem:[#allocation3 + $0x10] sm:$0xff] %vm403_vm1, %v4032_v7  ;;  %1100 = vperm.xlu1 %2909, %v4032_v7  }
 0x230   : > { %v907_v20 = vpop.xlane.xlu1 %906  ;;  %2826 = vmatpush1.bf16.msra.mxu1 %v2825_v21 }
 0x231   : > { %v4045_v45 = vmax.f32 %v4034_v6, %v907_v20 }
 0x233   : > { %2117 = vst.msk [vmem:[#allocation3 + $0x18] sm:$0xff] %vm403_vm1, %v4045_v45  ;;  %1105 = vperm.xlu1 %2909, %v4045_v45  }
 0x234   : > { %v910_v15 = vpop.xlane.xlu0 %909 }
 0x235   : > { %v4055_v36 = vmax.f32 %v4047_v56, %v910_v15 }
 0x237   : > { %2118 = vst.msk [vmem:[#allocation3 + $0x20] sm:$0xff] %vm403_vm1, %v4055_v36  ;;  %1110 = vperm.xlu1 %2909, %v4055_v36  }
 0x238   : > { %v913_v28 = vpop.xlane.xlu1 %912 }
 0x239   : > { %v4065_v20 = vmax.f32 %v4057_v62, %v913_v28 }
 0x23b   : > { %2119 = vst.msk [vmem:[#allocation3 + $0x28] sm:$0xff] %vm403_vm1, %v4065_v20  ;;  %1115 = vperm.xlu1 %2909, %v4065_v20  }
 0x23c   : > { %v916_v15 = vpop.xlane.xlu0 %915 }
 0x23d   : > { %v4075_v63 = vmax.f32 %v4067_v29, %v916_v15 }
 0x23f   : > { %2120 = vst.msk [vmem:[#allocation3 + $0x30] sm:$0xff] %vm403_vm1, %v4075_v63  ;;  %1120 = vperm.xlu1 %2909, %v4075_v63  }
 0x240   : > { %v919_v21 = vpop.xlane.xlu1 %918 }
 0x241   : > { %v4085_v48 = vmax.f32 %v4077_v49, %v919_v21 }
 0x243   : > { %2121 = vst.msk [vmem:[#allocation3 + $0x38] sm:$0xff] %vm403_vm1, %v4085_v48  ;;  %1125 = vperm.xlu1 %2909, %v4085_v48  }
 0x244   : > { %v922_v28 = vpop.xlane.xlu0 %921 }
 0x245   : > { %v4095_v40 = vmax.f32 %v4087_v41, %v922_v28 }
 0x247   : > { %2122 = vst.msk [vmem:[#allocation3 + $0x40] sm:$0xff] %vm403_vm1, %v4095_v40  ;;  %1130 = vperm.xlu1 %2909, %v4095_v40  }
 0x248   : > { %v925_v15 = vpop.xlane.xlu1 %924 }
 0x249   : > { %v4105_v32 = vmax.f32 %v4097_v33, %v925_v15 }
 0x24b   : > { %2123 = vst.msk [vmem:[#allocation3 + $0x48] sm:$0xff] %vm403_vm1, %v4105_v32  ;;  %1135 = vperm.xlu0 %2908, %v4105_v32  }
 0x24c   : > { %v928_v21 = vpop.xlane.xlu0 %927 }
 0x24d   : > { %v4115_v24 = vmax.f32 %v4107_v25, %v928_v21 }
 0x24f   : > { %2124 = vst.msk [vmem:[#allocation3 + $0x50] sm:$0xff] %vm403_vm1, %v4115_v24  ;;  %1140 = vperm.xlu1 %2909, %v4115_v24  }
 0x250   : > { %v931_v28 = vpop.xlane.xlu1 %930 }
 0x251   : > { %v4125_v16 = vmax.f32 %v4117_v19, %v931_v28 }
 0x253   : > { %2125 = vst.msk [vmem:[#allocation3 + $0x58] sm:$0xff] %vm403_vm1, %v4125_v16  ;;  %1145 = vperm.xlu0 %2908, %v4125_v16  }
 0x254   : > { %v934_v15 = vpop.xlane.xlu0 %933 }
 0x255   : > { %v4135_v10 = vmax.f32 %v4127_v11, %v934_v15 }
 0x257   : > { %2126 = vst.msk [vmem:[#allocation3 + $0x60] sm:$0xff] %vm403_vm1, %v4135_v10  ;;  %1150 = vperm.xlu1 %2909, %v4135_v10  }
 0x258   : > { %v937_v21 = vpop.xlane.xlu1 %936 }
 0x259   : > { %v4145_v2 = vmax.f32 %v4137_v3, %v937_v21 }
 0x25b   : > { %2127 = vst.msk [vmem:[#allocation3 + $0x68] sm:$0xff] %vm403_vm1, %v4145_v2  ;;  %1155 = vperm.xlu0 %2908, %v4145_v2  }
 0x25c   : > { %v940_v28 = vpop.xlane.xlu0 %939 }
 0x25d   : > { %v4155_v58 = vmax.f32 %v4147_v59, %v940_v28 }
 0x25f   : > { %2128 = vst.msk [vmem:[#allocation3 + $0x70] sm:$0xff] %vm403_vm1, %v4155_v58  ;;  %1160 = vperm.xlu1 %2909, %v4155_v58  }
 0x260   : > { %v943_v15 = vpop.xlane.xlu1 %942 }
 0x261   : > { %v4165_v50 = vmax.f32 %v4157_v51, %v943_v15 }
 0x263   : > { %2129 = vst.msk [vmem:[#allocation3 + $0x78] sm:$0xff] %vm403_vm1, %v4165_v50  ;;  %1165 = vperm.xlu0 %2908, %v4165_v50  }
 0x264   : > { %v946_v21 = vpop.xlane.xlu0 %945 }
 0x265   : > { %v4175_v46 = vmax.f32 %v4167_v47, %v946_v21 }
 0x267   : > { %2130 = vst.msk [vmem:[#allocation3 + $0x80] sm:$0xff] %vm403_vm1, %v4175_v46  ;;  %1170 = vperm.xlu1 %2909, %v4175_v46  }
 0x268   : > { %v949_v28 = vpop.xlane.xlu1 %948 }
 0x269   : > { %v4185_v42 = vmax.f32 %v4177_v43, %v949_v28 }
 0x26b   : > { %2131 = vst.msk [vmem:[#allocation3 + $0x88] sm:$0xff] %vm403_vm1, %v4185_v42  ;;  %1175 = vperm.xlu0 %2908, %v4185_v42  }
 0x26c   : > { %v952_v15 = vpop.xlane.xlu0 %951 }
 0x26d   : > { %v4195_v38 = vmax.f32 %v4187_v39, %v952_v15 }
 0x26f   : > { %2132 = vst.msk [vmem:[#allocation3 + $0x90] sm:$0xff] %vm403_vm1, %v4195_v38  ;;  %1180 = vperm.xlu1 %2909, %v4195_v38  }
 0x270   : > { %v955_v21 = vpop.xlane.xlu1 %954 }
 0x271   : > { %v4205_v34 = vmax.f32 %v4197_v35, %v955_v21 }
 0x273   : > { %2133 = vst.msk [vmem:[#allocation3 + $0x98] sm:$0xff] %vm403_vm1, %v4205_v34  ;;  %1185 = vperm.xlu0 %2908, %v4205_v34  }
 0x274   : > { %v958_v28 = vpop.xlane.xlu0 %957 }
 0x275   : > { %v4215_v30 = vmax.f32 %v4207_v31, %v958_v28 }
 0x277   : > { %2134 = vst.msk [vmem:[#allocation3 + $0xa0] sm:$0xff] %vm403_vm1, %v4215_v30  ;;  %1190 = vperm.xlu1 %2909, %v4215_v30  }
 0x278   : > { %v961_v15 = vpop.xlane.xlu1 %960 }
 0x279   : > { %v4225_v26 = vmax.f32 %v4217_v27, %v961_v15  ;;  %v4255_v15 = vld [vmem:[#allocation3 + $0xc8] sm:$0xff] }
 0x27a   : > { %5230 = vst [vmem:[#allocation77_spill] sm:$0xff] %v4255_v15 }
 0x27b   : > { %5224 = vst [vmem:[#allocation71_spill] sm:$0xff] %v4225_v26  ;;  %2135 = vst.msk [vmem:[#allocation3 + $0xa8] sm:$0xff] %vm403_vm1, %v4225_v26  ;;  %1195 = vperm.xlu0 %2908, %v4225_v26  }
 0x27c   : > { %v964_v21 = vpop.xlane.xlu0 %963 }
 0x27d   : > { %v4235_v22 = vmax.f32 %v4227_v23, %v964_v21  ;;  %v4263_v23 = vld [vmem:[#allocation3 + $0xd0] sm:$0xff] }
 0x27f   : > { %5226 = vst [vmem:[#allocation73_spill] sm:$0xff] %v4235_v22  ;;  %2136 = vst.msk [vmem:[#allocation3 + $0xb0] sm:$0xff] %vm403_vm1, %v4235_v22  ;;  %1200 = vperm.xlu1 %2909, %v4235_v22  }
 0x280   : > { %v967_v28 = vpop.xlane.xlu1 %966 }
 0x281   : > { %v4245_v17 = vmax.f32 %v4237_v18, %v967_v28 }
 0x283   : > { %2137 = vst.msk [vmem:[#allocation3 + $0xb8] sm:$0xff] %vm403_vm1, %v4245_v17  ;;  %1205 = vperm.xlu0 %2908, %v4245_v17  }
 0x284   : > { %v970_v21 = vpop.xlane.xlu0 %969 }
 0x285   : > { %v4253_v26 = vmax.f32 %v4247_v14, %v970_v21  ;;  %v5232_v21 = vsub.f32 %v4000_v52, %v4006_v12  ;;  %v4285_v12 = vld [vmem:[#allocation3 + $0xe0] sm:$0xff] }
 0x287   : > { %5229 = vst [vmem:[#allocation76_spill] sm:$0xff] %v4253_v26  ;;  %2138 = vst.msk [vmem:[#allocation3 + $0xc0] sm:$0xff] %vm403_vm1, %v4253_v26  ;;  %1210 = vperm.xlu1 %2909, %v4253_v26   ;;  %2910 = vpow2.f32 %v5232_v21  ;;  %v4274_v26 = vld [vmem:[#allocation3 + $0xd8] sm:$0xff] }
 0x288   : > { %v973_v28 = vpop.xlane.xlu1 %972 }
 0x289   : > { %v4261_v22 = vmax.f32 %v4255_v15, %v973_v28  ;;  %v5233_v28 = vsub.f32 %v4008_v54, %v4019_v37  ;;  %v4298_v37 = vld [vmem:[#allocation3 + $0xe8] sm:$0xff] }
 0x28b   : > { %5231 = vst [vmem:[#allocation78_spill] sm:$0xff] %v4261_v22  ;;  %2139 = vst.msk [vmem:[#allocation3 + $0xc8] sm:$0xff] %vm403_vm1, %v4261_v22  ;;  %1215 = vperm.xlu0 %2908, %v4261_v22   ;;  %2912 = vpow2.f32 %v5233_v28 }
 0x28c   : > { %v976_v14 = vpop.xlane.xlu0 %975 }
 0x28d   : > { %v4272_v18 = vmax.f32 %v4263_v23, %v976_v14  ;;  %v5234_v14 = vsub.f32 %v4034_v6, %v4045_v45 }
 0x28f   : > { %2140 = vst.msk [vmem:[#allocation3 + $0xd0] sm:$0xff] %vm403_vm1, %v4272_v18  ;;  %1220 = vperm.xlu1 %2909, %v4272_v18   ;;  %2914 = vpow2.f32 %v5234_v14  ;;  %v4312_v14 = vld [vmem:[#allocation3 + $0xf0] sm:$0xff] }
 0x290   : > { %v979_v15 = vpop.xlane.xlu1 %978 }
 0x291   : > { %v4283_v22 = vmax.f32 %v4274_v26, %v979_v15  ;;  %v4296_v54 = vpop.eup %2910  ;;  %v5236_v15 = vsub.f32 %v4021_v44, %v4032_v7  ;;  %v5238_v44 = vsub.f32 %v4057_v62, %v4065_v20  ;;  %v5240_v62 = vsub.f32 %v4077_v49, %v4085_v48 }
 0x292   : > { %5235 = vst [vmem:[#allocation79_spill] sm:$0xff] %v4296_v54  ;;  %v5242_v48 = vsub.f32 %v4097_v33, %v4105_v32  ;;  %v5244_v32 = vsub.f32 %v4117_v19, %v4125_v16  ;;  %v5246_v16 = vsub.f32 %v4137_v3, %v4145_v2  ;;  %v5248_v2 = vsub.f32 %v4157_v51, %v4165_v50 }
 0x293   : > { %2141 = vst.msk [vmem:[#allocation3 + $0xd8] sm:$0xff] %vm403_vm1, %v4283_v22  ;;  %1225 = vperm.xlu0 %2908, %v4283_v22   ;;  %2916 = vpow2.f32 %v5236_v15  ;;  %v5250_v51 = vsub.f32 %v4177_v43, %v4185_v42 }
 0x294   : > { %v982_v52 = vpop.xlane.xlu0 %981 }
 0x295   : > { %v4294_v21 = vmax.f32 %v4285_v12, %v982_v52  ;;  %v4310_v28 = vpop.eup %2912  ;;  %v5237_v52 = vsub.f32 %v4047_v56, %v4055_v36  ;;  %v5239_v56 = vsub.f32 %v4067_v29, %v4075_v63  ;;  %v5241_v29 = vsub.f32 %v4087_v41, %v4095_v40 }
 0x296   : > { %v5243_v41 = vsub.f32 %v4107_v25, %v4115_v24 }
 0x297   : > { %2142 = vst.msk [vmem:[#allocation3 + $0xe0] sm:$0xff] %vm403_vm1, %v4294_v21  ;;  %1635 = vperm.xlu0 %2908, %v4296_v54   ;;  %1230 = vperm.xlu1 %2909, %v4294_v21   ;;  %2918 = vpow2.f32 %v5237_v52  ;;  %v4329_v54 = vld [vmem:[#allocation3 + $0xf8] sm:$0xff] }
 0x298   : > { %v985_v6 = vpop.xlane.xlu1 %984  ;;  %2920 = vpow2.f32 %v5238_v44 }
 0x299   : > { %v4308_v45 = vmax.f32 %v4298_v37, %v985_v6  ;;  %v4327_v6 = vpop.eup %2914  ;;  %2922 = vpow2.f32 %v5239_v56 }
 0x29a   : > { %2924 = vpow2.f32 %v5240_v62 }
 0x29b   : > { %2143 = vst.msk [vmem:[#allocation3 + $0xe8] sm:$0xff] %vm403_vm1, %v4308_v45  ;;  %1235 = vperm.xlu0 %2908, %v4308_v45   ;;  %1640 = vperm.xlu1 %2909, %v4310_v28   ;;  %2926 = vpow2.f32 %v5241_v29 }
 0x29c   : > { %v988_v7 = vpop.xlane.xlu0 %987  ;;  %2928 = vpow2.f32 %v5242_v48 }
 0x29d   : > { %v4325_v15 = vmax.f32 %v4312_v14, %v988_v7  ;;  %v4344_v52 = vpop.eup %2916  ;;  %2930 = vpow2.f32 %v5243_v41 }
 0x29e   : > { %2932 = vpow2.f32 %v5244_v32 }
 0x29f   : > { %2144 = vst.msk [vmem:[#allocation3 + $0xf0] sm:$0xff] %vm403_vm1, %v4325_v15  ;;  %1650 = vperm.xlu0 %2908, %v4327_v6   ;;  %1240 = vperm.xlu1 %2909, %v4325_v15  }
 0x2a0   : > { %v991_v36 = vpop.xlane.xlu1 %990 }
 0x2a1   : > { %v4342_v20 = vmax.f32 %v4329_v54, %v991_v36  ;;  %v4358_v49 = vpop.eup %2918 }
 0x2a2   : > { %v4360_v44 = vpop.eup %2920 }
 0x2a3   : > { %2145 = vst.msk [vmem:[#allocation3 + $0xf8] sm:$0xff] %vm403_vm1, %v4342_v20  ;;  %1245 = vperm.xlu0 %2908, %v4342_v20   ;;  %1645 = vperm.xlu1 %2909, %v4344_v52   ;;  %v4372_v33 = vpop.eup %2922 }
 0x2a4   : > { %v4374_v62 = vpop.eup %2924 }
 0x2a5   : > { %v4386_v19 = vpop.eup %2926 }
 0x2a6   : > { %v1091_v40 = vpop.permute.xlu0 %1090  ;;  %v4388_v36 = vpop.eup %2928 }
 0x2a7   : > { %v1248_v7 = vsub.f32 %v3673_v53, %v1091_v40  ;;  %v1249_v56 = vsub.f32 %v3676_v55, %v1091_v40  ;;  %1660 = vperm.xlu0 %2908, %v4360_v44   ;;  %1655 = vperm.xlu1 %2909, %v4358_v49   ;;  %v5245_v53 = vsub.f32 %v4127_v11, %v4135_v10  ;;  %v4400_v3 = vpop.eup %2930 }
 0x2a8   : > { %v4402_v29 = vpop.eup %2932 }
 0x2a9   : > { %2934 = vpow2.f32 %v1248_v7 }
 0x2aa   : > { %2936 = vpow2.f32 %v1249_v56  ;;  %v1096_v24 = vpop.permute.xlu1 %1095  ;;  %v5252_v56 = vsub.f32 %v4197_v35, %v4205_v34 }
 0x2ab   : > { %2938 = vpow2.f32 %v5245_v53  ;;  %v1250_v55 = vsub.f32 %v3710_v57, %v1096_v24  ;;  %v1251_v25 = vsub.f32 %v3715_v60, %v1096_v24  ;;  %1670 = vperm.xlu0 %2908, %v4374_v62   ;;  %1665 = vperm.xlu1 %2909, %v4372_v33   ;;  %v5247_v57 = vsub.f32 %v4147_v59, %v4155_v58 }
 0x2ac   : > { %2940 = vpow2.f32 %v5246_v16  ;;  %v5256_v16 = vld [vmem:[#allocation74_spill] sm:$0xff] }
 0x2ad   : > { %2942 = vpow2.f32 %v1250_v55  ;;  %v5254_v55 = vld [vmem:[#allocation71_spill] sm:$0xff] }
 0x2ae   : > { %2944 = vpow2.f32 %v1251_v25  ;;  %v1101_v10 = vpop.permute.xlu1 %1100  ;;  %v5255_v25 = vsub.f32 %v4217_v27, %v5254_v55  ;;  %v5260_v27 = vld [vmem:[#allocation76_spill] sm:$0xff]  ;;  %v1051_v55 = vsub.f32 %v4274_v26, %v4283_v22 }
 0x2af   : > { %2946 = vpow2.f32 %v5247_v57  ;;  %v1252_v60 = vsub.f32 %v3717_v61, %v1101_v10  ;;  %v1253_v11 = vsub.f32 %v3722_v0, %v1101_v10  ;;  %1680 = vperm.xlu0 %2908, %v4388_v36   ;;  %1675 = vperm.xlu1 %2909, %v4386_v19   ;;  %v5249_v61 = vsub.f32 %v4167_v47, %v4175_v46 }
 0x2b0   : > { %2948 = vpow2.f32 %v5248_v2  ;;  %v5251_v47 = vsub.f32 %v4187_v39, %v4195_v38  ;;  %v5253_v39 = vsub.f32 %v4207_v31, %v4215_v30  ;;  %v1047_v10 = vsub.f32 %v5256_v16, %v4245_v17  ;;  %v5262_v17 = vld [vmem:[#allocation19_spill] sm:$0xff] }
 0x2b1   : > { %2950 = vpow2.f32 %v1252_v60  ;;  %v5257_v60 = vld [vmem:[#allocation72_spill] sm:$0xff] }
 0x2b2   : > { %2952 = vpow2.f32 %v1253_v11  ;;  %v1106_v58 = vpop.permute.xlu1 %1105  ;;  %v5258_v11 = vld [vmem:[#allocation73_spill] sm:$0xff] }
 0x2b3   : > { %v2935_v59 = vpop.eup %2934  ;;  %2954 = vpow2.f32 %v5249_v61  ;;  %v1254_v0 = vsub.f32 %v3724_v1, %v1106_v58  ;;  %v1255_v48 = vsub.f32 %v3729_v4, %v1106_v58  ;;  %1690 = vperm.xlu0 %2908, %v4402_v29   ;;  %1685 = vperm.xlu1 %2909, %v4400_v3   ;;  %v5259_v2 = vsub.f32 %v5257_v60, %v5258_v11  ;;  %v5261_v58 = vld [vmem:[#allocation75_spill] sm:$0xff]  ;;  %v5270_v11 = vld [vmem:[#allocation24_spill] sm:$0xff] }
 0x2b4   : > { %v2937_v50 = vpop.eup %2936  ;;  %2956 = vpow2.f32 %v5250_v51  ;;  %v5264_v51 = vld [vmem:[#allocation78_spill] sm:$0xff] }
 0x2b5   : > { %v4414_v40 = vpop.eup %2938  ;;  %2958 = vpow2.f32 %v1254_v0  ;;  %1889 = vmatprep.mubr.f32.mxu1 %v2937_v50  ;;  %v4416_v41 = vadd.f32 %v2937_v50, %v2935_v59  ;;  %v5263_v0 = vld [vmem:[#allocation20_spill] sm:$0xff] }
 0x2b6   : > { %v4418_v46 = vpop.eup %2940  ;;  %2960 = vpow2.f32 %v1255_v48  ;;  %1890 = vmatmul.mubr.f32.vlgmr.msra.gmra.mrb[0].mxu1 %v2935_v59  ;;  %v1111_v1 = vpop.permute.xlu1 %1110  ;;  %v1048_v59 = vsub.f32 %v5261_v58, %v5260_v27 }
 0x2b7   : > { %v2943_v4 = vpop.eup %2942  ;;  %2962 = vpow2.f32 %v5251_v47  ;;  %v1256_v7 = vsub.f32 %v3731_v5, %v1111_v1  ;;  %v1257_v42 = vsub.f32 %v3736_v8, %v1111_v1  ;;  %1700 = vperm.xlu0 %2908, %v4418_v46   ;;  %1695 = vperm.xlu1 %2909, %v4414_v40   ;;  %v5265_v1 = vld [vmem:[#allocation77_spill] sm:$0xff] }
 0x2b8   : > { %v2945_v43 = vpop.eup %2944  ;;  %2964 = vpow2.f32 %v5252_v56 }
 0x2b9   : > { %v4430_v32 = vpop.eup %2946  ;;  %2966 = vpow2.f32 %v1256_v7  ;;  %1894 = vmatprep.mubr.f32.mxu1 %v2945_v43  ;;  %v4432_v24 = vadd.f32 %v2945_v43, %v2943_v4 }
 0x2ba   : > { %v4434_v38 = vpop.eup %2948  ;;  %2968 = vpow2.f32 %v1257_v42  ;;  %1895 = vmatmul.mubr.f32.gmra.mrb[2].mxu1 %v2943_v4  ;;  %v1116_v5 = vpop.permute.xlu1 %1115  ;;  %v1049_v4 = vsub.f32 %v5265_v1, %v5264_v51 }
 0x2bb   : > { %v2951_v8 = vpop.eup %2950  ;;  %2970 = vpow2.f32 %v5253_v39  ;;  %v1258_v53 = vsub.f32 %v3738_v9, %v1116_v5  ;;  %v1259_v34 = vsub.f32 %v3743_v13, %v1116_v5  ;;  %1710 = vperm.xlu0 %2908, %v4434_v38   ;;  %1705 = vperm.xlu1 %2909, %v4430_v32   ;;  %v1050_v5 = vsub.f32 %v4263_v23, %v4272_v18 }
 0x2bc   : > { %v2953_v35 = vpop.eup %2952  ;;  %2972 = vpow2.f32 %v5255_v25 }
 0x2bd   : > { %v4448_v57 = vpop.eup %2954  ;;  %2974 = vpow2.f32 %v1258_v53  ;;  %1899 = vmatprep.mubr.f32.mxu1 %v2953_v35  ;;  %v4450_v30 = vadd.f32 %v2953_v35, %v2951_v8  ;;  %v5267_v53 = vld [vmem:[#allocation22_spill] sm:$0xff] }
 0x2be   : > { %v4452_v9 = vpop.eup %2956  ;;  %2976 = vpow2.f32 %v1259_v34  ;;  %1900 = vmatmul.mubr.f32.gmra.mrb[4].mxu1 %v2951_v8  ;;  %v1121_v13 = vpop.permute.xlu1 %1120  ;;  %v5266_v8 = vld [vmem:[#allocation21_spill] sm:$0xff] }
 0x2bf   : > { %v2959_v31 = vpop.eup %2958  ;;  %2978 = vpow2.f32 %v5259_v2  ;;  %v1260_v61 = vsub.f32 %v5262_v17, %v1121_v13  ;;  %v1261_v48 = vsub.f32 %v5263_v0, %v1121_v13  ;;  %1720 = vperm.xlu0 %2908, %v4452_v9   ;;  %1715 = vperm.xlu1 %2909, %v4448_v57   ;;  %v1052_v13 = vsub.f32 %v4285_v12, %v4294_v21  ;;  %v5272_v17 = vld [vmem:[#allocation25_spill] sm:$0xff]  ;;  %v5273_v0 = vld [vmem:[#allocation26_spill] sm:$0xff] }
 0x2c0   : > { %v2961_v50 = vpop.eup %2960  ;;  %2980 = vpow2.f32 %v1047_v10  ;;  %v1053_v2 = vsub.f32 %v4298_v37, %v4308_v45  ;;  %v1054_v45 = vsub.f32 %v4312_v14, %v4325_v15 }
 0x2c1   : > { %v4465_v47 = vpop.eup %2962  ;;  %2982 = vpow2.f32 %v1260_v61  ;;  %1904 = vmatprep.mubr.f32.mxu1 %v2961_v50  ;;  %v4467_v7 = vadd.f32 %v2961_v50, %v2959_v31 }
 0x2c2   : > { %v4469_v42 = vpop.eup %2964  ;;  %2984 = vpow2.f32 %v1261_v48  ;;  %1905 = vmatmul.mubr.f32.gmra.mrb[6].mxu1 %v2959_v31  ;;  %v1126_v43 = vpop.permute.xlu1 %1125  ;;  %v5269_v31 = vld [vmem:[#allocation23_spill] sm:$0xff] }
 0x2c3   : > { %v2967_v56 = vpop.eup %2966  ;;  %2986 = vpow2.f32 %v1048_v59  ;;  %v1262_v39 = vsub.f32 %v5266_v8, %v1126_v43  ;;  %v1263_v34 = vsub.f32 %v5267_v53, %v1126_v43  ;;  %1730 = vperm.xlu0 %2908, %v4469_v42   ;;  %1725 = vperm.xlu1 %2909, %v4465_v47   ;;  %v5275_v43 = vld [vmem:[#allocation27_spill] sm:$0xff] }
 0x2c4   : > { %v2969_v35 = vpop.eup %2968  ;;  %2988 = vpow2.f32 %v1049_v4 }
 0x2c5   : > { %v4479_v25 = vpop.eup %2970  ;;  %2990 = vpow2.f32 %v1262_v39  ;;  %1909 = vmatprep.mubr.f32.mxu1 %v2969_v35  ;;  %v4481_v16 = vadd.f32 %v2969_v35, %v2967_v56 }
 0x2c6   : > { %v4483_v18 = vpop.eup %2972  ;;  %2992 = vpow2.f32 %v1263_v34  ;;  %1910 = vmatmul.mubr.f32.gmra.mrb[8].mxu1 %v2967_v56  ;;  %v1131_v23 = vpop.permute.xlu1 %1130 }
 0x2c7   : > { %5268 = vst [vmem:[#allocation71_spill] sm:$0xff] %v4483_v18  ;;  %v2975_v10 = vpop.eup %2974  ;;  %2994 = vpow2.f32 %v1050_v5  ;;  %v1264_v60 = vsub.f32 %v5269_v31, %v1131_v23  ;;  %v1265_v22 = vsub.f32 %v5270_v11, %v1131_v23  ;;  %1740 = vperm.xlu0 %2908, %v4483_v18   ;;  %1735 = vperm.xlu1 %2909, %v4479_v25   ;;  %v5276_v5 = vld [vmem:[#allocation28_spill] sm:$0xff] }
 0x2c8   : > { %v2977_v26 = vpop.eup %2976  ;;  %2996 = vpow2.f32 %v1051_v55  ;;  %v5279_v55 = vld [vmem:[#allocation29_spill] sm:$0xff] }
 0x2c9   : > { %v4493_v27 = vpop.eup %2978  ;;  %2998 = vpow2.f32 %v1264_v60  ;;  %1914 = vmatprep.mubr.f32.mxu1 %v2977_v26  ;;  %v4495_v58 = vadd.f32 %v2977_v26, %v2975_v10 }
 0x2ca   : > { %v4497_v12 = vpop.eup %2980  ;;  %3000 = vpow2.f32 %v1265_v22  ;;  %1915 = vmatmul.mubr.f32.gmra.mrb[10].mxu1 %v2975_v10  ;;  %v1136_v21 = vpop.permute.xlu0 %1135  ;;  %v5280_v10 = vld [vmem:[#allocation30_spill] sm:$0xff] }
 0x2cb   : > { %5271 = vst [vmem:[#allocation74_spill] sm:$0xff] %v4497_v12  ;;  %v4499_v59 = vpop.eup %2982  ;;  %3002 = vpow2.f32 %v1052_v13  ;;  %v1266_v61 = vsub.f32 %v5272_v17, %v1136_v21  ;;  %v1267_v48 = vsub.f32 %v5273_v0, %v1136_v21  ;;  %1750 = vperm.xlu0 %2908, %v4497_v12   ;;  %1745 = vperm.xlu1 %2909, %v4493_v27   ;;  %v5284_v17 = vld [vmem:[#allocation32_spill] sm:$0xff] }
 0x2cc   : > { %v4505_v37 = vpop.eup %2984  ;;  %3004 = vpow2.f32 %v1053_v2  ;;  %v5283_v2 = vld [vmem:[#allocation31_spill] sm:$0xff] }
 0x2cd   : > { %v4509_v50 = vpop.eup %2986  ;;  %3006 = vpow2.f32 %v1266_v61  ;;  %1919 = vmatprep.mubr.f32.mxu1 %v4505_v37 }
 0x2ce   : > { %v4512_v51 = vpop.eup %2988  ;;  %3008 = vpow2.f32 %v1267_v48  ;;  %1920 = vmatmul.mubr.f32.gmra.mrb[12].mxu1 %v4499_v59  ;;  %v1141_v1 = vpop.permute.xlu1 %1140 }
 0x2cf   : > { %5274 = vst [vmem:[#allocation72_spill] sm:$0xff] %v4512_v51  ;;  %v2991_v4 = vpop.eup %2990  ;;  %v1268_v56 = vsub.f32 %v5275_v43, %v1141_v1  ;;  %v1269_v8 = vsub.f32 %v5276_v5, %v1141_v1  ;;  %1760 = vperm.xlu0 %2908, %v4512_v51   ;;  %1755 = vperm.xlu1 %2909, %v4509_v50   ;;  %3010 = vpow2.f32 %v1054_v45 }
 0x2d0   : > { %v2993_v14 = vpop.eup %2992 }
 0x2d1   : > { %v4519_v15 = vpop.eup %2994  ;;  %3012 = vpow2.f32 %v1268_v56  ;;  %1924 = vmatprep.mubr.f32.mxu1 %v2993_v14  ;;  %v4521_v39 = vadd.f32 %v2993_v14, %v2991_v4  ;;  %v5287_v56 = vld [vmem:[#allocation34_spill] sm:$0xff] }
 0x2d2   : > { %5277 = vst [vmem:[#allocation73_spill] sm:$0xff] %v4519_v15  ;;  %v4523_v53 = vpop.eup %2996  ;;  %3014 = vpow2.f32 %v1269_v8  ;;  %1925 = vmatmul.mubr.f32.gmra.mrb[14].mxu1 %v2991_v4  ;;  %v1146_v34 = vpop.permute.xlu0 %1145  ;;  %v5286_v4 = vld [vmem:[#allocation33_spill] sm:$0xff] }
 0x2d3   : > { %5278 = vst [vmem:[#allocation76_spill] sm:$0xff] %v4523_v53  ;;  %v4525_v35 = vpop.eup %2998  ;;  %v1270_v23 = vsub.f32 %v5279_v55, %v1146_v34  ;;  %v1271_v13 = vsub.f32 %v5280_v10, %v1146_v34  ;;  %1770 = vperm.xlu0 %2908, %v4523_v53   ;;  %1765 = vperm.xlu1 %2909, %v4519_v15   ;;  %v5288_v55 = vld [vmem:[#allocation35_spill] sm:$0xff]  ;;  %v5289_v10 = vld [vmem:[#allocation36_spill] sm:$0xff] }
 0x2d4   : > { %v4531_v31 = vpop.eup %3000 }
 0x2d5   : > { %v4533_v60 = vpop.eup %3002  ;;  %3016 = vpow2.f32 %v1270_v23  ;;  %1929 = vmatprep.mubr.f32.mxu1 %v4531_v31 }
 0x2d6   : > { %5281 = vst [vmem:[#allocation75_spill] sm:$0xff] %v4533_v60  ;;  %v4536_v11 = vpop.eup %3004  ;;  %3018 = vpow2.f32 %v1271_v13  ;;  %1930 = vmatmul.mubr.f32.gmra.mrb[16].mxu1 %v4525_v35  ;;  %v1151_v22 = vpop.permute.xlu1 %1150 }
 0x2d7   : > { %5282 = vst [vmem:[#allocation19_spill] sm:$0xff] %v4536_v11  ;;  %v4539_v26 = vpop.eup %3006  ;;  %v1272_v21 = vsub.f32 %v5283_v2, %v1151_v22  ;;  %v1273_v61 = vsub.f32 %v5284_v17, %v1151_v22  ;;  %1780 = vperm.xlu0 %2908, %v4536_v11   ;;  %1775 = vperm.xlu1 %2909, %v4533_v60   ;;  %v5290_v17 = vld [vmem:[#allocation37_spill] sm:$0xff] }
 0x2d8   : > { %v4545_v0 = vpop.eup %3008 }
 0x2d9   : > { %3020 = vpow2.f32 %v1272_v21  ;;  %1934 = vmatprep.mubr.f32.mxu1 %v4545_v0  ;;  %v4548_v48 = vpop.eup %3010 }
 0x2da   : > { %5285 = vst [vmem:[#allocation20_spill] sm:$0xff] %v4548_v48  ;;  %3022 = vpow2.f32 %v1273_v61  ;;  %1935 = vmatmul.mubr.f32.gmra.mrb[18].mxu1 %v4539_v26  ;;  %v1156_v45 = vpop.permute.xlu0 %1155 }
 0x2db   : > { %v4551_v1 = vpop.eup %3012  ;;  %v1274_v43 = vsub.f32 %v5286_v4, %v1156_v45  ;;  %v1275_v5 = vsub.f32 %v5287_v56, %v1156_v45  ;;  %1785 = vperm.xlu1 %2909, %v4548_v48   ;;  %v5291_v45 = vld [vmem:[#allocation38_spill] sm:$0xff] }
 0x2dc   : > { %v4556_v8 = vpop.eup %3014 }
 0x2dd   : > { %3024 = vpow2.f32 %v1274_v43  ;;  %1939 = vmatprep.mubr.f32.mxu1 %v4556_v8 }
 0x2de   : > { %3026 = vpow2.f32 %v1275_v5  ;;  %1940 = vmatmul.mubr.f32.gmra.mrb[20].mxu1 %v4551_v1  ;;  %v1161_v14 = vpop.permute.xlu1 %1160 }
 0x2df   : > { %v4560_v34 = vpop.eup %3016  ;;  %v1276_v23 = vsub.f32 %v5288_v55, %v1161_v14  ;;  %v1277_v13 = vsub.f32 %v5289_v10, %v1161_v14  ;;  %v5292_v14 = vld [vmem:[#allocation39_spill] sm:$0xff] }
 0x2e0   : > { %v4564_v22 = vpop.eup %3018 }
 0x2e1   : > { %3028 = vpow2.f32 %v1276_v23  ;;  %1944 = vmatprep.mubr.f32.mxu1 %v4564_v22  ;;  %v5293_v23 = vld [vmem:[#allocation40_spill] sm:$0xff] }
 0x2e2   : > { %3030 = vpow2.f32 %v1277_v13  ;;  %1945 = vmatmul.mubr.f32.gmra.mrb[22].mxu1 %v4560_v34  ;;  %v1166_v2 = vpop.permute.xlu0 %1165 }
 0x2e3   : > { %v4568_v21 = vpop.eup %3020  ;;  %v1278_v61 = vsub.f32 %v5290_v17, %v1166_v2  ;;  %v1279_v4 = vsub.f32 %v5291_v45, %v1166_v2 }
 0x2e4   : > { %v4572_v43 = vpop.eup %3022 }
 0x2e5   : > { %3032 = vpow2.f32 %v1278_v61  ;;  %1949 = vmatprep.mubr.f32.mxu1 %v4572_v43  ;;  %v5294_v61 = vld [vmem:[#allocation41_spill] sm:$0xff] }
 0x2e6   : > { %3034 = vpow2.f32 %v1279_v4  ;;  %1950 = vmatmul.mubr.f32.gmra.mrb[24].mxu1 %v4568_v21  ;;  %v1171_v56 = vpop.permute.xlu1 %1170  ;;  %v5295_v4 = vld [vmem:[#allocation42_spill] sm:$0xff] }
 0x2e7   : > { %v4576_v5 = vpop.eup %3024  ;;  %v1280_v55 = vsub.f32 %v5292_v14, %v1171_v56  ;;  %v1281_v10 = vsub.f32 %v5293_v23, %v1171_v56 }
 0x2e8   : > { %v4580_v13 = vpop.eup %3026 }
 0x2e9   : > { %3036 = vpow2.f32 %v1280_v55  ;;  %1954 = vmatprep.mubr.f32.mxu1 %v4580_v13  ;;  %v5296_v55 = vld [vmem:[#allocation43_spill] sm:$0xff] }
 0x2ea   : > { %3038 = vpow2.f32 %v1281_v10  ;;  %1955 = vmatmul.mubr.f32.gmra.mrb[26].mxu1 %v4576_v5  ;;  %v1176_v2 = vpop.permute.xlu0 %1175  ;;  %v5297_v10 = vld [vmem:[#allocation44_spill] sm:$0xff] }
 0x2eb   : > { %v4584_v17 = vpop.eup %3028  ;;  %v1282_v45 = vsub.f32 %v5294_v61, %v1176_v2  ;;  %v1283_v63 = vsub.f32 %v5295_v4, %v1176_v2  ;;  %v5299_v4 = vld [vmem:[#allocation46_spill] sm:$0xff] }
 0x2ec   : > { %v4588_v11 = vpop.eup %3030 }
 0x2ed   : > { %3040 = vpow2.f32 %v1282_v45  ;;  %1959 = vmatprep.mubr.f32.mxu1 %v4588_v11 }
 0x2ee   : > { %3042 = vpow2.f32 %v1283_v63  ;;  %1960 = vmatmul.mubr.f32.gmra.mrb[28].mxu1 %v4584_v17  ;;  %v1181_v56 = vpop.permute.xlu1 %1180  ;;  %v5298_v63 = vld [vmem:[#allocation45_spill] sm:$0xff] }
 0x2ef   : > { %v4592_v14 = vpop.eup %3032  ;;  %v1284_v23 = vsub.f32 %v5296_v55, %v1181_v56  ;;  %v1285_v53 = vsub.f32 %v5297_v10, %v1181_v56  ;;  %v5300_v55 = vld [vmem:[#allocation47_spill] sm:$0xff]  ;;  %v5301_v10 = vld [vmem:[#allocation48_spill] sm:$0xff] }
 0x2f0   : > { %v4596_v48 = vpop.eup %3034 }
 0x2f1   : > { %3044 = vpow2.f32 %v1284_v23  ;;  %1964 = vmatprep.mubr.f32.mxu1 %v4596_v48 }
 0x2f2   : > { %3046 = vpow2.f32 %v1285_v53  ;;  %1965 = vmatmul.mubr.f32.gmra.mrb[30].mxu1 %v4592_v14  ;;  %v1186_v2 = vpop.permute.xlu0 %1185 }
 0x2f3   : > { %v4600_v61 = vpop.eup %3036  ;;  %v1286_v45 = vsub.f32 %v5298_v63, %v1186_v2  ;;  %v1287_v51 = vsub.f32 %v5299_v4, %v1186_v2  ;;  %v5303_v4 = vld [vmem:[#allocation50_spill] sm:$0xff] }
 0x2f4   : > { %v4604_v60 = vpop.eup %3038 }
 0x2f5   : > { %3048 = vpow2.f32 %v1286_v45  ;;  %1969 = vmatprep.mubr.f32.mxu1 %v4604_v60 }
 0x2f6   : > { %3050 = vpow2.f32 %v1287_v51  ;;  %1970 = vmatmul.mubr.f32.gmra.mrb[32].mxu1 %v4600_v61  ;;  %1444 = vadd.xlane.f32.xlu0 %v4432_v24  ;;  %v1191_v53 = vpop.permute.xlu1 %1190  ;;  %v5302_v24 = vld [vmem:[#allocation49_spill] sm:$0xff] }
 0x2f7   : > { %v4609_v56 = vpop.eup %3040  ;;  %v1288_v23 = vsub.f32 %v5300_v55, %v1191_v53  ;;  %v1289_v12 = vsub.f32 %v5301_v10, %v1191_v53  ;;  %v5305_v10 = vld [vmem:[#allocation52_spill] sm:$0xff] }
 0x2f8   : > { %v4613_v63 = vpop.eup %3042 }
 0x2f9   : > { %3052 = vpow2.f32 %v1288_v23  ;;  %1974 = vmatprep.mubr.f32.mxu1 %v4613_v63 }
 0x2fa   : > { %3054 = vpow2.f32 %v1289_v12  ;;  %1975 = vmatmul.mubr.f32.gmra.mrb[34].mxu1 %v4609_v56  ;;  %1447 = vadd.xlane.f32.xlu0 %v4450_v30  ;;  %v1196_v51 = vpop.permute.xlu0 %1195  ;;  %v5304_v30 = vld [vmem:[#allocation51_spill] sm:$0xff] }
 0x2fb   : > { %v4618_v2 = vpop.eup %3044  ;;  %v1290_v45 = vsub.f32 %v5302_v24, %v1196_v51  ;;  %v1291_v15 = vsub.f32 %v5303_v4, %v1196_v51  ;;  %v1458_v24 = vadd.f32 %v4505_v37, %v4499_v59  ;;  %v1464_v59 = vadd.f32 %v4531_v31, %v4525_v35 }
 0x2fc   : > { %v4622_v55 = vpop.eup %3046  ;;  %v1470_v35 = vadd.f32 %v4556_v8, %v4551_v1  ;;  %v1476_v1 = vadd.f32 %v4572_v43, %v4568_v21  ;;  %v1467_v8 = vadd.f32 %v4545_v0, %v4539_v26  ;;  %v1482_v21 = vadd.f32 %v4588_v11, %v4584_v17 }
 0x2fd   : > { %3056 = vpow2.f32 %v1290_v45  ;;  %1979 = vmatprep.mubr.f32.mxu1 %v4622_v55  ;;  %v5306_v45 = vld [vmem:[#allocation53_spill] sm:$0xff]  ;;  %v1473_v26 = vadd.f32 %v4564_v22, %v4560_v34  ;;  %v1488_v11 = vadd.f32 %v4604_v60, %v4600_v61  ;;  %v1479_v34 = vadd.f32 %v4580_v13, %v4576_v5 }
 0x2fe   : > { %3058 = vpow2.f32 %v1291_v15  ;;  %1980 = vmatmul.mubr.f32.gmra.mrb[36].mxu1 %v4618_v2  ;;  %1453 = vadd.xlane.f32.xlu0 %v4481_v16  ;;  %v1201_v12 = vpop.permute.xlu1 %1200  ;;  %v1494_v60 = vadd.f32 %v4622_v55, %v4618_v2  ;;  %v1485_v5 = vadd.f32 %v4596_v48, %v4592_v14  ;;  %v1491_v48 = vadd.f32 %v4613_v63, %v4609_v56 }
 0x2ff   : > { %v4627_v53 = vpop.eup %3048  ;;  %v1292_v23 = vsub.f32 %v5304_v30, %v1201_v12  ;;  %v1293_v18 = vsub.f32 %v5305_v10, %v1201_v12  ;;  %1441 = vadd.xlane.f32.xlu1 %v4416_v41  ;;  %v5307_v12 = vld [vmem:[#allocation54_spill] sm:$0xff] }
 0x300   : > { %v4632_v51 = vpop.eup %3050 }
 0x301   : > { %3060 = vpow2.f32 %v1292_v23  ;;  %1984 = vmatprep.mubr.f32.mxu1 %v4632_v51  ;;  %v5308_v23 = vld [vmem:[#allocation55_spill] sm:$0xff]  ;;  %v1497_v56 = vadd.f32 %v4632_v51, %v4627_v53 }
 0x302   : > { %3062 = vpow2.f32 %v1293_v18  ;;  %1985 = vmatmul.mubr.f32.gmra.mrb[38].mxu1 %v4627_v53  ;;  %1459 = vadd.xlane.f32.xlu0 %v1458_v24  ;;  %v1206_v16 = vpop.permute.xlu0 %1205  ;;  %v5309_v24 = vld [vmem:[#allocation56_spill] sm:$0xff] }
 0x303   : > { %v4638_v15 = vpop.eup %3052  ;;  %v1294_v4 = vsub.f32 %v5306_v45, %v1206_v16  ;;  %v1295_v30 = vsub.f32 %v5307_v12, %v1206_v16  ;;  %1450 = vadd.xlane.f32.xlu1 %v4467_v7 }
 0x304   : > { %v4643_v41 = vpop.eup %3054 }
 0x305   : > { %3064 = vpow2.f32 %v1294_v4  ;;  %1989 = vmatprep.mubr.f32.mxu1 %v4643_v41  ;;  %v5310_v4 = vld [vmem:[#allocation57_spill] sm:$0xff]  ;;  %v1500_v2 = vadd.f32 %v4643_v41, %v4638_v15 }
 0x306   : > { %3066 = vpow2.f32 %v1295_v30  ;;  %1990 = vmatmul.mubr.f32.gmra.mrb[40].mxu1 %v4638_v15  ;;  %1465 = vadd.xlane.f32.xlu0 %v1464_v59  ;;  %v1211_v18 = vpop.permute.xlu1 %1210  ;;  %v5311_v30 = vld [vmem:[#allocation58_spill] sm:$0xff] }
 0x307   : > { %v4649_v37 = vpop.eup %3056  ;;  %v1296_v10 = vsub.f32 %v5308_v23, %v1211_v18  ;;  %v1297_v16 = vsub.f32 %v5309_v24, %v1211_v18  ;;  %1456 = vadd.xlane.f32.xlu1 %v4495_v58  ;;  %v5313_v24 = vld [vmem:[#allocation60_spill] sm:$0xff] }
 0x308   : > { %v4654_v7 = vpop.eup %3058 }
 0x309   : > { %3068 = vpow2.f32 %v1296_v10  ;;  %1994 = vmatprep.mubr.f32.mxu1 %v4654_v7  ;;  %v5312_v10 = vld [vmem:[#allocation59_spill] sm:$0xff] }
 0x30a   : > { %3070 = vpow2.f32 %v1297_v16  ;;  %1995 = vmatmul.mubr.f32.gmra.mrb[42].mxu1 %v4649_v37  ;;  %1471 = vadd.xlane.f32.xlu0 %v1470_v35  ;;  %v1216_v31 = vpop.permute.xlu0 %1215 }
 0x30b   : > { %v4660_v45 = vpop.eup %3060  ;;  %v1298_v12 = vsub.f32 %v5310_v4, %v1216_v31  ;;  %v1299_v59 = vsub.f32 %v5311_v30, %v1216_v31  ;;  %1462 = vadd.xlane.f32.xlu1 %v4521_v39  ;;  %v5314_v31 = vld [vmem:[#allocation61_spill] sm:$0xff] }
 0x30c   : > { %v4665_v58 = vpop.eup %3062 }
 0x30d   : > { %3072 = vpow2.f32 %v1298_v12  ;;  %1999 = vmatprep.mubr.f32.mxu1 %v4665_v58  ;;  %v5315_v12 = vld [vmem:[#allocation62_spill] sm:$0xff]  ;;  %v1506_v15 = vadd.f32 %v4665_v58, %v4660_v45 }
 0x30e   : > { %3074 = vpow2.f32 %v1299_v59  ;;  %2000 = vmatmul.mubr.f32.gmra.mrb[44].mxu1 %v4660_v45  ;;  %1477 = vadd.xlane.f32.xlu0 %v1476_v1  ;;  %v1221_v18 = vpop.permute.xlu1 %1220  ;;  %v1503_v45 = vadd.f32 %v4654_v7, %v4649_v37 }
 0x30f   : > { %v4673_v23 = vpop.eup %3064  ;;  %v1300_v39 = vsub.f32 %v5312_v10, %v1221_v18  ;;  %v1301_v16 = vsub.f32 %v5313_v24, %v1221_v18  ;;  %1468 = vadd.xlane.f32.xlu1 %v1467_v8  ;;  %v5317_v8 = vld [vmem:[#allocation63_spill] sm:$0xff]  ;;  %v5318_v10 = vld [vmem:[#allocation64_spill] sm:$0xff] }
 0x310   : > { %v4677_v35 = vpop.eup %3066 }
 0x311   : > { %3076 = vpow2.f32 %v1300_v39  ;;  %2004 = vmatprep.mubr.f32.mxu1 %v4677_v35 }
 0x312   : > { %3078 = vpow2.f32 %v1301_v16  ;;  %2005 = vmatmul.mubr.f32.gmra.mrb[46].mxu1 %v4673_v23  ;;  %1483 = vadd.xlane.f32.xlu0 %v1482_v21  ;;  %v1226_v0 = vpop.permute.xlu0 %1225  ;;  %v5319_v21 = vld [vmem:[#allocation65_spill] sm:$0xff] }
 0x313   : > { %v3069_v43 = vpop.eup %3068  ;;  %v1302_v4 = vsub.f32 %v5314_v31, %v1226_v0  ;;  %v1303_v30 = vsub.f32 %v5315_v12, %v1226_v0  ;;  %1474 = vadd.xlane.f32.xlu1 %v1473_v26  ;;  %v5320_v0 = vld [vmem:[#allocation66_spill] sm:$0xff] }
 0x314   : > { %v3071_v59 = vpop.eup %3070 }
 0x315   : > { %3080 = vpow2.f32 %v1302_v4  ;;  %2009 = vmatprep.mubr.f32.mxu1 %v3071_v59 }
 0x316   : > { %3082 = vpow2.f32 %v1303_v30  ;;  %2010 = vmatmul.mubr.f32.gmra.mrb[48].mxu1 %v3069_v43  ;;  %1489 = vadd.xlane.f32.xlu0 %v1488_v11  ;;  %v1231_v22 = vpop.permute.xlu1 %1230  ;;  %v4691_v17 = vpop.permute.xlu0 %1635  ;;  %v5321_v30 = vld [vmem:[#allocation67_spill] sm:$0xff] }
 0x317   : > { %5316 = vst [vmem:[#allocation78_spill] sm:$0xff] %v4691_v17  ;;  %v4693_v1 = vpop.eup %3072  ;;  %v1304_v18 = vsub.f32 %v5317_v8, %v1231_v22  ;;  %v1305_v39 = vsub.f32 %v5318_v10, %v1231_v22  ;;  %1480 = vadd.xlane.f32.xlu1 %v1479_v34  ;;  %v5322_v34 = vld [vmem:[#allocation68_spill] sm:$0xff] }
 0x318   : > { %v3075_v24 = vpop.eup %3074 }
 0x319   : > { %3084 = vpow2.f32 %v1304_v18  ;;  %2014 = vmatprep.mubr.f32.mxu1 %v3075_v24  ;;  %v5323_v18 = vld [vmem:[#allocation69_spill] sm:$0xff]  ;;  %v1515_v37 = vadd.f32 %v3075_v24, %v4693_v1 }
 0x31a   : > { %3086 = vpow2.f32 %v1305_v39  ;;  %2015 = vmatmul.mubr.f32.gmra.mrb[50].mxu1 %v4693_v1  ;;  %1495 = vadd.xlane.f32.xlu0 %v1494_v60  ;;  %v4702_v13 = vpop.permute.xlu1 %1640  ;;  %v1236_v61 = vpop.permute.xlu0 %1235  ;;  %v5324_v39 = vld [vmem:[#allocation70_spill] sm:$0xff]  ;;  %v5325_v1 = vsub.f32 %v4329_v54, %v4342_v20 }
 0x31b   : > { %v3077_v16 = vpop.eup %3076  ;;  %v1306_v26 = vsub.f32 %v5319_v21, %v1236_v61  ;;  %v1307_v31 = vsub.f32 %v5320_v0, %v1236_v61  ;;  %1486 = vadd.xlane.f32.xlu1 %v1485_v5  ;;  %v1512_v61 = vadd.f32 %v3071_v59, %v3069_v43  ;;  %v1509_v21 = vadd.f32 %v4677_v35, %v4673_v23 }
 0x31c   : > { %v3079_v4 = vpop.eup %3078 }
 0x31d   : > { %3088 = vpow2.f32 %v1306_v26  ;;  %2019 = vmatprep.mubr.f32.mxu1 %v3079_v4  ;;  %v1518_v58 = vadd.f32 %v3079_v4, %v3077_v16 }
 0x31e   : > { %3090 = vpow2.f32 %v1307_v31  ;;  %2020 = vmatmul.mubr.f32.gmra.mrb[52].mxu1 %v3077_v16  ;;  %1501 = vadd.xlane.f32.xlu0 %v1500_v2  ;;  %v1241_v14 = vpop.permute.xlu1 %1240  ;;  %v4710_v55 = vpop.permute.xlu0 %1650 }
 0x31f   : > { %v3081_v12 = vpop.eup %3080  ;;  %v1308_v11 = vsub.f32 %v5321_v30, %v1241_v14  ;;  %v1309_v22 = vsub.f32 %v5322_v34, %v1241_v14  ;;  %1492 = vadd.xlane.f32.xlu1 %v1491_v48 }
 0x320   : > { %v3083_v8 = vpop.eup %3082 }
 0x321   : > { %3092 = vpow2.f32 %v1308_v11  ;;  %2024 = vmatprep.mubr.f32.mxu1 %v3083_v8  ;;  %v1521_v16 = vadd.f32 %v3083_v8, %v3081_v12 }
 0x322   : > { %3094 = vpow2.f32 %v1309_v22  ;;  %2025 = vmatmul.mubr.f32.gmra.mrb[54].mxu1 %v3081_v12  ;;  %1507 = vadd.xlane.f32.xlu0 %v1506_v15  ;;  %v1246_v63 = vpop.permute.xlu0 %1245  ;;  %v4725_v23 = vpop.permute.xlu1 %1645 }
 0x323   : > { %v3085_v41 = vpop.eup %3084  ;;  %v1310_v10 = vsub.f32 %v5323_v18, %v1246_v63  ;;  %v1311_v60 = vsub.f32 %v5324_v39, %v1246_v63  ;;  %1498 = vadd.xlane.f32.xlu1 %v1497_v56 }
 0x324   : > { %v3087_v5 = vpop.eup %3086 }
 0x325   : > { %3096 = vpow2.f32 %v1310_v10  ;;  %2029 = vmatprep.mubr.f32.mxu1 %v3087_v5  ;;  %v1524_v59 = vadd.f32 %v3087_v5, %v3085_v41 }
 0x326   : > { %3098 = vpow2.f32 %v1311_v60  ;;  %2030 = vmatmul.mubr.f32.gmra.mrb[56].mxu1 %v3085_v41  ;;  %1513 = vadd.xlane.f32.xlu0 %v1512_v61  ;;  %v4727_v4 = vpop.permute.xlu0 %1660  ;;  %v4729_v48 = vpop.permute.xlu1 %1655 }
 0x327   : > { %v3089_v53 = vpop.eup %3088  ;;  %1504 = vadd.xlane.f32.xlu1 %v1503_v45  ;;  %3100 = vpow2.f32 %v5325_v1  ;;  %v1376_v1 = vld [vmem:[#allocation4] sm:$0xff] }
 0x328   : > { %v3091_v51 = vpop.eup %3090 }
 0x329   : > { %2034 = vmatprep.mubr.f32.mxu1 %v3091_v51  ;;  %v1527_v35 = vadd.f32 %v3091_v51, %v3089_v53 }
 0x32a   : > { %2035 = vmatmul.mubr.f32.gmra.mrb[58].mxu1 %v3089_v53  ;;  %1519 = vadd.xlane.f32.xlu0 %v1518_v58  ;;  %v4734_v24 = vpop.permute.xlu0 %1670  ;;  %v4736_v14 = vpop.permute.xlu1 %1665 }
 0x32b   : > { %v3093_v26 = vpop.eup %3092  ;;  %1510 = vadd.xlane.f32.xlu1 %v1509_v21  ;;  %v1377_v21 = vld [vmem:[#allocation4 + $0x8] sm:$0xff] }
 0x32c   : > { %v3095_v43 = vpop.eup %3094 }
 0x32d   : > { %2039 = vmatprep.mubr.f32.mxu1 %v3095_v43  ;;  %v1530_v31 = vadd.f32 %v3095_v43, %v3093_v26  ;;  %v1409_v43 = vmul.f32 %v4310_v28, %v1377_v21 }
 0x32e   : > { %2040 = vmatmul.mubr.f32.gmra.mrb[60].mxu1 %v3093_v26  ;;  %1525 = vadd.xlane.f32.xlu0 %v1524_v59  ;;  %v4738_v12 = vpop.permute.xlu0 %1680  ;;  %v4740_v30 = vpop.permute.xlu1 %1675 }
 0x32f   : > { %v3097_v7 = vpop.eup %3096  ;;  %1516 = vadd.xlane.f32.xlu1 %v1515_v37  ;;  %v1378_v37 = vld [vmem:[#allocation4 + $0x10] sm:$0xff] }
 0x330   : > { %v3099_v0 = vpop.eup %3098 }
 0x331   : > { %2044 = vmatprep.mubr.f32.mxu1 %v3099_v0  ;;  %v1533_v2 = vadd.f32 %v3099_v0, %v3097_v7  ;;  %v4742_v11 = vpop.eup %3100  ;;  %v1410_v0 = vmul.f32 %v4344_v52, %v1378_v37 }
 0x332   : > { %2045 = vmatmul.mubr.f32.gmra.mrb[62].mxu1 %v3097_v7  ;;  %1531 = vadd.xlane.f32.xlu0 %v1530_v31  ;;  %v4745_v34 = vpop.permute.xlu0 %1690  ;;  %v4747_v22 = vpop.permute.xlu1 %1685 }
 0x333   : > { %1522 = vadd.xlane.f32.xlu1 %v1521_v16  ;;  %v1380_v16 = vld [vmem:[#allocation4 + $0x20] sm:$0xff] }
 0x334   : > { %v1412_v28 = vmul.f32 %v4358_v49, %v1380_v16 }
 0x336   : > { %v4749_v8 = vpop.permute.xlu0 %1700  ;;  %v4751_v54 = vpop.permute.xlu1 %1695 }
 0x337   : > { %1528 = vadd.xlane.f32.xlu1 %v1527_v35 }
 0x33a   : > { %v4753_v20 = vpop.permute.xlu0 %1710  ;;  %v4755_v15 = vpop.permute.xlu1 %1705 }
 0x33b   : > { %1534 = vadd.xlane.f32.xlu1 %v1533_v2 }
 0x33e   : > { %v4757_v56 = vpop.permute.xlu0 %1720  ;;  %v4759_v63 = vpop.permute.xlu1 %1715 }
 0x342   : > { %v4761_v41 = vpop.permute.xlu0 %1730  ;;  %v4763_v18 = vpop.permute.xlu1 %1725 }
 0x346   : > { %v4765_v10 = vpop.permute.xlu0 %1740  ;;  %v4767_v39 = vpop.permute.xlu1 %1735 }
 0x348   : > { %1790 = vperm.xlu0 %2908, %v4742_v11  }
 0x34a   : > { %v4769_v60 = vpop.permute.xlu0 %1750  ;;  %v4771_v5 = vpop.permute.xlu1 %1745 }
 0x34e   : > { %v4773_v61 = vpop.permute.xlu0 %1760  ;;  %v4775_v45 = vpop.permute.xlu1 %1755 }
 0x352   : > { %v4777_v53 = vpop.permute.xlu0 %1770  ;;  %v4779_v51 = vpop.permute.xlu1 %1765 }
 0x353   : > { %5326 = vst [vmem:[#allocation77_spill] sm:$0xff] %v4777_v53  ;;  %5327 = vst [vmem:[#allocation21_spill] sm:$0xff] %v4779_v51  ;;  %v1379_v53 = vld [vmem:[#allocation4 + $0x18] sm:$0xff] }
 0x354   : > { %v1411_v16 = vmul.f32 %v4327_v6, %v1379_v53  ;;  %v1386_v53 = vld [vmem:[#allocation4 + $0x50] sm:$0xff] }
 0x356   : > { %v4781_v58 = vpop.permute.xlu0 %1780  ;;  %v4783_v26 = vpop.permute.xlu1 %1775 }
 0x357   : > { %5328 = vst [vmem:[#allocation22_spill] sm:$0xff] %v4781_v58  ;;  %5329 = vst [vmem:[#allocation23_spill] sm:$0xff] %v4783_v26  ;;  %v5331_v26 = vld [vmem:[#allocation79_spill] sm:$0xff] }
 0x35a   : > { %v4788_v35 = vpop.permute.xlu1 %1785 }
 0x35b   : > { %5330 = vst [vmem:[#allocation24_spill] sm:$0xff] %v4788_v35 }
 0x383   : > { %v1445_v59 = vpop.xlane.xlu0 %1444 }
 0x384   : > { %v1537_v7 = vadd.f32 %v1445_v59, %v1409_v43  ;;  %v1408_v43 = vmul.f32 %v5331_v26, %v1376_v1  ;;  %v1382_v59 = vld [vmem:[#allocation4 + $0x30] sm:$0xff] }
 0x385   : > { %v1414_v49 = vmul.f32 %v4372_v33, %v1382_v59 }
 0x386   : > { %1570 = vst.msk [vmem:[#allocation4 + $0x8] sm:$0xff] %vm403_vm1, %v1537_v7  ;;  %v1794_v7 = vmul.f32 0.0, %v4702_v13  ;;  %v1384_v13 = vld [vmem:[#allocation4 + $0x40] sm:$0xff] }
 0x387   : > { %v1448_v31 = vpop.xlane.xlu0 %1447  ;;  %v1416_v33 = vmul.f32 %v4386_v19, %v1384_v13  ;;  %v1418_v19 = vmul.f32 %v4400_v3, %v1386_v53 }
 0x388   : > { %v1538_v2 = vadd.f32 %v1448_v31, %v1410_v0 }
 0x389   : > { %v4790_v17 = vpop.f32.mrb[0].mxu1 }
 0x38a   : > { %1571 = vst.msk [vmem:[#allocation4 + $0x10] sm:$0xff] %vm403_vm1, %v1538_v2  ;;  %v1893_v58 = vpop.f32.mrb[1].mxu1  ;;  %v1795_v2 = vmul.f32 0.0, %v4725_v23  ;;  %v1796_v23 = vmul.f32 0.0, %v4710_v55 }
 0x38b   : > { %v1454_v21 = vpop.xlane.xlu0 %1453 }
 0x38c   : > { %v1540_v52 = vadd.f32 %v1454_v21, %v1412_v28  ;;  %v1442_v37 = vpop.xlane.xlu1 %1441  ;;  %v1381_v21 = vld [vmem:[#allocation4 + $0x28] sm:$0xff] }
 0x38d   : > { %v2150_v51 = vld [vmem:[#allocation4 + $0x8] sm:$0xff]  ;;  %v1896_v35 = vpop.f32.mrb[2].mxu1  ;;  %v1536_v0 = vadd.f32 %v1442_v37, %v1408_v43  ;;  %v1413_v6 = vmul.f32 %v4360_v44, %v1381_v21  ;;  %v1797_v21 = vmul.f32 0.0, %v4729_v48 }
 0x38e   : > { %3102 = vrcp.f32 %v2150_v51  ;;  %1573 = vst.msk [vmem:[#allocation4 + $0x20] sm:$0xff] %vm403_vm1, %v1540_v52  ;;  %v4797_v31 = vadd.f32 %v1896_v35, %v1794_v7  ;;  %v1898_v58 = vpop.f32.mrb[3].mxu1 }
 0x38f   : > { %1569 = vst.msk [vmem:[#allocation4] sm:$0xff] %vm403_vm1, %v1536_v0  ;;  %v1460_v26 = vpop.xlane.xlu0 %1459  ;;  %v1383_v0 = vld [vmem:[#allocation4 + $0x38] sm:$0xff] }
 0x390   : > { %v1542_v1 = vadd.f32 %v1460_v26, %v1414_v49  ;;  %v1451_v28 = vpop.xlane.xlu1 %1450  ;;  %v1415_v55 = vmul.f32 %v4374_v62, %v1383_v0  ;;  %v1798_v0 = vmul.f32 0.0, %v4727_v4 }
 0x391   : > { %v1901_v43 = vpop.f32.mrb[4].mxu1  ;;  %v1539_v51 = vadd.f32 %v1451_v28, %v1411_v16  ;;  %v2151_v13 = vld [vmem:[#allocation4 + $0x10] sm:$0xff] }
 0x392   : > { %1575 = vst.msk [vmem:[#allocation4 + $0x30] sm:$0xff] %vm403_vm1, %v1542_v1  ;;  %v4804_v35 = vadd.f32 %v1901_v43, %v1795_v2  ;;  %v1903_v7 = vpop.f32.mrb[5].mxu1  ;;  %v1388_v1 = vld [vmem:[#allocation4 + $0x60] sm:$0xff] }
 0x393   : > { %1572 = vst.msk [vmem:[#allocation4 + $0x18] sm:$0xff] %vm403_vm1, %v1539_v51  ;;  %v1466_v59 = vpop.xlane.xlu0 %1465  ;;  %v1385_v7 = vld [vmem:[#allocation4 + $0x48] sm:$0xff] }
 0x394   : > { %v1544_v52 = vadd.f32 %v1466_v59, %v1416_v33  ;;  %v1457_v37 = vpop.xlane.xlu1 %1456 }
 0x395   : > { %v1906_v58 = vpop.f32.mrb[6].mxu1  ;;  %v1541_v49 = vadd.f32 %v1457_v37, %v1413_v6  ;;  %v2153_v62 = vld [vmem:[#allocation4 + $0x20] sm:$0xff]  ;;  %v1390_v37 = vld [vmem:[#allocation4 + $0x70] sm:$0xff] }
 0x396   : > { %v2149_v26 = vld [vmem:[#allocation4] sm:$0xff]  ;;  %1577 = vst.msk [vmem:[#allocation4 + $0x40] sm:$0xff] %vm403_vm1, %v1544_v52  ;;  %v4811_v16 = vadd.f32 %v1906_v58, %v1796_v23  ;;  %v1908_v2 = vpop.f32.mrb[7].mxu1  ;;  %v1420_v23 = vmul.f32 %v4414_v40, %v1388_v1  ;;  %v1417_v52 = vmul.f32 %v4388_v36, %v1385_v7  ;;  %v1389_v7 = vld [vmem:[#allocation4 + $0x68] sm:$0xff] }
 0x397   : > { %3104 = vrcp.f32 %v2149_v26  ;;  %1574 = vst.msk [vmem:[#allocation4 + $0x28] sm:$0xff] %vm403_vm1, %v1541_v49  ;;  %v1472_v44 = vpop.xlane.xlu0 %1471  ;;  %v1387_v26 = vld [vmem:[#allocation4 + $0x58] sm:$0xff] }
 0x398   : > { %v3103_v28 = vpop.eup %3102  ;;  %v1546_v43 = vadd.f32 %v1472_v44, %v1418_v19  ;;  %v1463_v51 = vpop.xlane.xlu1 %1462  ;;  %3106 = vrcp.f32 %v2151_v13  ;;  %v1419_v4 = vmul.f32 %v4402_v29, %v1387_v26  ;;  %v1391_v26 = vld [vmem:[#allocation4 + $0x78] sm:$0xff] }
 0x399   : > { %v1911_v33 = vpop.f32.mrb[8].mxu1  ;;  %v1543_v59 = vadd.f32 %v1463_v51, %v1415_v55  ;;  %2252 = vperm.xlu0 %2908, %v3103_v28   ;;  %v1422_v55 = vmul.f32 %v4430_v32, %v1390_v37  ;;  %v2155_v1 = vld [vmem:[#allocation4 + $0x30] sm:$0xff]  ;;  %v1392_v28 = vld [vmem:[#allocation4 + $0x80] sm:$0xff] }
 0x39a   : > { %v2152_v6 = vld [vmem:[#allocation4 + $0x18] sm:$0xff]  ;;  %1579 = vst.msk [vmem:[#allocation4 + $0x50] sm:$0xff] %vm403_vm1, %v1546_v43  ;;  %v4818_v3 = vadd.f32 %v1911_v33, %v1797_v21  ;;  %v1913_v53 = vpop.f32.mrb[9].mxu1  ;;  %v1799_v21 = vmul.f32 0.0, %v4736_v14 }
 0x39b   : > { %3108 = vrcp.f32 %v2152_v6  ;;  %1576 = vst.msk [vmem:[#allocation4 + $0x38] sm:$0xff] %vm403_vm1, %v1543_v59  ;;  %v1478_v48 = vpop.xlane.xlu0 %1477 }
 0x39c   : > { %v1548_v58 = vadd.f32 %v1478_v48, %v1420_v23  ;;  %v1469_v49 = vpop.xlane.xlu1 %1468  ;;  %3110 = vrcp.f32 %v2153_v62  ;;  %v1424_v62 = vmul.f32 %v4448_v57, %v1392_v28  ;;  %v1421_v48 = vmul.f32 %v4418_v46, %v1389_v7  ;;  %v1393_v7 = vld [vmem:[#allocation4 + $0x88] sm:$0xff] }
 0x39d   : > { %v1916_v2 = vpop.f32.mrb[10].mxu1  ;;  %v1545_v19 = vadd.f32 %v1469_v49, %v1417_v52  ;;  %v2157_v29 = vld [vmem:[#allocation4 + $0x40] sm:$0xff]  ;;  %v1394_v52 = vld [vmem:[#allocation4 + $0x90] sm:$0xff] }
 0x39e   : > { %v2154_v13 = vld [vmem:[#allocation4 + $0x28] sm:$0xff]  ;;  %1581 = vst.msk [vmem:[#allocation4 + $0x60] sm:$0xff] %vm403_vm1, %v1548_v58  ;;  %v4825_v40 = vadd.f32 %v1916_v2, %v1798_v0  ;;  %v1918_v44 = vpop.f32.mrb[11].mxu1  ;;  %v1800_v0 = vmul.f32 0.0, %v4734_v24  ;;  %v1426_v46 = vmul.f32 %v4465_v47, %v1394_v52  ;;  %v1802_v52 = vmul.f32 0.0, %v4738_v12 }
 0x39f   : > { %3112 = vrcp.f32 %v2154_v13  ;;  %1578 = vst.msk [vmem:[#allocation4 + $0x48] sm:$0xff] %vm403_vm1, %v1545_v19  ;;  %v1484_v36 = vpop.xlane.xlu0 %1483 }
 0x3a0   : > { %v1550_v43 = vadd.f32 %v1484_v36, %v1422_v55  ;;  %v1475_v51 = vpop.xlane.xlu1 %1474  ;;  %3114 = vrcp.f32 %v2155_v1  ;;  %v1423_v36 = vmul.f32 %v4434_v38, %v1391_v26 }
 0x3a1   : > { %v3105_v33 = vpop.eup %3104  ;;  %v1921_v59 = vpop.f32.mrb[12].mxu1  ;;  %v1547_v6 = vadd.f32 %v1475_v51, %v1419_v4  ;;  %v2159_v1 = vld [vmem:[#allocation4 + $0x50] sm:$0xff]  ;;  %v1396_v4 = vld [vmem:[#allocation4 + $0xa0] sm:$0xff] }
 0x3a2   : > { %v2156_v53 = vld [vmem:[#allocation4 + $0x38] sm:$0xff]  ;;  %1583 = vst.msk [vmem:[#allocation4 + $0x70] sm:$0xff] %vm403_vm1, %v1550_v43  ;;  %v4832_v32 = vadd.f32 %v1921_v59, %v1799_v21  ;;  %v1923_v23 = vpop.f32.mrb[13].mxu1  ;;  %2247 = vperm.xlu1 %2909, %v3105_v33   ;;  %v3107_v37 = vpop.eup %3106  ;;  %v1801_v21 = vmul.f32 0.0, %v4740_v30  ;;  %v1428_v38 = vmul.f32 %v4479_v25, %v1396_v4 }
 0x3a3   : > { %3116 = vrcp.f32 %v2156_v53  ;;  %1580 = vst.msk [vmem:[#allocation4 + $0x58] sm:$0xff] %vm403_vm1, %v1547_v6  ;;  %v1490_v14 = vpop.xlane.xlu0 %1489 }
 0x3a4   : > { %v1552_v58 = vadd.f32 %v1490_v14, %v1424_v62  ;;  %v1481_v49 = vpop.xlane.xlu1 %1480  ;;  %3118 = vrcp.f32 %v2157_v29  ;;  %v1425_v29 = vmul.f32 %v4452_v9, %v1393_v7  ;;  %v1398_v14 = vld [vmem:[#allocation4 + $0xb0] sm:$0xff] }
 0x3a5   : > { %v3109_v2 = vpop.eup %3108  ;;  %v1926_v19 = vpop.f32.mrb[14].mxu1  ;;  %v1549_v13 = vadd.f32 %v1481_v49, %v1421_v48  ;;  %v2161_v62 = vld [vmem:[#allocation4 + $0x60] sm:$0xff]  ;;  %v1430_v9 = vmul.f32 %v4493_v27, %v1398_v14  ;;  %v1399_v14 = vld [vmem:[#allocation4 + $0xb8] sm:$0xff] }
 0x3a6   : > { %v2158_v44 = vld [vmem:[#allocation4 + $0x48] sm:$0xff]  ;;  %1585 = vst.msk [vmem:[#allocation4 + $0x80] sm:$0xff] %vm403_vm1, %v1552_v58  ;;  %v4839_v57 = vadd.f32 %v1926_v19, %v1800_v0  ;;  %v1928_v55 = vpop.f32.mrb[15].mxu1  ;;  %2262 = vperm.xlu0 %2908, %v3109_v2   ;;  %2257 = vperm.xlu1 %2909, %v3107_v37   ;;  %v3111_v28 = vpop.eup %3110  ;;  %v1395_v58 = vld [vmem:[#allocation4 + $0x98] sm:$0xff] }
 0x3a7   : > { %3120 = vrcp.f32 %v2158_v44  ;;  %1582 = vst.msk [vmem:[#allocation4 + $0x68] sm:$0xff] %vm403_vm1, %v1549_v13  ;;  %v1496_v24 = vpop.xlane.xlu0 %1495  ;;  %v1427_v55 = vmul.f32 %v4469_v42, %v1395_v58 }
 0x3a8   : > { %v1554_v43 = vadd.f32 %v1496_v24, %v1426_v46  ;;  %v1487_v51 = vpop.xlane.xlu1 %1486  ;;  %3122 = vrcp.f32 %v2159_v1  ;;  %v1400_v46 = vld [vmem:[#allocation4 + $0xc0] sm:$0xff]  ;;  %v1803_v24 = vmul.f32 0.0, %v4747_v22 }
 0x3a9   : > { %v3113_v33 = vpop.eup %3112  ;;  %v1931_v59 = vpop.f32.mrb[16].mxu1  ;;  %v1551_v6 = vadd.f32 %v1487_v51, %v1423_v36  ;;  %v2163_v44 = vld [vmem:[#allocation4 + $0x70] sm:$0xff]  ;;  %v1432_v42 = vmul.f32 %v4509_v50, %v1400_v46 }
 0x3aa   : > { %v2160_v53 = vld [vmem:[#allocation4 + $0x58] sm:$0xff]  ;;  %1587 = vst.msk [vmem:[#allocation4 + $0x90] sm:$0xff] %vm403_vm1, %v1554_v43  ;;  %v4846_v47 = vadd.f32 %v1931_v59, %v1801_v21  ;;  %v1933_v23 = vpop.f32.mrb[17].mxu1  ;;  %2272 = vperm.xlu0 %2908, %v3113_v33   ;;  %2267 = vperm.xlu1 %2909, %v3111_v28   ;;  %v3115_v48 = vpop.eup %3114  ;;  %v1397_v28 = vld [vmem:[#allocation4 + $0xa8] sm:$0xff] }
 0x3ab   : > { %3124 = vrcp.f32 %v2160_v53  ;;  %1584 = vst.msk [vmem:[#allocation4 + $0x78] sm:$0xff] %vm403_vm1, %v1551_v6  ;;  %v1502_v30 = vpop.xlane.xlu0 %1501  ;;  %v5332_v6 = vld [vmem:[#allocation71_spill] sm:$0xff]  ;;  %v1402_v23 = vld [vmem:[#allocation4 + $0xd0] sm:$0xff] }
 0x3ac   : > { %v1556_v37 = vadd.f32 %v1502_v30, %v1428_v38  ;;  %v1493_v0 = vpop.xlane.xlu1 %1492  ;;  %3126 = vrcp.f32 %v2161_v62  ;;  %v1429_v53 = vmul.f32 %v5332_v6, %v1397_v28  ;;  %v1804_v62 = vmul.f32 0.0, %v4745_v34 }
 0x3ad   : > { %v3117_v49 = vpop.eup %3116  ;;  %v1936_v26 = vpop.f32.mrb[18].mxu1  ;;  %v1553_v2 = vadd.f32 %v1493_v0, %v1425_v29  ;;  %v2165_v59 = vld [vmem:[#allocation4 + $0x80] sm:$0xff] }
 0x3ae   : > { %v2162_v19 = vld [vmem:[#allocation4 + $0x68] sm:$0xff]  ;;  %1589 = vst.msk [vmem:[#allocation4 + $0xa0] sm:$0xff] %vm403_vm1, %v1556_v37  ;;  %v4853_v25 = vadd.f32 %v1936_v26, %v1802_v52  ;;  %v1938_v13 = vpop.f32.mrb[19].mxu1  ;;  %2282 = vperm.xlu0 %2908, %v3117_v49   ;;  %2277 = vperm.xlu1 %2909, %v3115_v48   ;;  %v3119_v1 = vpop.eup %3118  ;;  %v5333_v49 = vld [vmem:[#allocation73_spill] sm:$0xff] }
 0x3af   : > { %3128 = vrcp.f32 %v2162_v19  ;;  %1586 = vst.msk [vmem:[#allocation4 + $0x88] sm:$0xff] %vm403_vm1, %v1553_v2  ;;  %v1508_v12 = vpop.xlane.xlu0 %1507  ;;  %v1434_v26 = vmul.f32 %v5333_v49, %v1402_v23  ;;  %v5334_v19 = vld [vmem:[#allocation74_spill] sm:$0xff] }
 0x3b0   : > { %v1558_v36 = vadd.f32 %v1508_v12, %v1430_v9  ;;  %v1499_v4 = vpop.xlane.xlu1 %1498  ;;  %3130 = vrcp.f32 %v2163_v44  ;;  %v1431_v13 = vmul.f32 %v5334_v19, %v1399_v14  ;;  %v1404_v9 = vld [vmem:[#allocation4 + $0xe0] sm:$0xff]  ;;  %v1805_v12 = vmul.f32 0.0, %v4751_v54 }
 0x3b1   : > { %v3121_v21 = vpop.eup %3120  ;;  %v1941_v43 = vpop.f32.mrb[20].mxu1  ;;  %v1555_v51 = vadd.f32 %v1499_v4, %v1427_v55  ;;  %v2167_v2 = vld [vmem:[#allocation4 + $0x90] sm:$0xff]  ;;  %v1807_v19 = vmul.f32 0.0, %v4755_v15  ;;  %v5339_v15 = vld [vmem:[#allocation19_spill] sm:$0xff] }
 0x3b2   : > { %v2164_v7 = vld [vmem:[#allocation4 + $0x78] sm:$0xff]  ;;  %1591 = vst.msk [vmem:[#allocation4 + $0xb0] sm:$0xff] %vm403_vm1, %v1558_v36  ;;  %v4860_v27 = vadd.f32 %v1941_v43, %v1803_v24  ;;  %v1943_v33 = vpop.f32.mrb[21].mxu1  ;;  %2292 = vperm.xlu0 %2908, %v3121_v21   ;;  %2287 = vperm.xlu1 %2909, %v3119_v1   ;;  %v3123_v38 = vpop.eup %3122  ;;  %v1401_v1 = vld [vmem:[#allocation4 + $0xc8] sm:$0xff] }
 0x3b3   : > { %3132 = vrcp.f32 %v2164_v7  ;;  %1588 = vst.msk [vmem:[#allocation4 + $0x98] sm:$0xff] %vm403_vm1, %v1555_v51  ;;  %v1514_v22 = vpop.xlane.xlu0 %1513  ;;  %v5335_v51 = vld [vmem:[#allocation75_spill] sm:$0xff] }
 0x3b4   : > { %v1560_v30 = vadd.f32 %v1514_v22, %v1432_v42  ;;  %v1505_v29 = vpop.xlane.xlu1 %1504  ;;  %3134 = vrcp.f32 %v2165_v59  ;;  %v1436_v7 = vmul.f32 %v5335_v51, %v1404_v9  ;;  %v5336_v42 = vld [vmem:[#allocation72_spill] sm:$0xff]  ;;  %v1406_v22 = vld [vmem:[#allocation4 + $0xf0] sm:$0xff]  ;;  %v1808_v51 = vmul.f32 0.0, %v4753_v20 }
 0x3b5   : > { %v3125_v48 = vpop.eup %3124  ;;  %v1946_v52 = vpop.f32.mrb[22].mxu1  ;;  %v1557_v37 = vadd.f32 %v1505_v29, %v1429_v53  ;;  %v2169_v33 = vld [vmem:[#allocation4 + $0xa0] sm:$0xff]  ;;  %v1433_v59 = vmul.f32 %v5336_v42, %v1401_v1  ;;  %v1806_v53 = vmul.f32 0.0, %v4749_v8  ;;  %v1809_v20 = vmul.f32 0.0, %v4759_v63 }
 0x3b6   : > { %v2166_v0 = vld [vmem:[#allocation4 + $0x88] sm:$0xff]  ;;  %1593 = vst.msk [vmem:[#allocation4 + $0xc0] sm:$0xff] %vm403_vm1, %v1560_v30  ;;  %v4867_v50 = vadd.f32 %v1946_v52, %v1804_v62  ;;  %v1948_v58 = vpop.f32.mrb[23].mxu1  ;;  %2302 = vperm.xlu0 %2908, %v3125_v48   ;;  %2297 = vperm.xlu1 %2909, %v3123_v38   ;;  %v3127_v44 = vpop.eup %3126  ;;  %v1403_v62 = vld [vmem:[#allocation4 + $0xd8] sm:$0xff] }
 0x3b7   : > { %3136 = vrcp.f32 %v2166_v0  ;;  %1590 = vst.msk [vmem:[#allocation4 + $0xa8] sm:$0xff] %vm403_vm1, %v1557_v37  ;;  %v1520_v34 = vpop.xlane.xlu0 %1519  ;;  %v5337_v0 = vld [vmem:[#allocation20_spill] sm:$0xff] }
 0x3b8   : > { %v1562_v55 = vadd.f32 %v1520_v34, %v1434_v26  ;;  %v1511_v46 = vpop.xlane.xlu1 %1510  ;;  %3138 = vrcp.f32 %v2167_v2  ;;  %v1438_v58 = vmul.f32 %v5337_v0, %v1406_v22  ;;  %v5338_v26 = vld [vmem:[#allocation76_spill] sm:$0xff] }
 0x3b9   : > { %v3129_v24 = vpop.eup %3128  ;;  %v1951_v36 = vpop.f32.mrb[24].mxu1  ;;  %v1559_v4 = vadd.f32 %v1511_v46, %v1431_v13  ;;  %v2171_v49 = vld [vmem:[#allocation4 + $0xb0] sm:$0xff]  ;;  %v1435_v2 = vmul.f32 %v5338_v26, %v1403_v62 }
 0x3ba   : > { %v2168_v28 = vld [vmem:[#allocation4 + $0x98] sm:$0xff]  ;;  %1595 = vst.msk [vmem:[#allocation4 + $0xd0] sm:$0xff] %vm403_vm1, %v1562_v55  ;;  %v4874_v21 = vadd.f32 %v1951_v36, %v1805_v12  ;;  %v1953_v43 = vpop.f32.mrb[25].mxu1  ;;  %2312 = vperm.xlu0 %2908, %v3129_v24   ;;  %2307 = vperm.xlu1 %2909, %v3127_v44   ;;  %v3131_v6 = vpop.eup %3130  ;;  %v1405_v44 = vld [vmem:[#allocation4 + $0xe8] sm:$0xff] }
 0x3bb   : > { %3140 = vrcp.f32 %v2168_v28  ;;  %1592 = vst.msk [vmem:[#allocation4 + $0xb8] sm:$0xff] %vm403_vm1, %v1559_v4  ;;  %v1526_v54 = vpop.xlane.xlu0 %1525  ;;  %v1437_v28 = vmul.f32 %v5339_v15, %v1405_v44  ;;  %v1811_v44 = vmul.f32 0.0, %v4763_v18 }
 0x3bc   : > { %v1564_v23 = vadd.f32 %v1526_v54, %v1436_v7  ;;  %v1517_v38 = vpop.xlane.xlu1 %1516  ;;  %3142 = vrcp.f32 %v2169_v33  ;;  %v1407_v33 = vld [vmem:[#allocation4 + $0xf8] sm:$0xff] }
 0x3bd   : > { %v3133_v30 = vpop.eup %3132  ;;  %v1956_v29 = vpop.f32.mrb[26].mxu1  ;;  %v1561_v14 = vadd.f32 %v1517_v38, %v1433_v59  ;;  %v2173_v4 = vld [vmem:[#allocation4 + $0xc0] sm:$0xff]  ;;  %v1439_v38 = vmul.f32 %v4742_v11, %v1407_v33  ;;  %v1810_v11 = vmul.f32 0.0, %v4757_v56 }
 0x3be   : > { %v2170_v48 = vld [vmem:[#allocation4 + $0xa8] sm:$0xff]  ;;  %1597 = vst.msk [vmem:[#allocation4 + $0xe0] sm:$0xff] %vm403_vm1, %v1564_v23  ;;  %v4881_v52 = vadd.f32 %v1956_v29, %v1806_v53  ;;  %v1958_v37 = vpop.f32.mrb[27].mxu1  ;;  %2322 = vperm.xlu0 %2908, %v3133_v30   ;;  %2317 = vperm.xlu1 %2909, %v3131_v6   ;;  %v3135_v34 = vpop.eup %3134 }
 0x3bf   : > { %3144 = vrcp.f32 %v2170_v48  ;;  %1594 = vst.msk [vmem:[#allocation4 + $0xc8] sm:$0xff] %vm403_vm1, %v1561_v14  ;;  %v1532_v8 = vpop.xlane.xlu0 %1531 }
 0x3c0   : > { %v1566_v13 = vadd.f32 %v1532_v8, %v1438_v58  ;;  %v1523_v9 = vpop.xlane.xlu1 %1522  ;;  %3146 = vrcp.f32 %v2171_v49 }
 0x3c1   : > { %v3137_v12 = vpop.eup %3136  ;;  %v1961_v55 = vpop.f32.mrb[28].mxu1  ;;  %v1563_v46 = vadd.f32 %v1523_v9, %v1435_v2  ;;  %v2175_v23 = vld [vmem:[#allocation4 + $0xd0] sm:$0xff] }
 0x3c2   : > { %v2172_v1 = vld [vmem:[#allocation4 + $0xb8] sm:$0xff]  ;;  %1599 = vst.msk [vmem:[#allocation4 + $0xf0] sm:$0xff] %vm403_vm1, %v1566_v13  ;;  %v4888_v24 = vadd.f32 %v1961_v55, %v1807_v19  ;;  %v1963_v36 = vpop.f32.mrb[29].mxu1  ;;  %2332 = vperm.xlu0 %2908, %v3137_v12   ;;  %2327 = vperm.xlu1 %2909, %v3135_v34   ;;  %v3139_v43 = vpop.eup %3138 }
 0x3c3   : > { %3148 = vrcp.f32 %v2172_v1  ;;  %1596 = vst.msk [vmem:[#allocation4 + $0xd8] sm:$0xff] %vm403_vm1, %v1563_v46 }
 0x3c4   : > { %v1529_v7 = vpop.xlane.xlu1 %1528  ;;  %3150 = vrcp.f32 %v2173_v4  ;;  %v1812_v4 = vmul.f32 0.0, %v4761_v41  ;;  %v1814_v41 = vmul.f32 0.0, %v4765_v10  ;;  %v1817_v10 = vmul.f32 0.0, %v4775_v45 }
 0x3c5   : > { %v3141_v54 = vpop.eup %3140  ;;  %v1966_v42 = vpop.f32.mrb[30].mxu1  ;;  %v1565_v59 = vadd.f32 %v1529_v7, %v1437_v28  ;;  %v2177_v49 = vld [vmem:[#allocation4 + $0xe0] sm:$0xff]  ;;  %v1813_v7 = vmul.f32 0.0, %v4767_v39 }
 0x3c6   : > { %v2174_v22 = vld [vmem:[#allocation4 + $0xc8] sm:$0xff]  ;;  %v4893_v6 = vadd.f32 %v1966_v42, %v1808_v51  ;;  %v1968_v53 = vpop.f32.mrb[31].mxu1  ;;  %2342 = vperm.xlu0 %2908, %v3141_v54   ;;  %2337 = vperm.xlu1 %2909, %v3139_v43   ;;  %v3143_v62 = vpop.eup %3142 }
 0x3c7   : > { %3152 = vrcp.f32 %v2174_v22  ;;  %1598 = vst.msk [vmem:[#allocation4 + $0xe8] sm:$0xff] %vm403_vm1, %v1565_v59 }
 0x3c8   : > { %v1535_v30 = vpop.xlane.xlu1 %1534  ;;  %3154 = vrcp.f32 %v2175_v23 }
 0x3c9   : > { %v3145_v29 = vpop.eup %3144  ;;  %v1971_v14 = vpop.f32.mrb[32].mxu1  ;;  %v1567_v48 = vadd.f32 %v1535_v30, %v1439_v38  ;;  %v2179_v13 = vld [vmem:[#allocation4 + $0xf0] sm:$0xff] }
 0x3ca   : > { %v2176_v37 = vld [vmem:[#allocation4 + $0xd8] sm:$0xff]  ;;  %v4898_v0 = vadd.f32 %v1971_v14, %v1809_v20  ;;  %v1973_v58 = vpop.f32.mrb[33].mxu1  ;;  %2352 = vperm.xlu0 %2908, %v3145_v29   ;;  %2347 = vperm.xlu1 %2909, %v3143_v62   ;;  %v3147_v8 = vpop.eup %3146  ;;  %v1815_v20 = vmul.f32 0.0, %v4771_v5  ;;  %v1816_v14 = vmul.f32 0.0, %v4769_v60 }
 0x3cb   : > { %3156 = vrcp.f32 %v2176_v37  ;;  %1600 = vst.msk [vmem:[#allocation4 + $0xf8] sm:$0xff] %vm403_vm1, %v1567_v48 }
 0x3cc   : > { %3158 = vrcp.f32 %v2177_v49 }
 0x3cd   : > { %v3149_v26 = vpop.eup %3148  ;;  %v1976_v63 = vpop.f32.mrb[34].mxu1 }
 0x3ce   : > { %v2178_v2 = vld [vmem:[#allocation4 + $0xe8] sm:$0xff]  ;;  %v4902_v34 = vadd.f32 %v1976_v63, %v1810_v11  ;;  %v1978_v19 = vpop.f32.mrb[35].mxu1  ;;  %2362 = vperm.xlu0 %2908, %v3149_v26   ;;  %2357 = vperm.xlu1 %2909, %v3147_v8   ;;  %v3151_v9 = vpop.eup %3150  ;;  %v1818_v26 = vmul.f32 0.0, %v4773_v61 }
 0x3cf   : > { %3160 = vrcp.f32 %v2178_v2  ;;  %v5340_v19 = vld [vmem:[#allocation21_spill] sm:$0xff] }
 0x3d0   : > { %3162 = vrcp.f32 %v2179_v13  ;;  %v1819_v13 = vmul.f32 0.0, %v5340_v19 }
 0x3d1   : > { %v3153_v12 = vpop.eup %3152  ;;  %v1981_v55 = vpop.f32.mrb[36].mxu1 }
 0x3d2   : > { %v2180_v46 = vld [vmem:[#allocation4 + $0xf8] sm:$0xff]  ;;  %v4905_v1 = vadd.f32 %v1981_v55, %v1811_v44  ;;  %v1983_v56 = vpop.f32.mrb[37].mxu1  ;;  %2372 = vperm.xlu0 %2908, %v3153_v12   ;;  %2367 = vperm.xlu1 %2909, %v3151_v9   ;;  %v3155_v36 = vpop.eup %3154  ;;  %v5341_v12 = vld [vmem:[#allocation77_spill] sm:$0xff] }
 0x3d3   : > { %3164 = vrcp.f32 %v2180_v46  ;;  %v1820_v55 = vmul.f32 0.0, %v5341_v12 }
 0x3d5   : > { %v3157_v15 = vpop.eup %3156  ;;  %v1986_v28 = vpop.f32.mrb[38].mxu1 }
 0x3d6   : > { %v4908_v43 = vadd.f32 %v1986_v28, %v1812_v4  ;;  %v1988_v51 = vpop.f32.mrb[39].mxu1  ;;  %2382 = vperm.xlu0 %2908, %v3157_v15   ;;  %2377 = vperm.xlu1 %2909, %v3155_v36   ;;  %v3159_v18 = vpop.eup %3158  ;;  %v5342_v36 = vld [vmem:[#allocation23_spill] sm:$0xff] }
 0x3d7   : > { %v1821_v4 = vmul.f32 0.0, %v5342_v36  ;;  %v5343_v51 = vld [vmem:[#allocation22_spill] sm:$0xff] }
 0x3d9   : > { %v3161_v33 = vpop.eup %3160  ;;  %v1991_v54 = vpop.f32.mrb[40].mxu1 }
 0x3da   : > { %v4911_v42 = vadd.f32 %v1991_v54, %v1813_v7  ;;  %v1993_v59 = vpop.f32.mrb[41].mxu1  ;;  %2392 = vperm.xlu0 %2908, %v3161_v33   ;;  %2387 = vperm.xlu1 %2909, %v3159_v18   ;;  %v3163_v22 = vpop.eup %3162  ;;  %v1822_v18 = vmul.f32 0.0, %v5343_v51 }
 0x3db   : > { %v5344_v59 = vld [vmem:[#allocation24_spill] sm:$0xff] }
 0x3dd   : > { %v3165_v53 = vpop.eup %3164  ;;  %v1996_v23 = vpop.f32.mrb[42].mxu1 }
 0x3de   : > { %v4914_v38 = vadd.f32 %v1996_v23, %v1814_v41  ;;  %v1998_v62 = vpop.f32.mrb[43].mxu1  ;;  %2402 = vperm.xlu0 %2908, %v3165_v53   ;;  %2397 = vperm.xlu1 %2909, %v3163_v22   ;;  %v1823_v22 = vmul.f32 0.0, %v5344_v59 }
 0x3e1   : > { %v2001_v39 = vpop.f32.mrb[44].mxu1 }
 0x3e2   : > { %v4917_v30 = vadd.f32 %v2001_v39, %v1815_v20  ;;  %v2003_v29 = vpop.f32.mrb[45].mxu1  ;;  %v4945_v39 = vpop.permute.xlu0 %1790 }
 0x3e5   : > { %v2006_v48 = vpop.f32.mrb[46].mxu1 }
 0x3e6   : > { %v4920_v37 = vadd.f32 %v2006_v48, %v1816_v14  ;;  %v2008_v58 = vpop.f32.mrb[47].mxu1  ;;  %v5345_v48 = vld [vmem:[#allocation78_spill] sm:$0xff] }
 0x3e7   : > { %v1793_v58 = vmul.f32 0.0, %v5345_v48 }
 0x3e9   : > { %v2011_v49 = vpop.f32.mrb[48].mxu1 }
 0x3ea   : > { %v4923_v8 = vadd.f32 %v2011_v49, %v1817_v10  ;;  %v2013_v11 = vpop.f32.mrb[49].mxu1  ;;  %v2050_v10 = vadd.f32 %v4790_v17, %v1793_v58 }
 0x3ed   : > { %v2016_v63 = vpop.f32.mrb[50].mxu1 }
 0x3ee   : > { %v4926_v5 = vadd.f32 %v2016_v63, %v1818_v26  ;;  %v2018_v2 = vpop.f32.mrb[51].mxu1 }
 0x3f1   : > { %v2021_v9 = vpop.f32.mrb[52].mxu1 }
 0x3f2   : > { %v4929_v60 = vadd.f32 %v2021_v9, %v1819_v13  ;;  %v2023_v44 = vpop.f32.mrb[53].mxu1 }
 0x3f5   : > { %v2026_v46 = vpop.f32.mrb[54].mxu1 }
 0x3f6   : > { %v4932_v45 = vadd.f32 %v2026_v46, %v1820_v55  ;;  %v2028_v56 = vpop.f32.mrb[55].mxu1 }
 0x3f9   : > { %v2031_v15 = vpop.f32.mrb[56].mxu1 }
 0x3fa   : > { %v4935_v61 = vadd.f32 %v2031_v15, %v1821_v4  ;;  %v2033_v28 = vpop.f32.mrb[57].mxu1 }
 0x3fd   : > { %v2036_v7 = vpop.f32.mrb[58].mxu1 }
 0x3fe   : > { %v4938_v33 = vadd.f32 %v2036_v7, %v1822_v18  ;;  %v2038_v54 = vpop.f32.mrb[59].mxu1 }
 0x401   : > { %v2041_v41 = vpop.f32.mrb[60].mxu1 }
 0x402   : > { %v4941_v53 = vadd.f32 %v2041_v41, %v1823_v22  ;;  %v2043_v23 = vpop.f32.mrb[61].mxu1 }
 0x405   : > { %v4943_v62 = vpop.f32.mrb[62].mxu1 }
 0x406   : > { %v2048_v20 = vpop.f32.mrb[63].mxu1 }
 0x418   : > { %v2253_v29 = vpop.permute.xlu0 %2252 }
 0x419   : > { %v2406_v14 = vmul.f32 %v2253_v29, %v4797_v31 }
 0x41b   : > { %2438 = vst [vmem:[%s4949_s24 + $0x8] sm:$0xff] %v2406_v14 }
 0x421   : > { %v2248_v49 = vpop.permute.xlu1 %2247 }
 0x422   : > { %v2405_v11 = vmul.f32 %v2248_v49, %v2050_v10 }
 0x424   : > { %2437 = vst [vmem:[%s4949_s24] sm:$0xff] %v2405_v11 }
 0x425   : > { %v2258_v26 = vpop.permute.xlu1 %2257  ;;  %v2263_v63 = vpop.permute.xlu0 %2262 }
 0x426   : > { %v2407_v31 = vmul.f32 %v2258_v26, %v4804_v35  ;;  %v2408_v2 = vmul.f32 %v2263_v63, %v4811_v16 }
 0x428   : > { %2439 = vst [vmem:[%s4949_s24 + $0x10] sm:$0xff] %v2407_v31  ;;  %2440 = vst [vmem:[%s4949_s24 + $0x18] sm:$0xff] %v2408_v2 }
 0x429   : > { %v2268_v19 = vpop.permute.xlu1 %2267  ;;  %v2273_v13 = vpop.permute.xlu0 %2272 }
 0x42a   : > { %v2409_v9 = vmul.f32 %v2268_v19, %v4818_v3  ;;  %v2410_v17 = vmul.f32 %v2273_v13, %v4825_v40 }
 0x42c   : > { %2441 = vst [vmem:[%s4949_s24 + $0x20] sm:$0xff] %v2409_v9  ;;  %2442 = vst [vmem:[%s4949_s24 + $0x28] sm:$0xff] %v2410_v17 }
 0x42d   : > { %v2278_v44 = vpop.permute.xlu1 %2277  ;;  %v2283_v12 = vpop.permute.xlu0 %2282 }
 0x42e   : > { %v2411_v35 = vmul.f32 %v2278_v44, %v4832_v32  ;;  %v2412_v16 = vmul.f32 %v2283_v12, %v4839_v57 }
 0x430   : > { %2443 = vst [vmem:[%s4949_s24 + $0x30] sm:$0xff] %v2411_v35  ;;  %2444 = vst [vmem:[%s4949_s24 + $0x38] sm:$0xff] %v2412_v16 }
 0x431   : > { %v2288_v55 = vpop.permute.xlu1 %2287  ;;  %v2293_v46 = vpop.permute.xlu0 %2292 }
 0x432   : > { %v2413_v3 = vmul.f32 %v2288_v55, %v4846_v47  ;;  %v2414_v40 = vmul.f32 %v2293_v46, %v4853_v25 }
 0x434   : > { %2445 = vst [vmem:[%s4949_s24 + $0x40] sm:$0xff] %v2413_v3  ;;  %2446 = vst [vmem:[%s4949_s24 + $0x48] sm:$0xff] %v2414_v40 }
 0x435   : > { %v2298_v56 = vpop.permute.xlu1 %2297  ;;  %v2303_v36 = vpop.permute.xlu0 %2302 }
 0x436   : > { %v2415_v32 = vmul.f32 %v2298_v56, %v4860_v27  ;;  %v2416_v57 = vmul.f32 %v2303_v36, %v4867_v50 }
 0x438   : > { %2447 = vst [vmem:[%s4949_s24 + $0x50] sm:$0xff] %v2415_v32  ;;  %2448 = vst [vmem:[%s4949_s24 + $0x58] sm:$0xff] %v2416_v57 }
 0x439   : > { %v2308_v4 = vpop.permute.xlu1 %2307  ;;  %v2313_v15 = vpop.permute.xlu0 %2312 }
 0x43a   : > { %v2417_v47 = vmul.f32 %v2308_v4, %v4874_v21  ;;  %v2418_v25 = vmul.f32 %v2313_v15, %v4881_v52 }
 0x43c   : > { %2449 = vst [vmem:[%s4949_s24 + $0x60] sm:$0xff] %v2417_v47  ;;  %2450 = vst [vmem:[%s4949_s24 + $0x68] sm:$0xff] %v2418_v25 }
 0x43d   : > { %v2318_v28 = vpop.permute.xlu1 %2317  ;;  %v2323_v51 = vpop.permute.xlu0 %2322 }
 0x43e   : > { %v2419_v27 = vmul.f32 %v2318_v28, %v4888_v24  ;;  %v2420_v50 = vmul.f32 %v2323_v51, %v4893_v6 }
 0x440   : > { %2451 = vst [vmem:[%s4949_s24 + $0x70] sm:$0xff] %v2419_v27  ;;  %2452 = vst [vmem:[%s4949_s24 + $0x78] sm:$0xff] %v2420_v50 }
 0x441   : > { %v2328_v18 = vpop.permute.xlu1 %2327  ;;  %v2333_v7 = vpop.permute.xlu0 %2332 }
 0x442   : > { %v2421_v21 = vmul.f32 %v2328_v18, %v4898_v0  ;;  %v2422_v52 = vmul.f32 %v2333_v7, %v4902_v34 }
 0x444   : > { %2453 = vst [vmem:[%s4949_s24 + $0x80] sm:$0xff] %v2421_v21  ;;  %2454 = vst [vmem:[%s4949_s24 + $0x88] sm:$0xff] %v2422_v52 }
 0x445   : > { %v2338_v54 = vpop.permute.xlu1 %2337  ;;  %v2343_v59 = vpop.permute.xlu0 %2342 }
 0x446   : > { %v2423_v24 = vmul.f32 %v2338_v54, %v4905_v1  ;;  %v2424_v6 = vmul.f32 %v2343_v59, %v4908_v43 }
 0x448   : > { %2455 = vst [vmem:[%s4949_s24 + $0x90] sm:$0xff] %v2423_v24  ;;  %2456 = vst [vmem:[%s4949_s24 + $0x98] sm:$0xff] %v2424_v6 }
 0x449   : > { %v2348_v22 = vpop.permute.xlu1 %2347  ;;  %v2353_v41 = vpop.permute.xlu0 %2352 }
 0x44a   : > { %v2425_v0 = vmul.f32 %v2348_v22, %v4911_v42  ;;  %v2426_v34 = vmul.f32 %v2353_v41, %v4914_v38 }
 0x44c   : > { %2457 = vst [vmem:[%s4949_s24 + $0xa0] sm:$0xff] %v2425_v0  ;;  %2458 = vst [vmem:[%s4949_s24 + $0xa8] sm:$0xff] %v2426_v34 }
 0x44d   : > { %v2358_v23 = vpop.permute.xlu1 %2357  ;;  %v2363_v20 = vpop.permute.xlu0 %2362 }
 0x44e   : > { %v2427_v1 = vmul.f32 %v2358_v23, %v4917_v30  ;;  %v2428_v43 = vmul.f32 %v2363_v20, %v4920_v37 }
 0x450   : > { %2459 = vst [vmem:[%s4949_s24 + $0xb0] sm:$0xff] %v2427_v1  ;;  %2460 = vst [vmem:[%s4949_s24 + $0xb8] sm:$0xff] %v2428_v43 }
 0x451   : > { %v2368_v29 = vpop.permute.xlu1 %2367  ;;  %v2373_v14 = vpop.permute.xlu0 %2372 }
 0x452   : > { %v2429_v48 = vmul.f32 %v2368_v29, %v4923_v8  ;;  %v2430_v42 = vmul.f32 %v2373_v14, %v4926_v5  ;;  %v1824_v8 = vmul.f32 0.0, %v4945_v39 }
 0x454   : > { %2461 = vst [vmem:[%s4949_s24 + $0xc0] sm:$0xff] %v2429_v48  ;;  %2462 = vst [vmem:[%s4949_s24 + $0xc8] sm:$0xff] %v2430_v42 }
 0x455   : > { %v2378_v38 = vpop.permute.xlu1 %2377  ;;  %v2383_v58 = vpop.permute.xlu0 %2382 }
 0x456   : > { %v2431_v30 = vmul.f32 %v2378_v38, %v4929_v60  ;;  %v2432_v37 = vmul.f32 %v2383_v58, %v4932_v45  ;;  %v2081_v60 = vadd.f32 %v4943_v62, %v1824_v8 }
 0x458   : > { %2463 = vst [vmem:[%s4949_s24 + $0xd0] sm:$0xff] %v2431_v30  ;;  %2464 = vst [vmem:[%s4949_s24 + $0xd8] sm:$0xff] %v2432_v37 }
 0x459   : > { %v2388_v10 = vpop.permute.xlu1 %2387  ;;  %v2393_v49 = vpop.permute.xlu0 %2392 }
 0x45a   : > { %v2433_v5 = vmul.f32 %v2388_v10, %v4935_v61  ;;  %v2434_v11 = vmul.f32 %v2393_v49, %v4938_v33 }
 0x45c   : > { %2465 = vst [vmem:[%s4949_s24 + $0xe0] sm:$0xff] %v2433_v5  ;;  %2466 = vst [vmem:[%s4949_s24 + $0xe8] sm:$0xff] %v2434_v11 }
 0x45d   : > { %v2398_v45 = vpop.permute.xlu1 %2397  ;;  %v2403_v26 = vpop.permute.xlu0 %2402 }
 0x45e   : > { %v2435_v61 = vmul.f32 %v2398_v45, %v4941_v53  ;;  %v2436_v33 = vmul.f32 %v2403_v26, %v2081_v60 }
 0x460   : > { %2467 = vst [vmem:[%s4949_s24 + $0xf0] sm:$0xff] %v2435_v61  ;;  %2468 = vst [vmem:[%s4949_s24 + $0xf8] sm:$0xff] %v2436_v33 }
 0x461   : > { %3269 = shalt.err (!%p3266_p12)
}
 0x462   : > { %s3270_s28 = scalar_lea.hbm %s5018_s30, 4096  ;;  %s3274_s10 = scalar_lea.hbm %s5074_s3, 32768 }
 0x463   : > { %p3271_p11 = scmp.ne.s32.totalorder %s5018_s30, %s3270_s28  ;;  %p3275_p6 = scmp.lt.u32.totalorder %s5018_s30, %s5074_s3 }
 0x464   : > { %p3276_p3 = scmp.lt.u32.totalorder %s3274_s10, %s3270_s28  ;;  %p3278_p13 = scmp.lt.u32.totalorder %s3270_s28, %s5018_s30 }
 0x465   : > { %p3272_p5 = pnand %p3271_p11, %p5346_p7 }
 0x466   : > { %p3277_p2 = por %p3276_p3, %p3275_p6 }
 0x467   : > { %p3273_p4 = pneg %p3272_p5 }
 0x468   : > { %p3279_p8 = por %p3278_p13, %p3277_p2 }
 0x46a   : > { %p3280_p9 = pnand %p3279_p8, %p3273_p4 }
 0x46c   : > { %3283 = shalt.err (!%p3280_p9)
}
 0x46d   : > { %s3355_s11 = smov 128   ;;  %s3356_s19 = smov 8  }
 0x46e   : > { %2833 = dma.vmem_to_hbm [thread:$0]  (%p5346_p7), %s5020_s20, 4096, %s5018_s30, %s2470_s15, %s3355_s11, %s3355_s11, %s3356_s19  }
 0x46f PF: > { %p2850_p0 = scmp.ge.s32.totalorder %s3342_s17, 2  ;;  %s2500_s9 = sand.u32 1, %s3322_s12  }
 0x470   : > { %p5347_p1 = scmp.ne.s32.totalorder %s5160_s27, 0  ;;  %s2501_s18 = scalar_lea.sflag [#allocation8], %s2500_s9 }
 0x472   : > { %p2846_p10 = pnand %p2850_p0, %p5347_p1 }
 0x474   : > { %3317 = dma.done.wait (!%p2846_p10), %s2501_s18, 4096  }
 0x475   : > { %3319 = vsyncadd (!%p2846_p10), %s2501_s18, 4294963200  ;;  %s22_s17 = sadd.s32 1, %s3342_s17   ;;  %s5348_s24 = sld [smem:[#allocation18_spill]] }
 0x476   : > { %p19_p12 = scmp.ge.s32.totalorder %s22_s17, 10   ;;  %s5349_s15 = sld [smem:[#allocation16_spill]] }
 0x477   : > { %s5350_s16 = sld [smem:[#allocation17_spill]]  ;;  %s5351_s12 = smov %s3326_s13 }
 0x478   : > { %s5352_s13 = smov %s3330_s14  ;;  %21 = sbr.rel (!%p19_p12) target bundleno = 10 (0xa), region = 109 }
 0x47b   : > { %s5353_s14 = smov %s5348_s24 }
 0x47f   :  { %2506 = vsyncpa [#allocation7], 1 }
 0x480   :  { %2508 = vsyncpa [#allocation7 + $0x1], 1 }
 0x481   :  { %2509 = vsyncpa [#allocation10], 1 }
 0x482   :  { %2511 = vsyncpa [#allocation10 + $0x1], 1 }
 0x483   :  { %2512 = vsyncpa [#allocation8], 1 }
 0x484   :  { %2514 = vsyncpa [#allocation8 + $0x1], 1 }

</bundles_post_ra>
